<compile_context>
chip_gen: v5e
topology: v5e:2x2
jax: 0.10.0
libtpu: 0.0.40
codegen_flags: <defaults>
</compile_context>

<pallas_src>
import functools

import jax
import jax.numpy as jnp
from jax import lax
from jax.experimental import pallas as pl
from jax.experimental.pallas import tpu as pltpu

INPUT_SIZE = 9
HIDDEN_SIZES = (64, 32, 16)
OUTPUT_SIZE = 1
LAYER_SIZES = (INPUT_SIZE,) + HIDDEN_SIZES + (OUTPUT_SIZE,)


def _round_up(a, m):
    return ((a + m - 1) // m) * m


def mlp_kernel(x_ref,
               w1_ref, b1_ref,
               w2_ref, b2_ref,
               w3_ref, b3_ref,
               w4t_ref, b4_ref,
               o_ref, *, sub_tile, num_sub):
    """Fully fused 4-layer MLP on one (tile, 9) input block -> (1, tile) output row."""
    cdt = w2_ref.dtype                     # bf16 (default) or f32 matmul operand dtype

    # Weights/biases are tiny; load once, outside the sub-tile loop.
    w1 = w1_ref[...]                       # (64, 9)  f32
    b1 = b1_ref[...]                       # (64, 1)  f32
    w2 = w2_ref[...]                       # (32, 64) cdt
    b2 = b2_ref[...]                       # (32, 1)  f32
    w3 = w3_ref[...]                       # (16, 32) cdt
    b3 = b3_ref[...]                       # (16, 1)  f32
    w4t = w4t_ref[...]                     # (16, 1)  f32
    b4 = b4_ref[...]                       # (1, 1)   f32

    def sub_body(s, carry):
        c0 = pl.multiple_of(s * sub_tile, 128)
        xs = x_ref[pl.ds(c0, sub_tile), :]                     # (SUB, 9) f32
        # Layer 1: contract the shared feature dim -> (64, SUB); batch lands on lanes.
        h = lax.dot_general(w1, xs, (((1,), (1,)), ((), ())),
                            preferred_element_type=jnp.float32)
        h = jnp.maximum(h + b1, 0.0).astype(cdt)               # (64, SUB)
        # Layer 2 (dominant matmul) and layer 3: bf16 operands, f32 accumulation.
        h = jnp.dot(w2, h, preferred_element_type=jnp.float32)
        h = jnp.maximum(h + b2, 0.0).astype(cdt)               # (32, SUB)
        h = jnp.dot(w3, h, preferred_element_type=jnp.float32)
        h = jnp.maximum(h + b3, 0.0)                           # (16, SUB) f32
        # Layer 4 (1x16): VPU multiply + XLU sublane reduce instead of a padded
        # MXU matmul (W4 row would be ~99% MXU padding).
        out = jnp.sum(h * w4t, axis=0, keepdims=True) + b4     # (1, SUB) f32
        o_ref[:, pl.ds(c0, sub_tile)] = out.astype(o_ref.dtype)  # lane-dense store
        return carry

    lax.fori_loop(0, num_sub, sub_body, None, unroll=True)


def _xla_forward(x, params):
    """Fused XLA dot chain for tiny batches (cheaper than a padded pallas launch)."""
    h = x
    n = len(params)
    for i, (w, b) in enumerate(params):
        h = h @ w.T + b[:, 0]
        if i < n - 1:
            h = jnp.maximum(h, 0.0)
    return h


@functools.partial(jax.jit,
                   static_argnames=("batch_tile", "sub_tile", "compute_dtype"))
def simple_model_forward(x, params, batch_tile=2048, sub_tile=256,
                         compute_dtype=jnp.bfloat16):
    """x: (B, 9) f32; params: ((W, b), ...) with W (out, in), b (out, 1) (PyTorch layout).

    Returns (B, 1) float32.
    """
    assert batch_tile % sub_tile == 0, "batch_tile must be a multiple of sub_tile"
    assert sub_tile % 128 == 0, "sub_tile must be a multiple of 128 (lane width)"
    B = x.shape[0]

    # Small-batch fallback: skip pallas_call, no full-tile padding.
    if B < batch_tile:
        return _xla_forward(x, params).astype(jnp.float32)

    # Pick the tile so there are always >= 2 grid steps (keeps both v7x TCs busy),
    # while staying at/below the requested batch_tile.
    num_tiles = max(2, pl.cdiv(B, batch_tile))
    tile = _round_up(pl.cdiv(B, num_tiles), sub_tile)
    num_tiles = pl.cdiv(B, tile)
    B_pad = num_tiles * tile

    # x stays in natural (B, 9) f32 layout: no host-side transpose/cast HBM pass.
    x_p = x if B_pad == B else jnp.pad(x, ((0, B_pad - B), (0, 0)))

    (w1, b1), (w2, b2), (w3, b3), (w4, b4) = params
    cdt = compute_dtype
    args = [
        x_p,
        w1.astype(jnp.float32), b1.astype(jnp.float32),   # layer 1 kept f32 (K=9)
        w2.astype(cdt),         b2.astype(jnp.float32),
        w3.astype(cdt),         b3.astype(jnp.float32),
        w4.T.astype(jnp.float32), b4.astype(jnp.float32),  # (16, 1) for VPU row-sum
    ]

    in_specs = [pl.BlockSpec((tile, INPUT_SIZE), lambda i: (i, 0))]
    # Constant-index blocks: weights/biases stay VMEM-resident across the grid.
    in_specs += [pl.BlockSpec(a.shape, lambda i: (0, 0)) for a in args[1:]]

    flops = 2 * B_pad * sum(fi * fo for fi, fo in zip(LAYER_SIZES[:-1], LAYER_SIZES[1:]))
    bytes_accessed = (B_pad * INPUT_SIZE * x.dtype.itemsize     # stream x
                      + B_pad * OUTPUT_SIZE * 4                 # store out
                      + sum(a.size * a.dtype.itemsize for a in args[1:]))

    kernel = functools.partial(mlp_kernel, sub_tile=sub_tile,
                               num_sub=tile // sub_tile)

    outT = pl.pallas_call(
        kernel,
        out_shape=jax.ShapeDtypeStruct((OUTPUT_SIZE, B_pad), jnp.float32),
        grid=(num_tiles,),
        in_specs=in_specs,
        out_specs=pl.BlockSpec((OUTPUT_SIZE, tile), lambda i: (0, i)),
        compiler_params=pltpu.CompilerParams(
            dimension_semantics=("parallel",),   # shard batch tiles across v7x TCs
        ),
        cost_estimate=pl.CostEstimate(
            flops=flops, transcendentals=0, bytes_accessed=bytes_accessed),
    )(*args)

    return outT[0, :B].reshape(B, OUTPUT_SIZE).astype(jnp.float32)


def init_params(key):
    """Deterministic init mimicking nn.Linear's uniform(-1/sqrt(in), 1/sqrt(in)).

    Weights in PyTorch layout: W (out_features, in_features), b (out_features, 1).
    """
    params = []
    for fan_in, fan_out in zip(LAYER_SIZES[:-1], LAYER_SIZES[1:]):
        key, kw, kb = jax.random.split(key, 3)
        bound = 1.0 / (fan_in ** 0.5)
        w = jax.random.uniform(kw, (fan_out, fan_in), jnp.float32, -bound, bound)
        b = jax.random.uniform(kb, (fan_out, 1), jnp.float32, -bound, bound)
        params.append((w, b))
    return tuple(params)


def reference_forward(x, params):
    h = x
    for i, (w, b) in enumerate(params):
        h = h @ w.T + b[:, 0]
        if i < len(params) - 1:
            h = jnp.maximum(h, 0.0)
    return h


if __name__ == "__main__":
    key = jax.random.PRNGKey(0)
    key, kx = jax.random.split(key)
    params = init_params(key)

    batch = 4096                       # 2 grid steps of 2048 (both v7x TCs fed)
    x = jax.random.normal(kx, (batch, INPUT_SIZE), dtype=jnp.float32)
    ref = reference_forward(x, params)

    # f32 operands: tight check of kernel structure / indexing.
    out_f32 = jax.block_until_ready(
        simple_model_forward(x, params, compute_dtype=jnp.float32))
    assert out_f32.shape == (batch, OUTPUT_SIZE)
    assert jnp.allclose(out_f32, ref, atol=1e-4, rtol=1e-3), "f32 mismatch vs reference"

    # Default path: bf16 matmul operands, f32 accumulation.
    out = jax.block_until_ready(simple_model_forward(x, params))
    assert out.shape == (batch, OUTPUT_SIZE)
    assert jnp.allclose(out, ref, atol=5e-2, rtol=5e-2), "bf16 mismatch vs reference"

    # Ragged batch (not a multiple of the tile) still goes through the Pallas path.
    xr = x[:2688]
    out_r = jax.block_until_ready(
        simple_model_forward(xr, params, compute_dtype=jnp.float32))
    assert jnp.allclose(out_r, ref[:2688], atol=1e-4, rtol=1e-3), "ragged mismatch"

    # Tiny batch: XLA fallback path (no padded pallas launch).
    out_small = jax.block_until_ready(simple_model_forward(x[:8], params))
    assert out_small.shape == (8, OUTPUT_SIZE)
    assert jnp.allclose(out_small, ref[:8], atol=1e-4, rtol=1e-3), "small-batch mismatch"

    print("KERNEL_OK")
</pallas_src>

<mosaic_0001>
module attributes {stable_mosaic.version = 11 : i64} {
  func.func @mlp_kernel(%arg0: i32, %arg1: memref<2048x9xf32, #tpu.memory_space<vmem>>, %arg2: memref<64x9xf32, #tpu.memory_space<vmem>>, %arg3: memref<64x1xf32, #tpu.memory_space<vmem>>, %arg4: memref<32x64xf32, #tpu.memory_space<vmem>>, %arg5: memref<32x1xf32, #tpu.memory_space<vmem>>, %arg6: memref<16x32xf32, #tpu.memory_space<vmem>>, %arg7: memref<16x1xf32, #tpu.memory_space<vmem>>, %arg8: memref<16x1xf32, #tpu.memory_space<vmem>>, %arg9: memref<1x1xf32, #tpu.memory_space<vmem>>, %arg10: memref<1x2048xf32, #tpu.memory_space<vmem>>) attributes {dimension_semantics = [#tpu.dimension_semantics<parallel>], iteration_bounds = array<i64: 2>, scalar_prefetch = 0 : i64, scratch_operands = 0 : i64, tpu.core_type = #tpu.core_type<tc>, window_params = [{transform_indices = @transform_0, window_bounds = array<i64: 2048, 9>}, {pipeline_mode = #tpu.pipeline_mode<synchronous>, transform_indices = @transform_1, window_bounds = array<i64: 64, 9>}, {pipeline_mode = #tpu.pipeline_mode<synchronous>, transform_indices = @transform_2, window_bounds = array<i64: 64, 1>}, {pipeline_mode = #tpu.pipeline_mode<synchronous>, transform_indices = @transform_3, window_bounds = array<i64: 32, 64>}, {pipeline_mode = #tpu.pipeline_mode<synchronous>, transform_indices = @transform_4, window_bounds = array<i64: 32, 1>}, {pipeline_mode = #tpu.pipeline_mode<synchronous>, transform_indices = @transform_5, window_bounds = array<i64: 16, 32>}, {pipeline_mode = #tpu.pipeline_mode<synchronous>, transform_indices = @transform_6, window_bounds = array<i64: 16, 1>}, {pipeline_mode = #tpu.pipeline_mode<synchronous>, transform_indices = @transform_7, window_bounds = array<i64: 16, 1>}, {pipeline_mode = #tpu.pipeline_mode<synchronous>, transform_indices = @transform_8, window_bounds = array<i64: 1, 1>}, {transform_indices = @transform_9, window_bounds = array<i64: 1, 2048>}]} {
    %c0 = arith.constant 0 : index
    %c0_0 = arith.constant 0 : index
    %0 = vector.load %arg2[%c0, %c0_0] : memref<64x9xf32, #tpu.memory_space<vmem>>, vector<64x9xf32>
    %c0_1 = arith.constant 0 : index
    %c0_2 = arith.constant 0 : index
    %1 = vector.load %arg3[%c0_1, %c0_2] : memref<64x1xf32, #tpu.memory_space<vmem>>, vector<64x1xf32>
    %c0_3 = arith.constant 0 : index
    %c0_4 = arith.constant 0 : index
    %2 = vector.load %arg4[%c0_3, %c0_4] : memref<32x64xf32, #tpu.memory_space<vmem>>, vector<32x64xf32>
    %c0_5 = arith.constant 0 : index
    %c0_6 = arith.constant 0 : index
    %3 = vector.load %arg5[%c0_5, %c0_6] : memref<32x1xf32, #tpu.memory_space<vmem>>, vector<32x1xf32>
    %c0_7 = arith.constant 0 : index
    %c0_8 = arith.constant 0 : index
    %4 = vector.load %arg6[%c0_7, %c0_8] : memref<16x32xf32, #tpu.memory_space<vmem>>, vector<16x32xf32>
    %c0_9 = arith.constant 0 : index
    %c0_10 = arith.constant 0 : index
    %5 = vector.load %arg7[%c0_9, %c0_10] : memref<16x1xf32, #tpu.memory_space<vmem>>, vector<16x1xf32>
    %c0_11 = arith.constant 0 : index
    %c0_12 = arith.constant 0 : index
    %6 = vector.load %arg8[%c0_11, %c0_12] : memref<16x1xf32, #tpu.memory_space<vmem>>, vector<16x1xf32>
    %c0_13 = arith.constant 0 : index
    %c0_14 = arith.constant 0 : index
    %7 = vector.load %arg9[%c0_13, %c0_14] : memref<1x1xf32, #tpu.memory_space<vmem>>, vector<1x1xf32>
    %c0_i32 = arith.constant 0 : i32
    %c256_i32 = arith.constant 256 : i32
    %8 = arith.muli %c0_i32, %c256_i32 : i32
    %9 = tpu.assume_multiple %8, 128 : i32
    %10 = arith.index_cast %9 : i32 to index
    %c0_15 = arith.constant 0 : index
    %11 = vector.load %arg1[%10, %c0_15] : memref<2048x9xf32, #tpu.memory_space<vmem>>, vector<256x9xf32>
    %cst = arith.constant dense<0.000000e+00> : vector<64x256xf32>
    %12 = tpu.matmul %0, %11, %cst {dimension_numbers = #tpu.dot_dimension_numbers<[1], [1], [0], [0], [0, 0, 1, 0], [], []>} : vector<64x9xf32>, vector<256x9xf32>, vector<64x256xf32> -> vector<64x256xf32>
    %13 = vector.broadcast %1 : vector<64x1xf32> to vector<64x256xf32>
    %14 = arith.addf %12, %13 : vector<64x256xf32>
    %cst_16 = arith.constant 0.000000e+00 : f32
    %15 = vector.broadcast %cst_16 : f32 to vector<64x256xf32>
    %16 = arith.maximumf %14, %15 : vector<64x256xf32>
    %cst_17 = arith.constant dense<0.000000e+00> : vector<32x256xf32>
    %17 = tpu.matmul %2, %16, %cst_17 {dimension_numbers = #tpu.dot_dimension_numbers<[1], [0], [0], [1], [0, 0, 1, 1], [], []>} : vector<32x64xf32>, vector<64x256xf32>, vector<32x256xf32> -> vector<32x256xf32>
    %18 = vector.broadcast %3 : vector<32x1xf32> to vector<32x256xf32>
    %19 = arith.addf %17, %18 : vector<32x256xf32>
    %cst_18 = arith.constant 0.000000e+00 : f32
    %20 = vector.broadcast %cst_18 : f32 to vector<32x256xf32>
    %21 = arith.maximumf %19, %20 : vector<32x256xf32>
    %cst_19 = arith.constant dense<0.000000e+00> : vector<16x256xf32>
    %22 = tpu.matmul %4, %21, %cst_19 {dimension_numbers = #tpu.dot_dimension_numbers<[1], [0], [0], [1], [0, 0, 1, 1], [], []>} : vector<16x32xf32>, vector<32x256xf32>, vector<16x256xf32> -> vector<16x256xf32>
    %23 = vector.broadcast %5 : vector<16x1xf32> to vector<16x256xf32>
    %24 = arith.addf %22, %23 : vector<16x256xf32>
    %cst_20 = arith.constant 0.000000e+00 : f32
    %25 = vector.broadcast %cst_20 : f32 to vector<16x256xf32>
    %26 = arith.maximumf %24, %25 : vector<16x256xf32>
    %27 = vector.broadcast %6 : vector<16x1xf32> to vector<16x256xf32>
    %28 = arith.mulf %26, %27 : vector<16x256xf32>
    %cst_21 = arith.constant dense<0.000000e+00> : vector<256xf32>
    %29 = vector.multi_reduction <add>, %28, %cst_21 [0] : vector<16x256xf32> to vector<256xf32>
    %30 = vector.shape_cast %29 : vector<256xf32> to vector<1x256xf32>
    %31 = vector.broadcast %7 : vector<1x1xf32> to vector<1x256xf32>
    %32 = arith.addf %30, %31 : vector<1x256xf32>
    %c0_22 = arith.constant 0 : index
    %33 = arith.index_cast %9 : i32 to index
    %34 = vector.load %arg10[%c0_22, %33] : memref<1x2048xf32, #tpu.memory_space<vmem>>, vector<1x256xf32>
    tpu.vector_store %arg10[%c0_22, %33], %32 {strides = array<i32>} : memref<1x2048xf32, #tpu.memory_space<vmem>>, vector<1x256xf32>,
    %c1_i32 = arith.constant 1 : i32
    %c256_i32_23 = arith.constant 256 : i32
    %35 = arith.muli %c1_i32, %c256_i32_23 : i32
    %36 = tpu.assume_multiple %35, 128 : i32
    %37 = arith.index_cast %36 : i32 to index
    %c0_24 = arith.constant 0 : index
    %38 = vector.load %arg1[%37, %c0_24] : memref<2048x9xf32, #tpu.memory_space<vmem>>, vector<256x9xf32>
    %cst_25 = arith.constant dense<0.000000e+00> : vector<64x256xf32>
    %39 = tpu.matmul %0, %38, %cst_25 {dimension_numbers = #tpu.dot_dimension_numbers<[1], [1], [0], [0], [0, 0, 1, 0], [], []>} : vector<64x9xf32>, vector<256x9xf32>, vector<64x256xf32> -> vector<64x256xf32>
    %40 = vector.broadcast %1 : vector<64x1xf32> to vector<64x256xf32>
    %41 = arith.addf %39, %40 : vector<64x256xf32>
    %cst_26 = arith.constant 0.000000e+00 : f32
    %42 = vector.broadcast %cst_26 : f32 to vector<64x256xf32>
    %43 = arith.maximumf %41, %42 : vector<64x256xf32>
    %cst_27 = arith.constant dense<0.000000e+00> : vector<32x256xf32>
    %44 = tpu.matmul %2, %43, %cst_27 {dimension_numbers = #tpu.dot_dimension_numbers<[1], [0], [0], [1], [0, 0, 1, 1], [], []>} : vector<32x64xf32>, vector<64x256xf32>, vector<32x256xf32> -> vector<32x256xf32>
    %45 = vector.broadcast %3 : vector<32x1xf32> to vector<32x256xf32>
    %46 = arith.addf %44, %45 : vector<32x256xf32>
    %cst_28 = arith.constant 0.000000e+00 : f32
    %47 = vector.broadcast %cst_28 : f32 to vector<32x256xf32>
    %48 = arith.maximumf %46, %47 : vector<32x256xf32>
    %cst_29 = arith.constant dense<0.000000e+00> : vector<16x256xf32>
    %49 = tpu.matmul %4, %48, %cst_29 {dimension_numbers = #tpu.dot_dimension_numbers<[1], [0], [0], [1], [0, 0, 1, 1], [], []>} : vector<16x32xf32>, vector<32x256xf32>, vector<16x256xf32> -> vector<16x256xf32>
    %50 = vector.broadcast %5 : vector<16x1xf32> to vector<16x256xf32>
    %51 = arith.addf %49, %50 : vector<16x256xf32>
    %cst_30 = arith.constant 0.000000e+00 : f32
    %52 = vector.broadcast %cst_30 : f32 to vector<16x256xf32>
    %53 = arith.maximumf %51, %52 : vector<16x256xf32>
    %54 = vector.broadcast %6 : vector<16x1xf32> to vector<16x256xf32>
    %55 = arith.mulf %53, %54 : vector<16x256xf32>
    %cst_31 = arith.constant dense<0.000000e+00> : vector<256xf32>
    %56 = vector.multi_reduction <add>, %55, %cst_31 [0] : vector<16x256xf32> to vector<256xf32>
    %57 = vector.shape_cast %56 : vector<256xf32> to vector<1x256xf32>
    %58 = vector.broadcast %7 : vector<1x1xf32> to vector<1x256xf32>
    %59 = arith.addf %57, %58 : vector<1x256xf32>
    %c0_32 = arith.constant 0 : index
    %60 = arith.index_cast %36 : i32 to index
    %61 = vector.load %arg10[%c0_32, %60] : memref<1x2048xf32, #tpu.memory_space<vmem>>, vector<1x256xf32>
    tpu.vector_store %arg10[%c0_32, %60], %59 {strides = array<i32>} : memref<1x2048xf32, #tpu.memory_space<vmem>>, vector<1x256xf32>,
    %c2_i32 = arith.constant 2 : i32
    %c256_i32_33 = arith.constant 256 : i32
    %62 = arith.muli %c2_i32, %c256_i32_33 : i32
    %63 = tpu.assume_multiple %62, 128 : i32
    %64 = arith.index_cast %63 : i32 to index
    %c0_34 = arith.constant 0 : index
    %65 = vector.load %arg1[%64, %c0_34] : memref<2048x9xf32, #tpu.memory_space<vmem>>, vector<256x9xf32>
    %cst_35 = arith.constant dense<0.000000e+00> : vector<64x256xf32>
    %66 = tpu.matmul %0, %65, %cst_35 {dimension_numbers = #tpu.dot_dimension_numbers<[1], [1], [0], [0], [0, 0, 1, 0], [], []>} : vector<64x9xf32>, vector<256x9xf32>, vector<64x256xf32> -> vector<64x256xf32>
    %67 = vector.broadcast %1 : vector<64x1xf32> to vector<64x256xf32>
    %68 = arith.addf %66, %67 : vector<64x256xf32>
    %cst_36 = arith.constant 0.000000e+00 : f32
    %69 = vector.broadcast %cst_36 : f32 to vector<64x256xf32>
    %70 = arith.maximumf %68, %69 : vector<64x256xf32>
    %cst_37 = arith.constant dense<0.000000e+00> : vector<32x256xf32>
    %71 = tpu.matmul %2, %70, %cst_37 {dimension_numbers = #tpu.dot_dimension_numbers<[1], [0], [0], [1], [0, 0, 1, 1], [], []>} : vector<32x64xf32>, vector<64x256xf32>, vector<32x256xf32> -> vector<32x256xf32>
    %72 = vector.broadcast %3 : vector<32x1xf32> to vector<32x256xf32>
    %73 = arith.addf %71, %72 : vector<32x256xf32>
    %cst_38 = arith.constant 0.000000e+00 : f32
    %74 = vector.broadcast %cst_38 : f32 to vector<32x256xf32>
    %75 = arith.maximumf %73, %74 : vector<32x256xf32>
    %cst_39 = arith.constant dense<0.000000e+00> : vector<16x256xf32>
    %76 = tpu.matmul %4, %75, %cst_39 {dimension_numbers = #tpu.dot_dimension_numbers<[1], [0], [0], [1], [0, 0, 1, 1], [], []>} : vector<16x32xf32>, vector<32x256xf32>, vector<16x256xf32> -> vector<16x256xf32>
    %77 = vector.broadcast %5 : vector<16x1xf32> to vector<16x256xf32>
    %78 = arith.addf %76, %77 : vector<16x256xf32>
    %cst_40 = arith.constant 0.000000e+00 : f32
    %79 = vector.broadcast %cst_40 : f32 to vector<16x256xf32>
    %80 = arith.maximumf %78, %79 : vector<16x256xf32>
    %81 = vector.broadcast %6 : vector<16x1xf32> to vector<16x256xf32>
    %82 = arith.mulf %80, %81 : vector<16x256xf32>
    %cst_41 = arith.constant dense<0.000000e+00> : vector<256xf32>
    %83 = vector.multi_reduction <add>, %82, %cst_41 [0] : vector<16x256xf32> to vector<256xf32>
    %84 = vector.shape_cast %83 : vector<256xf32> to vector<1x256xf32>
    %85 = vector.broadcast %7 : vector<1x1xf32> to vector<1x256xf32>
    %86 = arith.addf %84, %85 : vector<1x256xf32>
    %c0_42 = arith.constant 0 : index
    %87 = arith.index_cast %63 : i32 to index
    %88 = vector.load %arg10[%c0_42, %87] : memref<1x2048xf32, #tpu.memory_space<vmem>>, vector<1x256xf32>
    tpu.vector_store %arg10[%c0_42, %87], %86 {strides = array<i32>} : memref<1x2048xf32, #tpu.memory_space<vmem>>, vector<1x256xf32>,
    %c3_i32 = arith.constant 3 : i32
    %c256_i32_43 = arith.constant 256 : i32
    %89 = arith.muli %c3_i32, %c256_i32_43 : i32
    %90 = tpu.assume_multiple %89, 128 : i32
    %91 = arith.index_cast %90 : i32 to index
    %c0_44 = arith.constant 0 : index
    %92 = vector.load %arg1[%91, %c0_44] : memref<2048x9xf32, #tpu.memory_space<vmem>>, vector<256x9xf32>
    %cst_45 = arith.constant dense<0.000000e+00> : vector<64x256xf32>
    %93 = tpu.matmul %0, %92, %cst_45 {dimension_numbers = #tpu.dot_dimension_numbers<[1], [1], [0], [0], [0, 0, 1, 0], [], []>} : vector<64x9xf32>, vector<256x9xf32>, vector<64x256xf32> -> vector<64x256xf32>
    %94 = vector.broadcast %1 : vector<64x1xf32> to vector<64x256xf32>
    %95 = arith.addf %93, %94 : vector<64x256xf32>
    %cst_46 = arith.constant 0.000000e+00 : f32
    %96 = vector.broadcast %cst_46 : f32 to vector<64x256xf32>
    %97 = arith.maximumf %95, %96 : vector<64x256xf32>
    %cst_47 = arith.constant dense<0.000000e+00> : vector<32x256xf32>
    %98 = tpu.matmul %2, %97, %cst_47 {dimension_numbers = #tpu.dot_dimension_numbers<[1], [0], [0], [1], [0, 0, 1, 1], [], []>} : vector<32x64xf32>, vector<64x256xf32>, vector<32x256xf32> -> vector<32x256xf32>
    %99 = vector.broadcast %3 : vector<32x1xf32> to vector<32x256xf32>
    %100 = arith.addf %98, %99 : vector<32x256xf32>
    %cst_48 = arith.constant 0.000000e+00 : f32
    %101 = vector.broadcast %cst_48 : f32 to vector<32x256xf32>
    %102 = arith.maximumf %100, %101 : vector<32x256xf32>
    %cst_49 = arith.constant dense<0.000000e+00> : vector<16x256xf32>
    %103 = tpu.matmul %4, %102, %cst_49 {dimension_numbers = #tpu.dot_dimension_numbers<[1], [0], [0], [1], [0, 0, 1, 1], [], []>} : vector<16x32xf32>, vector<32x256xf32>, vector<16x256xf32> -> vector<16x256xf32>
    %104 = vector.broadcast %5 : vector<16x1xf32> to vector<16x256xf32>
    %105 = arith.addf %103, %104 : vector<16x256xf32>
    %cst_50 = arith.constant 0.000000e+00 : f32
    %106 = vector.broadcast %cst_50 : f32 to vector<16x256xf32>
    %107 = arith.maximumf %105, %106 : vector<16x256xf32>
    %108 = vector.broadcast %6 : vector<16x1xf32> to vector<16x256xf32>
    %109 = arith.mulf %107, %108 : vector<16x256xf32>
    %cst_51 = arith.constant dense<0.000000e+00> : vector<256xf32>
    %110 = vector.multi_reduction <add>, %109, %cst_51 [0] : vector<16x256xf32> to vector<256xf32>
    %111 = vector.shape_cast %110 : vector<256xf32> to vector<1x256xf32>
    %112 = vector.broadcast %7 : vector<1x1xf32> to vector<1x256xf32>
    %113 = arith.addf %111, %112 : vector<1x256xf32>
    %c0_52 = arith.constant 0 : index
    %114 = arith.index_cast %90 : i32 to index
    %115 = vector.load %arg10[%c0_52, %114] : memref<1x2048xf32, #tpu.memory_space<vmem>>, vector<1x256xf32>
    tpu.vector_store %arg10[%c0_52, %114], %113 {strides = array<i32>} : memref<1x2048xf32, #tpu.memory_space<vmem>>, vector<1x256xf32>,
    %c4_i32 = arith.constant 4 : i32
    %c256_i32_53 = arith.constant 256 : i32
    %116 = arith.muli %c4_i32, %c256_i32_53 : i32
    %117 = tpu.assume_multiple %116, 128 : i32
    %118 = arith.index_cast %117 : i32 to index
    %c0_54 = arith.constant 0 : index
    %119 = vector.load %arg1[%118, %c0_54] : memref<2048x9xf32, #tpu.memory_space<vmem>>, vector<256x9xf32>
    %cst_55 = arith.constant dense<0.000000e+00> : vector<64x256xf32>
    %120 = tpu.matmul %0, %119, %cst_55 {dimension_numbers = #tpu.dot_dimension_numbers<[1], [1], [0], [0], [0, 0, 1, 0], [], []>} : vector<64x9xf32>, vector<256x9xf32>, vector<64x256xf32> -> vector<64x256xf32>
    %121 = vector.broadcast %1 : vector<64x1xf32> to vector<64x256xf32>
    %122 = arith.addf %120, %121 : vector<64x256xf32>
    %cst_56 = arith.constant 0.000000e+00 : f32
    %123 = vector.broadcast %cst_56 : f32 to vector<64x256xf32>
    %124 = arith.maximumf %122, %123 : vector<64x256xf32>
    %cst_57 = arith.constant dense<0.000000e+00> : vector<32x256xf32>
    %125 = tpu.matmul %2, %124, %cst_57 {dimension_numbers = #tpu.dot_dimension_numbers<[1], [0], [0], [1], [0, 0, 1, 1], [], []>} : vector<32x64xf32>, vector<64x256xf32>, vector<32x256xf32> -> vector<32x256xf32>
    %126 = vector.broadcast %3 : vector<32x1xf32> to vector<32x256xf32>
    %127 = arith.addf %125, %126 : vector<32x256xf32>
    %cst_58 = arith.constant 0.000000e+00 : f32
    %128 = vector.broadcast %cst_58 : f32 to vector<32x256xf32>
    %129 = arith.maximumf %127, %128 : vector<32x256xf32>
    %cst_59 = arith.constant dense<0.000000e+00> : vector<16x256xf32>
    %130 = tpu.matmul %4, %129, %cst_59 {dimension_numbers = #tpu.dot_dimension_numbers<[1], [0], [0], [1], [0, 0, 1, 1], [], []>} : vector<16x32xf32>, vector<32x256xf32>, vector<16x256xf32> -> vector<16x256xf32>
    %131 = vector.broadcast %5 : vector<16x1xf32> to vector<16x256xf32>
    %132 = arith.addf %130, %131 : vector<16x256xf32>
    %cst_60 = arith.constant 0.000000e+00 : f32
    %133 = vector.broadcast %cst_60 : f32 to vector<16x256xf32>
    %134 = arith.maximumf %132, %133 : vector<16x256xf32>
    %135 = vector.broadcast %6 : vector<16x1xf32> to vector<16x256xf32>
    %136 = arith.mulf %134, %135 : vector<16x256xf32>
    %cst_61 = arith.constant dense<0.000000e+00> : vector<256xf32>
    %137 = vector.multi_reduction <add>, %136, %cst_61 [0] : vector<16x256xf32> to vector<256xf32>
    %138 = vector.shape_cast %137 : vector<256xf32> to vector<1x256xf32>
    %139 = vector.broadcast %7 : vector<1x1xf32> to vector<1x256xf32>
    %140 = arith.addf %138, %139 : vector<1x256xf32>
    %c0_62 = arith.constant 0 : index
    %141 = arith.index_cast %117 : i32 to index
    %142 = vector.load %arg10[%c0_62, %141] : memref<1x2048xf32, #tpu.memory_space<vmem>>, vector<1x256xf32>
    tpu.vector_store %arg10[%c0_62, %141], %140 {strides = array<i32>} : memref<1x2048xf32, #tpu.memory_space<vmem>>, vector<1x256xf32>,
    %c5_i32 = arith.constant 5 : i32
    %c256_i32_63 = arith.constant 256 : i32
    %143 = arith.muli %c5_i32, %c256_i32_63 : i32
    %144 = tpu.assume_multiple %143, 128 : i32
    %145 = arith.index_cast %144 : i32 to index
    %c0_64 = arith.constant 0 : index
    %146 = vector.load %arg1[%145, %c0_64] : memref<2048x9xf32, #tpu.memory_space<vmem>>, vector<256x9xf32>
    %cst_65 = arith.constant dense<0.000000e+00> : vector<64x256xf32>
    %147 = tpu.matmul %0, %146, %cst_65 {dimension_numbers = #tpu.dot_dimension_numbers<[1], [1], [0], [0], [0, 0, 1, 0], [], []>} : vector<64x9xf32>, vector<256x9xf32>, vector<64x256xf32> -> vector<64x256xf32>
    %148 = vector.broadcast %1 : vector<64x1xf32> to vector<64x256xf32>
    %149 = arith.addf %147, %148 : vector<64x256xf32>
    %cst_66 = arith.constant 0.000000e+00 : f32
    %150 = vector.broadcast %cst_66 : f32 to vector<64x256xf32>
    %151 = arith.maximumf %149, %150 : vector<64x256xf32>
    %cst_67 = arith.constant dense<0.000000e+00> : vector<32x256xf32>
    %152 = tpu.matmul %2, %151, %cst_67 {dimension_numbers = #tpu.dot_dimension_numbers<[1], [0], [0], [1], [0, 0, 1, 1], [], []>} : vector<32x64xf32>, vector<64x256xf32>, vector<32x256xf32> -> vector<32x256xf32>
    %153 = vector.broadcast %3 : vector<32x1xf32> to vector<32x256xf32>
    %154 = arith.addf %152, %153 : vector<32x256xf32>
    %cst_68 = arith.constant 0.000000e+00 : f32
    %155 = vector.broadcast %cst_68 : f32 to vector<32x256xf32>
    %156 = arith.maximumf %154, %155 : vector<32x256xf32>
    %cst_69 = arith.constant dense<0.000000e+00> : vector<16x256xf32>
    %157 = tpu.matmul %4, %156, %cst_69 {dimension_numbers = #tpu.dot_dimension_numbers<[1], [0], [0], [1], [0, 0, 1, 1], [], []>} : vector<16x32xf32>, vector<32x256xf32>, vector<16x256xf32> -> vector<16x256xf32>
    %158 = vector.broadcast %5 : vector<16x1xf32> to vector<16x256xf32>
    %159 = arith.addf %157, %158 : vector<16x256xf32>
    %cst_70 = arith.constant 0.000000e+00 : f32
    %160 = vector.broadcast %cst_70 : f32 to vector<16x256xf32>
    %161 = arith.maximumf %159, %160 : vector<16x256xf32>
    %162 = vector.broadcast %6 : vector<16x1xf32> to vector<16x256xf32>
    %163 = arith.mulf %161, %162 : vector<16x256xf32>
    %cst_71 = arith.constant dense<0.000000e+00> : vector<256xf32>
    %164 = vector.multi_reduction <add>, %163, %cst_71 [0] : vector<16x256xf32> to vector<256xf32>
    %165 = vector.shape_cast %164 : vector<256xf32> to vector<1x256xf32>
    %166 = vector.broadcast %7 : vector<1x1xf32> to vector<1x256xf32>
    %167 = arith.addf %165, %166 : vector<1x256xf32>
    %c0_72 = arith.constant 0 : index
    %168 = arith.index_cast %144 : i32 to index
    %169 = vector.load %arg10[%c0_72, %168] : memref<1x2048xf32, #tpu.memory_space<vmem>>, vector<1x256xf32>
    tpu.vector_store %arg10[%c0_72, %168], %167 {strides = array<i32>} : memref<1x2048xf32, #tpu.memory_space<vmem>>, vector<1x256xf32>,
    %c6_i32 = arith.constant 6 : i32
    %c256_i32_73 = arith.constant 256 : i32
    %170 = arith.muli %c6_i32, %c256_i32_73 : i32
    %171 = tpu.assume_multiple %170, 128 : i32
    %172 = arith.index_cast %171 : i32 to index
    %c0_74 = arith.constant 0 : index
    %173 = vector.load %arg1[%172, %c0_74] : memref<2048x9xf32, #tpu.memory_space<vmem>>, vector<256x9xf32>
    %cst_75 = arith.constant dense<0.000000e+00> : vector<64x256xf32>
    %174 = tpu.matmul %0, %173, %cst_75 {dimension_numbers = #tpu.dot_dimension_numbers<[1], [1], [0], [0], [0, 0, 1, 0], [], []>} : vector<64x9xf32>, vector<256x9xf32>, vector<64x256xf32> -> vector<64x256xf32>
    %175 = vector.broadcast %1 : vector<64x1xf32> to vector<64x256xf32>
    %176 = arith.addf %174, %175 : vector<64x256xf32>
    %cst_76 = arith.constant 0.000000e+00 : f32
    %177 = vector.broadcast %cst_76 : f32 to vector<64x256xf32>
    %178 = arith.maximumf %176, %177 : vector<64x256xf32>
    %cst_77 = arith.constant dense<0.000000e+00> : vector<32x256xf32>
    %179 = tpu.matmul %2, %178, %cst_77 {dimension_numbers = #tpu.dot_dimension_numbers<[1], [0], [0], [1], [0, 0, 1, 1], [], []>} : vector<32x64xf32>, vector<64x256xf32>, vector<32x256xf32> -> vector<32x256xf32>
    %180 = vector.broadcast %3 : vector<32x1xf32> to vector<32x256xf32>
    %181 = arith.addf %179, %180 : vector<32x256xf32>
    %cst_78 = arith.constant 0.000000e+00 : f32
    %182 = vector.broadcast %cst_78 : f32 to vector<32x256xf32>
    %183 = arith.maximumf %181, %182 : vector<32x256xf32>
    %cst_79 = arith.constant dense<0.000000e+00> : vector<16x256xf32>
    %184 = tpu.matmul %4, %183, %cst_79 {dimension_numbers = #tpu.dot_dimension_numbers<[1], [0], [0], [1], [0, 0, 1, 1], [], []>} : vector<16x32xf32>, vector<32x256xf32>, vector<16x256xf32> -> vector<16x256xf32>
    %185 = vector.broadcast %5 : vector<16x1xf32> to vector<16x256xf32>
    %186 = arith.addf %184, %185 : vector<16x256xf32>
    %cst_80 = arith.constant 0.000000e+00 : f32
    %187 = vector.broadcast %cst_80 : f32 to vector<16x256xf32>
    %188 = arith.maximumf %186, %187 : vector<16x256xf32>
    %189 = vector.broadcast %6 : vector<16x1xf32> to vector<16x256xf32>
    %190 = arith.mulf %188, %189 : vector<16x256xf32>
    %cst_81 = arith.constant dense<0.000000e+00> : vector<256xf32>
    %191 = vector.multi_reduction <add>, %190, %cst_81 [0] : vector<16x256xf32> to vector<256xf32>
    %192 = vector.shape_cast %191 : vector<256xf32> to vector<1x256xf32>
    %193 = vector.broadcast %7 : vector<1x1xf32> to vector<1x256xf32>
    %194 = arith.addf %192, %193 : vector<1x256xf32>
    %c0_82 = arith.constant 0 : index
    %195 = arith.index_cast %171 : i32 to index
    %196 = vector.load %arg10[%c0_82, %195] : memref<1x2048xf32, #tpu.memory_space<vmem>>, vector<1x256xf32>
    tpu.vector_store %arg10[%c0_82, %195], %194 {strides = array<i32>} : memref<1x2048xf32, #tpu.memory_space<vmem>>, vector<1x256xf32>,
    %c7_i32 = arith.constant 7 : i32
    %c256_i32_83 = arith.constant 256 : i32
    %197 = arith.muli %c7_i32, %c256_i32_83 : i32
    %198 = tpu.assume_multiple %197, 128 : i32
    %199 = arith.index_cast %198 : i32 to index
    %c0_84 = arith.constant 0 : index
    %200 = vector.load %arg1[%199, %c0_84] : memref<2048x9xf32, #tpu.memory_space<vmem>>, vector<256x9xf32>
    %cst_85 = arith.constant dense<0.000000e+00> : vector<64x256xf32>
    %201 = tpu.matmul %0, %200, %cst_85 {dimension_numbers = #tpu.dot_dimension_numbers<[1], [1], [0], [0], [0, 0, 1, 0], [], []>} : vector<64x9xf32>, vector<256x9xf32>, vector<64x256xf32> -> vector<64x256xf32>
    %202 = vector.broadcast %1 : vector<64x1xf32> to vector<64x256xf32>
    %203 = arith.addf %201, %202 : vector<64x256xf32>
    %cst_86 = arith.constant 0.000000e+00 : f32
    %204 = vector.broadcast %cst_86 : f32 to vector<64x256xf32>
    %205 = arith.maximumf %203, %204 : vector<64x256xf32>
    %cst_87 = arith.constant dense<0.000000e+00> : vector<32x256xf32>
    %206 = tpu.matmul %2, %205, %cst_87 {dimension_numbers = #tpu.dot_dimension_numbers<[1], [0], [0], [1], [0, 0, 1, 1], [], []>} : vector<32x64xf32>, vector<64x256xf32>, vector<32x256xf32> -> vector<32x256xf32>
    %207 = vector.broadcast %3 : vector<32x1xf32> to vector<32x256xf32>
    %208 = arith.addf %206, %207 : vector<32x256xf32>
    %cst_88 = arith.constant 0.000000e+00 : f32
    %209 = vector.broadcast %cst_88 : f32 to vector<32x256xf32>
    %210 = arith.maximumf %208, %209 : vector<32x256xf32>
    %cst_89 = arith.constant dense<0.000000e+00> : vector<16x256xf32>
    %211 = tpu.matmul %4, %210, %cst_89 {dimension_numbers = #tpu.dot_dimension_numbers<[1], [0], [0], [1], [0, 0, 1, 1], [], []>} : vector<16x32xf32>, vector<32x256xf32>, vector<16x256xf32> -> vector<16x256xf32>
    %212 = vector.broadcast %5 : vector<16x1xf32> to vector<16x256xf32>
    %213 = arith.addf %211, %212 : vector<16x256xf32>
    %cst_90 = arith.constant 0.000000e+00 : f32
    %214 = vector.broadcast %cst_90 : f32 to vector<16x256xf32>
    %215 = arith.maximumf %213, %214 : vector<16x256xf32>
    %216 = vector.broadcast %6 : vector<16x1xf32> to vector<16x256xf32>
    %217 = arith.mulf %215, %216 : vector<16x256xf32>
    %cst_91 = arith.constant dense<0.000000e+00> : vector<256xf32>
    %218 = vector.multi_reduction <add>, %217, %cst_91 [0] : vector<16x256xf32> to vector<256xf32>
    %219 = vector.shape_cast %218 : vector<256xf32> to vector<1x256xf32>
    %220 = vector.broadcast %7 : vector<1x1xf32> to vector<1x256xf32>
    %221 = arith.addf %219, %220 : vector<1x256xf32>
    %c0_92 = arith.constant 0 : index
    %222 = arith.index_cast %198 : i32 to index
    %223 = vector.load %arg10[%c0_92, %222] : memref<1x2048xf32, #tpu.memory_space<vmem>>, vector<1x256xf32>
    tpu.vector_store %arg10[%c0_92, %222], %221 {strides = array<i32>} : memref<1x2048xf32, #tpu.memory_space<vmem>>, vector<1x256xf32>,
    %c8_i32 = arith.constant 8 : i32
    return
  }
  func.func @transform_0(%arg0: i32) -> (i32, i32) {
    %c0_i32 = arith.constant 0 : i32
    %c0_i32_0 = arith.constant 0 : i32
    return %arg0, %c0_i32 : i32, i32
  }
  func.func @transform_1(%arg0: i32) -> (i32, i32) {
    %c0_i32 = arith.constant 0 : i32
    %c0_i32_0 = arith.constant 0 : i32
    %c0_i32_1 = arith.constant 0 : i32
    return %c0_i32, %c0_i32_0 : i32, i32
  }
  func.func @transform_2(%arg0: i32) -> (i32, i32) {
    %c0_i32 = arith.constant 0 : i32
    %c0_i32_0 = arith.constant 0 : i32
    %c0_i32_1 = arith.constant 0 : i32
    return %c0_i32, %c0_i32_0 : i32, i32
  }
  func.func @transform_3(%arg0: i32) -> (i32, i32) {
    %c0_i32 = arith.constant 0 : i32
    %c0_i32_0 = arith.constant 0 : i32
    %c0_i32_1 = arith.constant 0 : i32
    return %c0_i32, %c0_i32_0 : i32, i32
  }
  func.func @transform_4(%arg0: i32) -> (i32, i32) {
    %c0_i32 = arith.constant 0 : i32
    %c0_i32_0 = arith.constant 0 : i32
    %c0_i32_1 = arith.constant 0 : i32
    return %c0_i32, %c0_i32_0 : i32, i32
  }
  func.func @transform_5(%arg0: i32) -> (i32, i32) {
    %c0_i32 = arith.constant 0 : i32
    %c0_i32_0 = arith.constant 0 : i32
    %c0_i32_1 = arith.constant 0 : i32
    return %c0_i32, %c0_i32_0 : i32, i32
  }
  func.func @transform_6(%arg0: i32) -> (i32, i32) {
    %c0_i32 = arith.constant 0 : i32
    %c0_i32_0 = arith.constant 0 : i32
    %c0_i32_1 = arith.constant 0 : i32
    return %c0_i32, %c0_i32_0 : i32, i32
  }
  func.func @transform_7(%arg0: i32) -> (i32, i32) {
    %c0_i32 = arith.constant 0 : i32
    %c0_i32_0 = arith.constant 0 : i32
    %c0_i32_1 = arith.constant 0 : i32
    return %c0_i32, %c0_i32_0 : i32, i32
  }
  func.func @transform_8(%arg0: i32) -> (i32, i32) {
    %c0_i32 = arith.constant 0 : i32
    %c0_i32_0 = arith.constant 0 : i32
    %c0_i32_1 = arith.constant 0 : i32
    return %c0_i32, %c0_i32_0 : i32, i32
  }
  func.func @transform_9(%arg0: i32) -> (i32, i32) {
    %c0_i32 = arith.constant 0 : i32
    %c0_i32_0 = arith.constant 0 : i32
    return %c0_i32, %arg0 : i32, i32
  }
}

</mosaic_0001>

<bundles_post_ra>
// kernel: simple_model_forward.1
= control target key start
LH: loop header
LB: loop body
LE: loop exit
PB: predicated region body
PF: predicated region fallthrough
CT: control target
= control target key end

     0   :  { %s6232_s0 = inlined_call_operand.vmem [shape: f32[4096,9], index: 0, kind: input, shape index: {}]   ;;  %s6233_s1 = inlined_call_operand.vmem [shape: f32[64,9], index: 1, kind: input, shape index: {}]   ;;  %s6234_s2 = inlined_call_operand.vmem [shape: f32[64,1], index: 2, kind: input, shape index: {}]   ;;  %s6235_s3 = inlined_call_operand.vmem [shape: f32[32,64], index: 3, kind: input, shape index: {}]   ;;  %s6236_s4 = inlined_call_operand.vmem [shape: f32[32,1], index: 4, kind: input, shape index: {}]   ;;  %s6237_s5 = inlined_call_operand.vmem [shape: f32[16,32], index: 5, kind: input, shape index: {}]   ;;  %s6238_s6 = inlined_call_operand.vmem [shape: f32[16,1], index: 6, kind: input, shape index: {}]   ;;  %s6239_s7 = inlined_call_operand.vmem [shape: f32[16,1], index: 7, kind: input, shape index: {}]   ;;  %s6240_s8 = inlined_call_operand.<no memory space> [shape: f32[1,1], index: 8, kind: input, shape index: {}]   ;;  %s6241_s9 = inlined_call_operand.hbm [shape: f32[1,4096], index: 9, kind: output, shape index: {}]  }
   0x1   :  { %v14_v0 = vstv %s6240_s8 }
   0x2   :  { %15 = vst [vmem:[#allocation2] sm:$0x1] %v14_v0 }
   0x3   :  { %16 = vsyncpa [#allocation4], 0 }
   0x4   :  { %18 = vsyncpa [#allocation4 + $0x1], 0  ;;  %s4447_s11 = smov 0   ;;  %s4449_s12 = smov 0  }
   0x5   :  { %s4451_s13 = smov 0   ;;  %s4453_s14 = smov 0  }
   0x6 LB: > { %s4468_s8 = sadd.s32 4294967295, %s4391_s14   ;;  %s3536_s15 = sadd.s32 4294967294, %s4391_s14   ;;  %s4391_s14 = sphi %s4453_s14, %s6249_s14   ;;  %s4387_s13 = sphi %s4451_s13, %s6248_s13   ;;  %s4383_s12 = sphi %s4449_s12, %s6247_s12   ;;  %s4379_s11 = sphi %s4447_s11, %s6246_s11  }
   0x7   : > { %s4472_s16 = sadd.s32 1, %s4391_s14   ;;  %s225_s17 = sadd.s32 1, %s4387_s13 }
   0x8   : > { %s222_s18 = ssub.s32 %s4391_s14, %s4472_s16  ;;  %p235_p0 = scmp.ne.s32.totalorder %s4387_s13, %s4383_s12 }
   0x9   : > { %p223_p1 = scmp.eq.s32.totalorder %s222_s18, 0  ;;  %p236_p2 = scmp.eq.s32.totalorder %s4468_s8, 1 }
   0xa   : > { %p241_p3 = scmp.ne.s32.totalorder %s4383_s12, %s4379_s11  ;;  %p242_p4 = scmp.eq.s32.totalorder %s3536_s15, 1 }
   0xb   : > { %s4483_s19 = scalar_select %p223_p1, %s4387_s13, %s225_s17  }
   0xc   : > { %p4485_p5 = por %p236_p2, %p235_p0  ;;  %p4489_p6 = por %p242_p4, %p241_p3 }
   0xd   : > { %p3539_p7 = scmp.ge.s32.totalorder %s4391_s14, 1  ;;  %p293_p8 = scmp.lt.s32.totalorder %s4391_s14, 3 }
   0xf   : > { %p294_p9 = pnand %p3539_p7, %p293_p8 }
  0x10   : > { %s3541_s22 = sshll.u32 (!%p294_p9), %s4468_s8, 8  ;;  %s326_s27 = sand.u32 (!%p294_p9), 1, %s4383_s12  }
  0x11   : > { %297 = sbr.rel (%p294_p9) target bundleno = 2226 (0x8b2), region = 56  ;;  %p330_p10 = scmp.lt.s32.totalorder (!%p294_p9), %s3541_s22, 511 }
  0x12   : > { %s3540_s28 = sshll.u32 (!%p294_p9), %s326_s27, 4  ;;  %s4349_s18 = scalar_lea.hbm (!%p294_p9), %s6241_s9, 32 }
  0x13   : > { %s5037_s29 = scalar_lea.vmem (!%p294_p9), [#allocation3], %s3540_s28 }
  0x14   : > { %s3474_s25 = sshll.u32 (!%p294_p9), %s5037_s29, 4  ;;  %s3475_s25 = int_to_ptr.vmem [resolvable:$true] %s3474_s25 }
  0x16   : > { %s6251_s22 = smov (!%p330_p10, %s3541_s22), 511  ;;  %vm439_vm0 = vcmask 72704   ;;  %v349_v15 = vld [vmem:[%s6234_s2 + $0x28] sm:$0xff]  ;;  %v4393_v18 = vmov 0   ;;  %v351_v21 = vld [vmem:[%s6234_s2 + $0x38] sm:$0xff]  ;;  %v348_v22 = vld [vmem:[%s6234_s2 + $0x20] sm:$0xff] }
  0x17   : > { %s3542_s23 = sshll.u32 %s6251_s22, 3  ;;  %4299 = vset.pattern.permute.xlu1 %v4393_v18  ;;  %4298 = vset.pattern.permute.xlu0 %v4393_v18  ;;  %v350_v27 = vld [vmem:[%s6234_s2 + $0x30] sm:$0xff]  ;;  %v344_v28 = vld [vmem:[%s6234_s2] sm:$0xff]  ;;  %v345_v33 = vld [vmem:[%s6234_s2 + $0x8] sm:$0xff]  ;;  %vm678_vm1 = vcmask 523264   ;;  %vm767_vm2 = vcmask 261120  }
  0x18   : > { %s4499_s26 = scalar_lea.vmem %s6232_s0, %s3542_s23  ;;  %426 = vperm.xlu1 %4299, %v349_v15   ;;  %4300 = vset.pattern.permute.xlu2 %v4393_v18  ;;  %v4586_v40 = vld [vmem:[%s6233_s1] sm:$0xff]  ;;  %v4595_v41 = vld [vmem:[%s6233_s1 + $0x8] sm:$0xff]  ;;  %v347_v42 = vld [vmem:[%s6234_s2 + $0x18] sm:$0xff]  ;;  %vm863_vm3 = vcmask 1040384   ;;  %s4255_s22 = sshll.u32 %s4468_s8, 4 }
  0x19   : > { %v382_v1 = vld [vmem:[%s4499_s26 + $0x78] sm:$0xff]  ;;  %v381_v3 = vld [vmem:[%s4499_s26 + $0x70] sm:$0xff]  ;;  %v380_v5 = vld [vmem:[%s4499_s26 + $0x68] sm:$0xff]  ;;  %436 = vperm.xlu0 %4298, %v351_v21   ;;  %416 = vperm.xlu2 %4300, %v347_v42   ;;  %s3472_s24 = scalar_lea.hbm %s6241_s9, %s4255_s22  ;;  %s3462_s8 = scalar_lea.sflag [#allocation4], %s326_s27 }
  0x1a   : > { %v398_v2 = vld [vmem:[%s4499_s26 + $0xf8] sm:$0xff]  ;;  %3543 = vmatpush.xpose.msk.msra.mxu0 %vm439_vm0, %v382_v1  ;;  %v397_v4 = vld [vmem:[%s4499_s26 + $0xf0] sm:$0xff]  ;;  %v396_v6 = vld [vmem:[%s4499_s26 + $0xe8] sm:$0xff]  ;;  %s3476_s28 = sshll.u32 %s3472_s24, 4  ;;  %s3477_s28 = int_to_ptr.hbm [resolvable:$true] %s3476_s28 }
  0x1b   : > { %3567 = vmatpush.xpose.msk.msra.mxu1 %vm439_vm0, %v398_v2  ;;  %v379_v7 = vld [vmem:[%s4499_s26 + $0x60] sm:$0xff]  ;;  %v378_v9 = vld [vmem:[%s4499_s26 + $0x58] sm:$0xff]  ;;  %v377_v11 = vld [vmem:[%s4499_s26 + $0x50] sm:$0xff]  ;;  %s4343_s30 = sshra.s32 %s3477_s28, 4  ;;  %s4344_s30 = int_to_ptr.hbm [resolvable:$true] %s4343_s30 }
  0x1c   : > { %v395_v8 = vld [vmem:[%s4499_s26 + $0xe0] sm:$0xff]  ;;  %v394_v10 = vld [vmem:[%s4499_s26 + $0xd8] sm:$0xff]  ;;  %v393_v12 = vld [vmem:[%s4499_s26 + $0xd0] sm:$0xff]  ;;  %s4345_s10 = scalar_lea.hbm %s4344_s30, 16  ;;  %p4350_p0 = scmp.lt.s32.totalorder %s4344_s30, %s6241_s9 }
  0x1d   : > { %v376_v13 = vld [vmem:[%s4499_s26 + $0x48] sm:$0xff]  ;;  %v375_v16 = vld [vmem:[%s4499_s26 + $0x40] sm:$0xff]  ;;  %v374_v19 = vld [vmem:[%s4499_s26 + $0x38] sm:$0xff]  ;;  %p4346_p11 = scmp.ne.s32.totalorder %s4344_s30, %s4345_s10  ;;  %p4351_p1 = scmp.lt.s32.totalorder %s4349_s18, %s4345_s10 }
  0x1e   : > { %3544 = vmatpush.xpose.msk.msra.mxu0 %vm439_vm0, %v381_v3  ;;  %v392_v14 = vld [vmem:[%s4499_s26 + $0xc8] sm:$0xff]  ;;  %v391_v17 = vld [vmem:[%s4499_s26 + $0xc0] sm:$0xff]  ;;  %v390_v20 = vld [vmem:[%s4499_s26 + $0xb8] sm:$0xff] }
  0x1f   : > { %3568 = vmatpush.xpose.msk.msra.mxu1 %vm439_vm0, %v397_v4  ;;  %v373_v23 = vld [vmem:[%s4499_s26 + $0x30] sm:$0xff]  ;;  %v372_v25 = vld [vmem:[%s4499_s26 + $0x28] sm:$0xff]  ;;  %v371_v29 = vld [vmem:[%s4499_s26 + $0x20] sm:$0xff]  ;;  %p4347_p12 = pnand %p4346_p11, %p4485_p5  ;;  %p4352_p2 = por %p4351_p1, %p4350_p0 }
  0x20   : > { %v389_v24 = vld [vmem:[%s4499_s26 + $0xb0] sm:$0xff]  ;;  %421 = vperm.xlu1 %4299, %v348_v22   ;;  %v388_v26 = vld [vmem:[%s4499_s26 + $0xa8] sm:$0xff]  ;;  %v387_v30 = vld [vmem:[%s4499_s26 + $0xa0] sm:$0xff] }
  0x21   : > { %431 = vperm.xlu0 %4298, %v350_v27   ;;  %v370_v31 = vld [vmem:[%s4499_s26 + $0x18] sm:$0xff]  ;;  %v369_v34 = vld [vmem:[%s4499_s26 + $0x10] sm:$0xff]  ;;  %v368_v36 = vld [vmem:[%s4499_s26 + $0x8] sm:$0xff]  ;;  %p4348_p13 = pneg %p4347_p12 }
  0x22   : > { %3545 = vmatpush.xpose.msk.msra.mxu0 %vm439_vm0, %v380_v5  ;;  %v386_v32 = vld [vmem:[%s4499_s26 + $0x98] sm:$0xff]  ;;  %v385_v35 = vld [vmem:[%s4499_s26 + $0x90] sm:$0xff]  ;;  %v384_v37 = vld [vmem:[%s4499_s26 + $0x88] sm:$0xff] }
  0x23   : > { %3569 = vmatpush.xpose.msk.msra.mxu1 %vm439_vm0, %v396_v6  ;;  %v367_v38 = vld [vmem:[%s4499_s26] sm:$0xff]  ;;  %v358_v43 = vld [vmem:[%s6236_s4 + $0x10] sm:$0xff]  ;;  %v357_v45 = vld [vmem:[%s6236_s4 + $0x8] sm:$0xff]  ;;  %p4353_p3 = pnand %p4352_p2, %p4348_p13 }
  0x24   : > { %v383_v39 = vld [vmem:[%s4499_s26 + $0x80] sm:$0xff]  ;;  %v4610_v44 = vld [vmem:[%s6233_s1 + $0x10] sm:$0xff]  ;;  %v4628_v48 = vld [vmem:[%s6233_s1 + $0x18] sm:$0xff] }
  0x25   : > { %v346_v46 = vld [vmem:[%s6234_s2 + $0x10] sm:$0xff]  ;;  %v362_v47 = vld [vmem:[%s6238_s6] sm:$0xff]  ;;  %v363_v49 = vld [vmem:[%s6238_s6 + $0x8] sm:$0xff] }
  0x26   : > { %3546 = vmatpush.xpose.msk.msra.mxu0 %vm439_vm0, %v379_v7  ;;  %411 = vperm.xlu2 %4300, %v346_v46   ;;  %v365_v50 = vld [vmem:[%s6239_s7 + $0x8] sm:$0xff]  ;;  %v359_v51 = vld [vmem:[%s6236_s4 + $0x18] sm:$0xff]  ;;  %v4646_v52 = vld [vmem:[%s6233_s1 + $0x20] sm:$0xff] }
  0x27   : > { %3570 = vmatpush.xpose.msk.msra.mxu1 %vm439_vm0, %v395_v8  ;;  %v366_v53 = vld [vmem:[#allocation2] sm:$0x1]  ;;  %v4658_v55 = vld [vmem:[%s6233_s1 + $0x28] sm:$0xff]  ;;  %v4670_v57 = vld [vmem:[%s6233_s1 + $0x30] sm:$0xff] }
  0x28   : > { %401 = vperm.xlu1 %4299, %v344_v28   ;;  %v356_v54 = vld [vmem:[%s6236_s4] sm:$0xff]  ;;  %v4679_v58 = vld [vmem:[%s6233_s1 + $0x38] sm:$0xff] }
  0x29   : > { %406 = vperm.xlu0 %4298, %v345_v33   ;;  %v364_v56 = vld [vmem:[%s6239_s7] sm:$0xff] }
  0x2a   : > { %3547 = vmatpush.xpose.msk.msra.mxu0 %vm439_vm0, %v378_v9 }
  0x2b   : > { %3571 = vmatpush.xpose.msk.msra.mxu1 %vm439_vm0, %v394_v10 }
  0x2e   : > { %3548 = vmatpush.xpose.msk.msra.mxu0 %vm439_vm0, %v377_v11  ;;  %675 = vperm.xlu2 %4300, %v359_v51  }
  0x2f   : > { %3572 = vmatpush.xpose.msk.msra.mxu1 %vm439_vm0, %v393_v12 }
  0x30   : > { %665 = vperm.xlu1 %4299, %v357_v45  }
  0x31   : > { %670 = vperm.xlu0 %4298, %v358_v43  }
  0x32   : > { %3549 = vmatpush.xpose.msk.msra.mxu0 %vm439_vm0, %v376_v13 }
  0x33   : > { %3573 = vmatpush.xpose.msk.msra.mxu1 %vm439_vm0, %v392_v14 }
  0x36   : > { %3550 = vmatpush.xpose.msk.msra.mxu0 %vm439_vm0, %v375_v16  ;;  %660 = vperm.xlu2 %4300, %v356_v54  }
  0x37   : > { %3574 = vmatpush.xpose.msk.msra.mxu1 %vm439_vm0, %v391_v17 }
  0x38   : > { %764 = vperm.xlu1 %4299, %v363_v49  }
  0x39   : > { %759 = vperm.xlu0 %4298, %v362_v47  }
  0x3a   : > { %3551 = vmatpush.xpose.msk.msra.mxu0 %vm439_vm0, %v374_v19 }
  0x3b   : > { %3575 = vmatpush.xpose.msk.msra.mxu1 %vm439_vm0, %v390_v20 }
  0x3e   : > { %3552 = vmatpush.xpose.msk.msra.mxu0 %vm439_vm0, %v373_v23  ;;  %826 = vperm.xlu2 %4300, %v364_v56  }
  0x3f   : > { %3576 = vmatpush.xpose.msk.msra.mxu1 %vm439_vm0, %v389_v24 }
  0x40   : > { %854 = vperm.xlu1 %4299, %v366_v53  }
  0x41   : > { %831 = vperm.xlu0 %4298, %v365_v50  }
  0x42   : > { %3553 = vmatpush.xpose.msk.msra.mxu0 %vm439_vm0, %v372_v25 }
  0x43   : > { %3577 = vmatpush.xpose.msk.msra.mxu1 %vm439_vm0, %v388_v26 }
  0x46   : > { %3554 = vmatpush.xpose.msk.msra.mxu0 %vm439_vm0, %v371_v29 }
  0x47   : > { %3578 = vmatpush.xpose.msk.msra.mxu1 %vm439_vm0, %v387_v30 }
  0x4a   : > { %3555 = vmatpush.xpose.msk.msra.mxu0 %vm439_vm0, %v370_v31 }
  0x4b   : > { %3579 = vmatpush.xpose.msk.msra.mxu1 %vm439_vm0, %v386_v32 }
  0x4e   : > { %3556 = vmatpush.xpose.msk.msra.mxu0 %vm439_vm0, %v369_v34 }
  0x4f   : > { %3580 = vmatpush.xpose.msk.msra.mxu1 %vm439_vm0, %v385_v35 }
  0x52   : > { %3557 = vmatpush.xpose.msk.msra.mxu0 %vm439_vm0, %v368_v36 }
  0x53   : > { %3581 = vmatpush.xpose.msk.msra.mxu1 %vm439_vm0, %v384_v37 }
  0x56   : > { %3558 = vmatpush.xpose.msk.msra.mxu0 %vm439_vm0, %v367_v38 }
  0x57   : > { %3582 = vmatpush.xpose.msk.msra.mxu1 %vm439_vm0, %v383_v39 }
  0x59   : > { %3559 = vmatmul.msk.f32.vlgmr.msra.gmra.mxu0 %vm439_vm0, %v4586_v40 }
  0x5a   : > { %3583 = vmatmul.msk.f32.vlgmr.msra.gmra.mxu1 %vm439_vm0, %v4586_v40 }
  0x61   : > { %3560 = vmatmul.msk.f32.gmra.mxu0 %vm439_vm0, %v4595_v41 }
  0x62   : > { %3584 = vmatmul.msk.f32.gmra.mxu1 %vm439_vm0, %v4595_v41 }
  0x69   : > { %3561 = vmatmul.msk.f32.gmra.mxu0 %vm439_vm0, %v4610_v44 }
  0x6a   : > { %3585 = vmatmul.msk.f32.gmra.mxu1 %vm439_vm0, %v4610_v44 }
  0x71   : > { %3562 = vmatmul.msk.f32.gmra.mxu0 %vm439_vm0, %v4628_v48 }
  0x72   : > { %3586 = vmatmul.msk.f32.gmra.mxu1 %vm439_vm0, %v4628_v48 }
  0x73   : > { %v4689_v11 = vpop.permute.xlu2 %416 }
  0x79   : > { %3563 = vmatmul.msk.f32.gmra.mxu0 %vm439_vm0, %v4646_v52 }
  0x7a   : > { %3587 = vmatmul.msk.f32.gmra.mxu1 %vm439_vm0, %v4646_v52 }
  0x80   : > { %v4703_v28 = vpop.permute.xlu2 %411 }
  0x81   : > { %3564 = vmatmul.msk.f32.gmra.mxu0 %vm439_vm0, %v4658_v55 }
  0x82   : > { %3588 = vmatmul.msk.f32.gmra.mxu1 %vm439_vm0, %v4658_v55 }
  0x89   : > { %3565 = vmatmul.msk.f32.gmra.mxu0 %vm439_vm0, %v4670_v57 }
  0x8a   : > { %3589 = vmatmul.msk.f32.gmra.mxu1 %vm439_vm0, %v4670_v57  ;;  %v4687_v8 = vpop.permute.xlu1 %426 }
  0x8b   : > { %v4685_v7 = vpop.permute.xlu0 %436 }
  0x91   : > { %3566 = vmatmul.msk.f32.gmra.mxu0 %vm439_vm0, %v4679_v58 }
  0x92   : > { %3590 = vmatmul.msk.f32.gmra.mxu1 %vm439_vm0, %v4679_v58  ;;  %v4693_v13 = vpop.permute.xlu1 %421 }
  0x93   : > { %v4691_v12 = vpop.permute.xlu0 %431 }
  0x9a   : > { %v4711_v38 = vpop.permute.xlu1 %401 }
  0x9b   : > { %v4707_v33 = vpop.permute.xlu0 %406 }
  0xd6   : > { %v577_v59 = vpop.f32.mrf.mxu0 }
  0xd7   : > { %v618_v60 = vpop.f32.mrf.mxu1  ;;  %v578_v46 = vadd.f32 %v577_v59, %v4711_v38  ;;  %v4729_v59 = vld [vmem:[%s6235_s3 + $0x8] sm:$0xff] }
  0xd8   : > { %v619_v47 = vadd.f32 %v618_v60, %v4711_v38  ;;  %v4738_v60 = vld [vmem:[%s6235_s3 + $0x10] sm:$0xff] }
  0xd9   : > { %v642_v54 = vmax.f32 %v578_v46, 0.0  ;;  %v3615_v46 = vld [vmem:[%s4499_s26 + $0x160] sm:$0xff] }
  0xda   : > { %v643_v56 = vmax.f32 %v619_v47, 0.0  ;;  %v3631_v47 = vld [vmem:[%s4499_s26 + $0x1e0] sm:$0xff] }
  0xde   : > { %v580_v61 = vpop.f32.mrf.mxu0 }
  0xdf   : > { %v621_v62 = vpop.f32.mrf.mxu1  ;;  %v581_v39 = vadd.f32 %v580_v61, %v4707_v33  ;;  %v4720_v61 = vld [vmem:[%s6235_s3] sm:$0xff] }
  0xe0   : > { %v622_v42 = vadd.f32 %v621_v62, %v4707_v33  ;;  %v4747_v62 = vld [vmem:[%s6235_s3 + $0x18] sm:$0xff] }
  0xe1   : > { %v644_v51 = vmax.f32 %v581_v39, 0.0  ;;  %v3633_v39 = vld [vmem:[%s4499_s26 + $0x1f0] sm:$0xff] }
  0xe2   : > { %v645_v53 = vmax.f32 %v622_v42, 0.0  ;;  %v361_v42 = vld [vmem:[%s6237_s5 + $0x8] sm:$0xff] }
  0xe6   : > { %v583_v63 = vpop.f32.mrf.mxu0 }
  0xe7   : > { %v624_v0 = vpop.f32.mrf.mxu1  ;;  %v584_v34 = vadd.f32 %v583_v63, %v4703_v28 }
  0xe8   : > { %v625_v35 = vadd.f32 %v624_v0, %v4703_v28 }
  0xe9   : > { %v646_v49 = vmax.f32 %v584_v34, 0.0  ;;  %v4772_v34 = vld [vmem:[%s6237_s5] sm:$0xff] }
  0xea   : > { %v647_v50 = vmax.f32 %v625_v35, 0.0  ;;  %v3618_v35 = vld [vmem:[%s4499_s26 + $0x178] sm:$0xff] }
  0xee   : > { %v586_v1 = vpop.f32.mrf.mxu0 }
  0xef   : > { %v627_v2 = vpop.f32.mrf.mxu1  ;;  %v587_v29 = vadd.f32 %v586_v1, %v4689_v11 }
  0xf0   : > { %v628_v30 = vadd.f32 %v627_v2, %v4689_v11 }
  0xf1   : > { %v648_v43 = vmax.f32 %v587_v29, 0.0 }
  0xf2   : > { %v649_v45 = vmax.f32 %v628_v30, 0.0 }
  0xf6   : > { %v589_v3 = vpop.f32.mrf.mxu0 }
  0xf7   : > { %v630_v4 = vpop.f32.mrf.mxu1  ;;  %v590_v24 = vadd.f32 %v589_v3, %v4693_v13 }
  0xf8   : > { %v631_v25 = vadd.f32 %v630_v4, %v4693_v13 }
  0xf9   : > { %v650_v36 = vmax.f32 %v590_v24, 0.0 }
  0xfa   : > { %v651_v37 = vmax.f32 %v631_v25, 0.0 }
  0xfe   : > { %v592_v5 = vpop.f32.mrf.mxu0 }
  0xff   : > { %v633_v6 = vpop.f32.mrf.mxu1  ;;  %v593_v20 = vadd.f32 %v592_v5, %v4687_v8  ;;  %v4753_v5 = vpop.permute.xlu2 %675 }
 0x100   : > { %v634_v21 = vadd.f32 %v633_v6, %v4687_v8  ;;  %v4755_v6 = vpop.permute.xlu0 %670 }
 0x101   : > { %v652_v31 = vmax.f32 %v593_v20, 0.0 }
 0x102   : > { %v653_v32 = vmax.f32 %v634_v21, 0.0 }
 0x106   : > { %v595_v9 = vpop.f32.mrf.mxu0 }
 0x107   : > { %v636_v10 = vpop.f32.mrf.mxu1  ;;  %v596_v16 = vadd.f32 %v595_v9, %v4691_v12 }
 0x108   : > { %v637_v17 = vadd.f32 %v636_v10, %v4691_v12 }
 0x109   : > { %v654_v26 = vmax.f32 %v596_v16, 0.0 }
 0x10a   : > { %v655_v27 = vmax.f32 %v637_v17, 0.0 }
 0x10e   : > { %v598_v14 = vpop.f32.mrf.mxu0 }
 0x10f   : > { %v639_v15 = vpop.f32.mrf.mxu1  ;;  %v599_v18 = vadd.f32 %v598_v14, %v4685_v7 }
 0x110   : > { %v640_v19 = vadd.f32 %v639_v15, %v4685_v7 }
 0x111   : > { %v656_v22 = vmax.f32 %v599_v18, 0.0  ;;  %v4761_v18 = vpop.permute.xlu1 %665 }
 0x112   : > { %v657_v23 = vmax.f32 %v640_v19, 0.0 }
 0x113   : > { %699 = vmatpush.msra.mxu2 %v656_v22 }
 0x114   : > { %728 = vmatpush.msra.mxu3 %v657_v23  ;;  %v4765_v23 = vpop.permute.xlu2 %660 }
 0x115   : > { %700 = vmatpush.msra.mxu2 %v654_v26 }
 0x116   : > { %729 = vmatpush.msra.mxu3 %v655_v27 }
 0x117   : > { %701 = vmatpush.msra.mxu2 %v652_v31 }
 0x118   : > { %730 = vmatpush.msra.mxu3 %v653_v32 }
 0x119   : > { %702 = vmatpush.msra.mxu2 %v650_v36  ;;  %v3634_v36 = vld [vmem:[%s4499_s26 + $0x1f8] sm:$0xff] }
 0x11a   : > { %731 = vmatpush.msra.mxu3 %v651_v37  ;;  %v3617_v37 = vld [vmem:[%s4499_s26 + $0x170] sm:$0xff] }
 0x11b   : > { %703 = vmatpush.msra.mxu2 %v648_v43  ;;  %v3616_v43 = vld [vmem:[%s4499_s26 + $0x168] sm:$0xff] }
 0x11c   : > { %732 = vmatpush.msra.mxu3 %v649_v45  ;;  %v3632_v45 = vld [vmem:[%s4499_s26 + $0x1e8] sm:$0xff] }
 0x11d   : > { %704 = vmatpush.msra.mxu2 %v646_v49  ;;  %v3614_v49 = vld [vmem:[%s4499_s26 + $0x158] sm:$0xff] }
 0x11e   : > { %733 = vmatpush.msra.mxu3 %v647_v50  ;;  %v3630_v50 = vld [vmem:[%s4499_s26 + $0x1d8] sm:$0xff] }
 0x11f   : > { %705 = vmatpush.msra.mxu2 %v644_v51  ;;  %v3613_v51 = vld [vmem:[%s4499_s26 + $0x150] sm:$0xff] }
 0x120   : > { %734 = vmatpush.msra.mxu3 %v645_v53  ;;  %v3629_v53 = vld [vmem:[%s4499_s26 + $0x1d0] sm:$0xff] }
 0x121   : > { %706 = vmatpush.msra.mxu2 %v642_v54  ;;  %v3612_v54 = vld [vmem:[%s4499_s26 + $0x148] sm:$0xff] }
 0x122   : > { %735 = vmatpush.msra.mxu3 %v643_v56  ;;  %3591 = vmatmul.msk.f32.vlgmr.msra.gmra.mxu2 %vm678_vm1, %v4720_v61  ;;  %v3628_v56 = vld [vmem:[%s4499_s26 + $0x1c8] sm:$0xff] }
 0x123   : > { %3595 = vmatmul.msk.f32.vlgmr.msra.gmra.mxu3 %vm678_vm1, %v4720_v61 }
 0x12a   : > { %3592 = vmatmul.msk.f32.gmra.mxu2 %vm678_vm1, %v4729_v59 }
 0x12b   : > { %3596 = vmatmul.msk.f32.gmra.mxu3 %vm678_vm1, %v4729_v59 }
 0x132   : > { %3593 = vmatmul.msk.f32.gmra.mxu2 %vm678_vm1, %v4738_v60 }
 0x133   : > { %3597 = vmatmul.msk.f32.gmra.mxu3 %vm678_vm1, %v4738_v60 }
 0x13a   : > { %3594 = vmatmul.msk.f32.gmra.mxu2 %vm678_vm1, %v4747_v62 }
 0x13b   : > { %3598 = vmatmul.msk.f32.gmra.mxu3 %vm678_vm1, %v4747_v62 }
 0x1a5   : > { %v708_v63 = vpop.f32.mrf.mxu2 }
 0x1a6   : > { %v737_v0 = vpop.f32.mrf.mxu3  ;;  %v709_v24 = vadd.f32 %v708_v63, %v4765_v23  ;;  %v3611_v63 = vld [vmem:[%s4499_s26 + $0x140] sm:$0xff] }
 0x1a7   : > { %v738_v25 = vadd.f32 %v737_v0, %v4765_v23  ;;  %v3627_v0 = vld [vmem:[%s4499_s26 + $0x1c0] sm:$0xff] }
 0x1a8   : > { %v749_v31 = vmax.f32 %v709_v24, 0.0  ;;  %v3603_v24 = vld [vmem:[%s4499_s26 + $0x100] sm:$0xff] }
 0x1a9   : > { %v750_v32 = vmax.f32 %v738_v25, 0.0  ;;  %v3619_v25 = vld [vmem:[%s4499_s26 + $0x180] sm:$0xff] }
 0x1ad   : > { %v711_v1 = vpop.f32.mrf.mxu2 }
 0x1ae   : > { %v740_v2 = vpop.f32.mrf.mxu3  ;;  %v712_v19 = vadd.f32 %v711_v1, %v4761_v18  ;;  %v3610_v1 = vld [vmem:[%s4499_s26 + $0x138] sm:$0xff] }
 0x1af   : > { %v741_v20 = vadd.f32 %v740_v2, %v4761_v18  ;;  %v3626_v2 = vld [vmem:[%s4499_s26 + $0x1b8] sm:$0xff] }
 0x1b0   : > { %v751_v29 = vmax.f32 %v712_v19, 0.0  ;;  %v3605_v19 = vld [vmem:[%s4499_s26 + $0x110] sm:$0xff] }
 0x1b1   : > { %v752_v30 = vmax.f32 %v741_v20, 0.0  ;;  %v3621_v20 = vld [vmem:[%s4499_s26 + $0x190] sm:$0xff] }
 0x1b5   : > { %v714_v3 = vpop.f32.mrf.mxu2 }
 0x1b6   : > { %v743_v4 = vpop.f32.mrf.mxu3  ;;  %v715_v14 = vadd.f32 %v714_v3, %v4755_v6  ;;  %v3609_v3 = vld [vmem:[%s4499_s26 + $0x130] sm:$0xff] }
 0x1b7   : > { %v744_v15 = vadd.f32 %v743_v4, %v4755_v6  ;;  %v3625_v4 = vld [vmem:[%s4499_s26 + $0x1b0] sm:$0xff] }
 0x1b8   : > { %v753_v26 = vmax.f32 %v715_v14, 0.0  ;;  %v3607_v14 = vld [vmem:[%s4499_s26 + $0x120] sm:$0xff] }
 0x1b9   : > { %v754_v27 = vmax.f32 %v744_v15, 0.0  ;;  %v3623_v15 = vld [vmem:[%s4499_s26 + $0x1a0] sm:$0xff] }
 0x1bd   : > { %v717_v9 = vpop.f32.mrf.mxu2 }
 0x1be   : > { %v746_v10 = vpop.f32.mrf.mxu3  ;;  %v718_v16 = vadd.f32 %v717_v9, %v4753_v5  ;;  %v3608_v9 = vld [vmem:[%s4499_s26 + $0x128] sm:$0xff] }
 0x1bf   : > { %v747_v17 = vadd.f32 %v746_v10, %v4753_v5  ;;  %v3624_v10 = vld [vmem:[%s4499_s26 + $0x1a8] sm:$0xff] }
 0x1c0   : > { %v755_v21 = vmax.f32 %v718_v16, 0.0  ;;  %v3606_v16 = vld [vmem:[%s4499_s26 + $0x118] sm:$0xff] }
 0x1c1   : > { %v756_v22 = vmax.f32 %v747_v17, 0.0  ;;  %v3622_v17 = vld [vmem:[%s4499_s26 + $0x198] sm:$0xff] }
 0x1c2   : > { %786 = vmatpush.msrb.mxu2 %v755_v21  ;;  %v3604_v21 = vld [vmem:[%s4499_s26 + $0x108] sm:$0xff] }
 0x1c3   : > { %809 = vmatpush.msrb.mxu3 %v756_v22  ;;  %v3620_v22 = vld [vmem:[%s4499_s26 + $0x188] sm:$0xff] }
 0x1c4   : > { %787 = vmatpush.msrb.mxu2 %v753_v26  ;;  %v3711_v26 = vld [vmem:[%s4499_s26 + $0x278] sm:$0xff] }
 0x1c5   : > { %810 = vmatpush.msrb.mxu3 %v754_v27  ;;  %v3727_v27 = vld [vmem:[%s4499_s26 + $0x2f8] sm:$0xff] }
 0x1c6   : > { %788 = vmatpush.msrb.mxu2 %v751_v29  ;;  %v3710_v29 = vld [vmem:[%s4499_s26 + $0x270] sm:$0xff] }
 0x1c7   : > { %811 = vmatpush.msrb.mxu3 %v752_v30  ;;  %v3726_v30 = vld [vmem:[%s4499_s26 + $0x2f0] sm:$0xff] }
 0x1c8   : > { %789 = vmatpush.msrb.mxu2 %v749_v31  ;;  %v3709_v31 = vld [vmem:[%s4499_s26 + $0x268] sm:$0xff] }
 0x1c9   : > { %812 = vmatpush.msrb.mxu3 %v750_v32  ;;  %3599 = vmatmul.msk.f32.vlgmr.msrb.gmra.mxu2 %vm767_vm2, %v4772_v34  ;;  %v3725_v32 = vld [vmem:[%s4499_s26 + $0x2e8] sm:$0xff] }
 0x1ca   : > { %3601 = vmatmul.msk.f32.vlgmr.msrb.gmra.mxu3 %vm767_vm2, %v4772_v34  ;;  %3635 = vmatpush.xpose.msk.msra.mxu2 %vm439_vm0, %v3618_v35  ;;  %v3708_v35 = vld [vmem:[%s4499_s26 + $0x260] sm:$0xff] }
 0x1cb   : > { %3659 = vmatpush.xpose.msk.msra.mxu3 %vm439_vm0, %v3634_v36  ;;  %v3724_v36 = vld [vmem:[%s4499_s26 + $0x2e0] sm:$0xff] }
 0x1ce   : > { %3636 = vmatpush.xpose.msk.msra.mxu2 %vm439_vm0, %v3617_v37  ;;  %v3707_v37 = vld [vmem:[%s4499_s26 + $0x258] sm:$0xff] }
 0x1cf   : > { %3660 = vmatpush.xpose.msk.msra.mxu3 %vm439_vm0, %v3633_v39  ;;  %v3723_v39 = vld [vmem:[%s4499_s26 + $0x2d8] sm:$0xff] }
 0x1d1   : > { %3600 = vmatmul.msk.f32.gmra.mxu2 %vm767_vm2, %v361_v42 }
 0x1d2   : > { %3602 = vmatmul.msk.f32.gmra.mxu3 %vm767_vm2, %v361_v42  ;;  %3637 = vmatpush.xpose.msk.msra.mxu2 %vm439_vm0, %v3616_v43  ;;  %v3706_v42 = vld [vmem:[%s4499_s26 + $0x250] sm:$0xff] }
 0x1d3   : > { %3661 = vmatpush.xpose.msk.msra.mxu3 %vm439_vm0, %v3632_v45  ;;  %v3722_v43 = vld [vmem:[%s4499_s26 + $0x2d0] sm:$0xff]  ;;  %v3705_v45 = vld [vmem:[%s4499_s26 + $0x248] sm:$0xff] }
 0x1d6   : > { %3638 = vmatpush.xpose.msk.msra.mxu2 %vm439_vm0, %v3615_v46  ;;  %v3721_v46 = vld [vmem:[%s4499_s26 + $0x2c8] sm:$0xff] }
 0x1d7   : > { %3662 = vmatpush.xpose.msk.msra.mxu3 %vm439_vm0, %v3631_v47  ;;  %v3704_v47 = vld [vmem:[%s4499_s26 + $0x240] sm:$0xff] }
 0x1da   : > { %3639 = vmatpush.xpose.msk.msra.mxu2 %vm439_vm0, %v3614_v49  ;;  %v3720_v49 = vld [vmem:[%s4499_s26 + $0x2c0] sm:$0xff] }
 0x1db   : > { %3663 = vmatpush.xpose.msk.msra.mxu3 %vm439_vm0, %v3630_v50  ;;  %v3703_v50 = vld [vmem:[%s4499_s26 + $0x238] sm:$0xff] }
 0x1de   : > { %3640 = vmatpush.xpose.msk.msra.mxu2 %vm439_vm0, %v3613_v51  ;;  %v3719_v51 = vld [vmem:[%s4499_s26 + $0x2b8] sm:$0xff] }
 0x1df   : > { %3664 = vmatpush.xpose.msk.msra.mxu3 %vm439_vm0, %v3629_v53  ;;  %v3702_v53 = vld [vmem:[%s4499_s26 + $0x230] sm:$0xff] }
 0x1e2   : > { %3641 = vmatpush.xpose.msk.msra.mxu2 %vm439_vm0, %v3612_v54  ;;  %v3718_v54 = vld [vmem:[%s4499_s26 + $0x2b0] sm:$0xff] }
 0x1e3   : > { %3665 = vmatpush.xpose.msk.msra.mxu3 %vm439_vm0, %v3628_v56  ;;  %v3701_v56 = vld [vmem:[%s4499_s26 + $0x228] sm:$0xff] }
 0x1e6   : > { %3642 = vmatpush.xpose.msk.msra.mxu2 %vm439_vm0, %v3611_v63  ;;  %v3717_v63 = vld [vmem:[%s4499_s26 + $0x2a8] sm:$0xff] }
 0x1e7   : > { %3666 = vmatpush.xpose.msk.msra.mxu3 %vm439_vm0, %v3627_v0  ;;  %v3700_v0 = vld [vmem:[%s4499_s26 + $0x220] sm:$0xff] }
 0x1ea   : > { %3643 = vmatpush.xpose.msk.msra.mxu2 %vm439_vm0, %v3610_v1  ;;  %v3716_v1 = vld [vmem:[%s4499_s26 + $0x2a0] sm:$0xff] }
 0x1eb   : > { %3667 = vmatpush.xpose.msk.msra.mxu3 %vm439_vm0, %v3626_v2  ;;  %v3699_v2 = vld [vmem:[%s4499_s26 + $0x218] sm:$0xff] }
 0x1ee   : > { %3644 = vmatpush.xpose.msk.msra.mxu2 %vm439_vm0, %v3609_v3  ;;  %v3715_v3 = vld [vmem:[%s4499_s26 + $0x298] sm:$0xff] }
 0x1ef   : > { %3668 = vmatpush.xpose.msk.msra.mxu3 %vm439_vm0, %v3625_v4  ;;  %v3698_v4 = vld [vmem:[%s4499_s26 + $0x210] sm:$0xff] }
 0x1f2   : > { %3645 = vmatpush.xpose.msk.msra.mxu2 %vm439_vm0, %v3608_v9  ;;  %v3714_v9 = vld [vmem:[%s4499_s26 + $0x290] sm:$0xff] }
 0x1f3   : > { %3669 = vmatpush.xpose.msk.msra.mxu3 %vm439_vm0, %v3624_v10  ;;  %v3697_v10 = vld [vmem:[%s4499_s26 + $0x208] sm:$0xff] }
 0x1f6   : > { %3646 = vmatpush.xpose.msk.msra.mxu2 %vm439_vm0, %v3607_v14  ;;  %v3713_v14 = vld [vmem:[%s4499_s26 + $0x288] sm:$0xff] }
 0x1f7   : > { %3670 = vmatpush.xpose.msk.msra.mxu3 %vm439_vm0, %v3623_v15  ;;  %v3696_v15 = vld [vmem:[%s4499_s26 + $0x200] sm:$0xff] }
 0x1fa   : > { %3647 = vmatpush.xpose.msk.msra.mxu2 %vm439_vm0, %v3606_v16  ;;  %v3712_v16 = vld [vmem:[%s4499_s26 + $0x280] sm:$0xff] }
 0x1fb   : > { %3671 = vmatpush.xpose.msk.msra.mxu3 %vm439_vm0, %v3622_v17  ;;  %v3804_v17 = vld [vmem:[%s4499_s26 + $0x378] sm:$0xff] }
 0x1fe   : > { %3648 = vmatpush.xpose.msk.msra.mxu2 %vm439_vm0, %v3605_v19  ;;  %v3820_v19 = vld [vmem:[%s4499_s26 + $0x3f8] sm:$0xff] }
 0x1ff   : > { %3672 = vmatpush.xpose.msk.msra.mxu3 %vm439_vm0, %v3621_v20  ;;  %v3803_v20 = vld [vmem:[%s4499_s26 + $0x370] sm:$0xff] }
 0x202   : > { %3649 = vmatpush.xpose.msk.msra.mxu2 %vm439_vm0, %v3604_v21  ;;  %v3819_v21 = vld [vmem:[%s4499_s26 + $0x3f0] sm:$0xff] }
 0x203   : > { %3673 = vmatpush.xpose.msk.msra.mxu3 %vm439_vm0, %v3620_v22  ;;  %v3802_v22 = vld [vmem:[%s4499_s26 + $0x368] sm:$0xff] }
 0x206   : > { %3650 = vmatpush.xpose.msk.msra.mxu2 %vm439_vm0, %v3603_v24  ;;  %v3818_v24 = vld [vmem:[%s4499_s26 + $0x3e8] sm:$0xff] }
 0x207   : > { %3674 = vmatpush.xpose.msk.msra.mxu3 %vm439_vm0, %v3619_v25 }
 0x209   : > { %3651 = vmatmul.msk.f32.vlgmr.msra.gmra.mxu2 %vm439_vm0, %v4586_v40 }
 0x20a   : > { %3728 = vmatpush.xpose.msk.msrb.mxu2 %vm439_vm0, %v3711_v26  ;;  %3675 = vmatmul.msk.f32.vlgmr.msra.gmra.mxu3 %vm439_vm0, %v4586_v40 }
 0x20b   : > { %3752 = vmatpush.xpose.msk.msrb.mxu3 %vm439_vm0, %v3727_v27  ;;  %v3801_v27 = vld [vmem:[%s4499_s26 + $0x360] sm:$0xff] }
 0x20e   : > { %3729 = vmatpush.xpose.msk.msrb.mxu2 %vm439_vm0, %v3710_v29  ;;  %v3817_v29 = vld [vmem:[%s4499_s26 + $0x3e0] sm:$0xff] }
 0x20f   : > { %3753 = vmatpush.xpose.msk.msrb.mxu3 %vm439_vm0, %v3726_v30  ;;  %v4961_v30 = vpop.permute.xlu0 %759 }
 0x211   : > { %3652 = vmatmul.msk.f32.gmra.mxu2 %vm439_vm0, %v4595_v41 }
 0x212   : > { %3730 = vmatpush.xpose.msk.msrb.mxu2 %vm439_vm0, %v3709_v31  ;;  %3676 = vmatmul.msk.f32.gmra.mxu3 %vm439_vm0, %v4595_v41 }
 0x213   : > { %3754 = vmatpush.xpose.msk.msrb.mxu3 %vm439_vm0, %v3725_v32 }
 0x216   : > { %3731 = vmatpush.xpose.msk.msrb.mxu2 %vm439_vm0, %v3708_v35  ;;  %v3800_v35 = vld [vmem:[%s4499_s26 + $0x358] sm:$0xff] }
 0x217   : > { %3755 = vmatpush.xpose.msk.msrb.mxu3 %vm439_vm0, %v3724_v36  ;;  %v3816_v36 = vld [vmem:[%s4499_s26 + $0x3d8] sm:$0xff] }
 0x219   : > { %3653 = vmatmul.msk.f32.gmra.mxu2 %vm439_vm0, %v4610_v44 }
 0x21a   : > { %3732 = vmatpush.xpose.msk.msrb.mxu2 %vm439_vm0, %v3707_v37  ;;  %3677 = vmatmul.msk.f32.gmra.mxu3 %vm439_vm0, %v4610_v44  ;;  %v4973_v37 = vpop.permute.xlu1 %764 }
 0x21b   : > { %3756 = vmatpush.xpose.msk.msrb.mxu3 %vm439_vm0, %v3723_v39 }
 0x21e   : > { %3733 = vmatpush.xpose.msk.msrb.mxu2 %vm439_vm0, %v3706_v42 }
 0x21f   : > { %3757 = vmatpush.xpose.msk.msrb.mxu3 %vm439_vm0, %v3722_v43 }
 0x221   : > { %3654 = vmatmul.msk.f32.gmra.mxu2 %vm439_vm0, %v4628_v48 }
 0x222   : > { %3734 = vmatpush.xpose.msk.msrb.mxu2 %vm439_vm0, %v3705_v45  ;;  %3678 = vmatmul.msk.f32.gmra.mxu3 %vm439_vm0, %v4628_v48 }
 0x223   : > { %3758 = vmatpush.xpose.msk.msrb.mxu3 %vm439_vm0, %v3721_v46 }
 0x226   : > { %3735 = vmatpush.xpose.msk.msrb.mxu2 %vm439_vm0, %v3704_v47 }
 0x227   : > { %3759 = vmatpush.xpose.msk.msrb.mxu3 %vm439_vm0, %v3720_v49  ;;  %v3799_v49 = vld [vmem:[%s4499_s26 + $0x350] sm:$0xff] }
 0x229   : > { %3655 = vmatmul.msk.f32.gmra.mxu2 %vm439_vm0, %v4646_v52 }
 0x22a   : > { %3736 = vmatpush.xpose.msk.msrb.mxu2 %vm439_vm0, %v3703_v50  ;;  %3679 = vmatmul.msk.f32.gmra.mxu3 %vm439_vm0, %v4646_v52  ;;  %v3815_v50 = vld [vmem:[%s4499_s26 + $0x3d0] sm:$0xff] }
 0x22b   : > { %3760 = vmatpush.xpose.msk.msrb.mxu3 %vm439_vm0, %v3719_v51  ;;  %v4981_v51 = vpop.permute.xlu2 %826 }
 0x22e   : > { %3737 = vmatpush.xpose.msk.msrb.mxu2 %vm439_vm0, %v3702_v53 }
 0x22f   : > { %3761 = vmatpush.xpose.msk.msrb.mxu3 %vm439_vm0, %v3718_v54 }
 0x231   : > { %3656 = vmatmul.msk.f32.gmra.mxu2 %vm439_vm0, %v4658_v55 }
 0x232   : > { %3738 = vmatpush.xpose.msk.msrb.mxu2 %vm439_vm0, %v3701_v56  ;;  %3680 = vmatmul.msk.f32.gmra.mxu3 %vm439_vm0, %v4658_v55  ;;  %v4983_v56 = vpop.permute.xlu0 %831 }
 0x233   : > { %3762 = vmatpush.xpose.msk.msrb.mxu3 %vm439_vm0, %v3717_v63 }
 0x236   : > { %3739 = vmatpush.xpose.msk.msrb.mxu2 %vm439_vm0, %v3700_v0 }
 0x237   : > { %3763 = vmatpush.xpose.msk.msrb.mxu3 %vm439_vm0, %v3716_v1 }
 0x239   : > { %3657 = vmatmul.msk.f32.gmra.mxu2 %vm439_vm0, %v4670_v57 }
 0x23a   : > { %3740 = vmatpush.xpose.msk.msrb.mxu2 %vm439_vm0, %v3699_v2  ;;  %3681 = vmatmul.msk.f32.gmra.mxu3 %vm439_vm0, %v4670_v57 }
 0x23b   : > { %3764 = vmatpush.xpose.msk.msrb.mxu3 %vm439_vm0, %v3715_v3  ;;  %v3798_v3 = vld [vmem:[%s4499_s26 + $0x348] sm:$0xff] }
 0x23e   : > { %3741 = vmatpush.xpose.msk.msrb.mxu2 %vm439_vm0, %v3698_v4  ;;  %v3814_v4 = vld [vmem:[%s4499_s26 + $0x3c8] sm:$0xff] }
 0x23f   : > { %3765 = vmatpush.xpose.msk.msrb.mxu3 %vm439_vm0, %v3714_v9 }
 0x241   : > { %3658 = vmatmul.msk.f32.gmra.mxu2 %vm439_vm0, %v4679_v58 }
 0x242   : > { %3742 = vmatpush.xpose.msk.msrb.mxu2 %vm439_vm0, %v3697_v10  ;;  %3682 = vmatmul.msk.f32.gmra.mxu3 %vm439_vm0, %v4679_v58 }
 0x243   : > { %3766 = vmatpush.xpose.msk.msrb.mxu3 %vm439_vm0, %v3713_v14 }
 0x246   : > { %3743 = vmatpush.xpose.msk.msrb.mxu2 %vm439_vm0, %v3696_v15 }
 0x247   : > { %3767 = vmatpush.xpose.msk.msrb.mxu3 %vm439_vm0, %v3712_v16  ;;  %v3797_v16 = vld [vmem:[%s4499_s26 + $0x340] sm:$0xff] }
 0x249   : > { %3744 = vmatmul.msk.f32.vlgmr.msrb.gmra.mxu2 %vm439_vm0, %v4586_v40 }
 0x24a   : > { %3821 = vmatpush.xpose.msk.msra.mxu2 %vm439_vm0, %v3804_v17  ;;  %3768 = vmatmul.msk.f32.vlgmr.msrb.gmra.mxu3 %vm439_vm0, %v4586_v40  ;;  %v3813_v17 = vld [vmem:[%s4499_s26 + $0x3c0] sm:$0xff] }
 0x24b   : > { %3845 = vmatpush.xpose.msk.msra.mxu3 %vm439_vm0, %v3820_v19 }
 0x24c   : > { %v791_v25 = vpop.f32.mrf.mxu2 }
 0x24d   : > { %v814_v26 = vpop.f32.mrf.mxu3  ;;  %v792_v31 = vadd.f32 %v791_v25, %v4961_v30  ;;  %v3812_v25 = vld [vmem:[%s4499_s26 + $0x3b8] sm:$0xff] }
 0x24e   : > { %3822 = vmatpush.xpose.msk.msra.mxu2 %vm439_vm0, %v3803_v20  ;;  %v815_v32 = vadd.f32 %v814_v26, %v4961_v30 }
 0x24f   : > { %3846 = vmatpush.xpose.msk.msra.mxu3 %vm439_vm0, %v3819_v21  ;;  %v820_v39 = vmax.f32 %v792_v31, 0.0 }
 0x250   : > { %v821_v45 = vmax.f32 %v815_v32, 0.0 }
 0x251   : > { %3745 = vmatmul.msk.f32.gmra.mxu2 %vm439_vm0, %v4595_v41  ;;  %v834_v63 = vmul.f32 %v4981_v51, %v820_v39 }
 0x252   : > { %3823 = vmatpush.xpose.msk.msra.mxu2 %vm439_vm0, %v3802_v22  ;;  %3769 = vmatmul.msk.f32.gmra.mxu3 %vm439_vm0, %v4595_v41  ;;  %v835_v0 = vmul.f32 %v4981_v51, %v821_v45  ;;  %v866_v45 = vlaneseq }
 0x253   : > { %3847 = vmatpush.xpose.msk.msra.mxu3 %vm439_vm0, %v3818_v24  ;;  %v3796_v24 = vld [vmem:[%s4499_s26 + $0x338] sm:$0xff] }
 0x254   : > { %v794_v42 = vpop.f32.mrf.mxu2  ;;  %vm5028_vm4 = vcmp.lt.s32.totalorder %v866_v45, 256  ;;  %v3907_v45 = vld [vmem:[%s4499_s26 + $0x4c8] sm:$0xff] }
 0x255   : > { %v817_v43 = vpop.f32.mrf.mxu3  ;;  %v795_v46 = vadd.f32 %v794_v42, %v4973_v37 }
 0x256   : > { %3824 = vmatpush.xpose.msk.msra.mxu2 %vm439_vm0, %v3801_v27  ;;  %v818_v47 = vadd.f32 %v817_v43, %v4973_v37 }
 0x257   : > { %3848 = vmatpush.xpose.msk.msra.mxu3 %vm439_vm0, %v3817_v29  ;;  %v822_v53 = vmax.f32 %v795_v46, 0.0  ;;  %v855_v29 = vpop.permute.xlu1 %854 }
 0x258   : > { %v823_v54 = vmax.f32 %v818_v47, 0.0  ;;  %v5014_v39 = vperm.slane %v855_v29, 0  ;;  %v3794_v47 = vld [vmem:[%s4499_s26 + $0x328] sm:$0xff] }
 0x259   : > { %v836_v1 = vmul.f32 %v4983_v56, %v822_v53  ;;  %3746 = vmatmul.msk.f32.gmra.mxu2 %vm439_vm0, %v4610_v44 }
 0x25a   : > { %3825 = vmatpush.xpose.msk.msra.mxu2 %vm439_vm0, %v3800_v35  ;;  %v837_v2 = vmul.f32 %v4983_v56, %v823_v54  ;;  %3770 = vmatmul.msk.f32.gmra.mxu3 %vm439_vm0, %v4610_v44  ;;  %v3795_v35 = vld [vmem:[%s4499_s26 + $0x330] sm:$0xff] }
 0x25b   : > { %3849 = vmatpush.xpose.msk.msra.mxu3 %vm439_vm0, %v3816_v36  ;;  %v838_v9 = vadd.f32 %v836_v1, %v834_v63  ;;  %v3811_v36 = vld [vmem:[%s4499_s26 + $0x3b0] sm:$0xff]  ;;  %v3809_v1 = vld [vmem:[%s4499_s26 + $0x3a0] sm:$0xff] }
 0x25c   : > { %v845_v10 = vadd.f32 %v837_v2, %v835_v0  ;;  %v3793_v0 = vld [vmem:[%s4499_s26 + $0x320] sm:$0xff]  ;;  %v3792_v2 = vld [vmem:[%s4499_s26 + $0x318] sm:$0xff] }
 0x25d   : > { %v839_v14 = vrot.slane %v838_v9, 4 }
 0x25e   : > { %3826 = vmatpush.xpose.msk.msra.mxu2 %vm439_vm0, %v3799_v49  ;;  %v846_v15 = vrot.slane %v845_v10, 4  ;;  %v3810_v49 = vld [vmem:[%s4499_s26 + $0x3a8] sm:$0xff] }
 0x25f   : > { %3850 = vmatpush.xpose.msk.msra.mxu3 %vm439_vm0, %v3815_v50  ;;  %v840_v19 = vadd.f32 %v839_v14, %v838_v9  ;;  %v3807_v9 = vld [vmem:[%s4499_s26 + $0x390] sm:$0xff]  ;;  %v3806_v14 = vld [vmem:[%s4499_s26 + $0x388] sm:$0xff] }
 0x260   : > { %v847_v20 = vadd.f32 %v846_v15, %v845_v10  ;;  %v3790_v10 = vld [vmem:[%s4499_s26 + $0x308] sm:$0xff]  ;;  %v3789_v15 = vld [vmem:[%s4499_s26 + $0x300] sm:$0xff] }
 0x261   : > { %v841_v21 = vrot.slane %v840_v19, 2  ;;  %3747 = vmatmul.msk.f32.gmra.mxu2 %vm439_vm0, %v4628_v48 }
 0x262   : > { %3827 = vmatpush.xpose.msk.msra.mxu2 %vm439_vm0, %v3798_v3  ;;  %v848_v22 = vrot.slane %v847_v20, 2  ;;  %3771 = vmatmul.msk.f32.gmra.mxu3 %vm439_vm0, %v4628_v48  ;;  %v3808_v3 = vld [vmem:[%s4499_s26 + $0x398] sm:$0xff] }
 0x263   : > { %3851 = vmatpush.xpose.msk.msra.mxu3 %vm439_vm0, %v3814_v4  ;;  %v842_v26 = vadd.f32 %v841_v21, %v840_v19  ;;  %v3791_v4 = vld [vmem:[%s4499_s26 + $0x310] sm:$0xff]  ;;  %v3913_v19 = vld [vmem:[%s4499_s26 + $0x4f8] sm:$0xff] }
 0x264   : > { %v849_v27 = vadd.f32 %v848_v22, %v847_v20  ;;  %v3896_v20 = vld [vmem:[%s4499_s26 + $0x470] sm:$0xff]  ;;  %v3895_v22 = vld [vmem:[%s4499_s26 + $0x468] sm:$0xff] }
 0x265   : > { %v843_v31 = vrot.slane %v842_v26, 1  ;;  %v3912_v21 = vld [vmem:[%s4499_s26 + $0x4f0] sm:$0xff] }
 0x266   : > { %3828 = vmatpush.xpose.msk.msra.mxu2 %vm439_vm0, %v3797_v16  ;;  %v850_v32 = vrot.slane %v849_v27, 1  ;;  %v3805_v16 = vld [vmem:[%s4499_s26 + $0x380] sm:$0xff] }
 0x267   : > { %3852 = vmatpush.xpose.msk.msra.mxu3 %vm439_vm0, %v3813_v17  ;;  %v844_v42 = vadd.f32 %v843_v31, %v842_v26  ;;  %v3897_v17 = vld [vmem:[%s4499_s26 + $0x478] sm:$0xff]  ;;  %v3910_v26 = vld [vmem:[%s4499_s26 + $0x4e0] sm:$0xff] }
 0x268   : > { %v851_v43 = vadd.f32 %v850_v32, %v849_v27  ;;  %v3893_v31 = vld [vmem:[%s4499_s26 + $0x458] sm:$0xff] }
 0x269   : > { %3748 = vmatmul.msk.f32.gmra.mxu2 %vm439_vm0, %v4646_v52  ;;  %v858_v50 = vadd.f32 %v5014_v39, %v844_v42  ;;  %v3909_v32 = vld [vmem:[%s4499_s26 + $0x4d8] sm:$0xff] }
 0x26a   : > { %3829 = vmatpush.xpose.msk.msra.mxu2 %vm439_vm0, %v3796_v24  ;;  %v859_v46 = vadd.f32 %v5014_v39, %v851_v43  ;;  %3772 = vmatmul.msk.f32.gmra.mxu3 %vm439_vm0, %v4646_v52  ;;  %v3911_v24 = vld [vmem:[%s4499_s26 + $0x4e8] sm:$0xff] }
 0x26b   : > { %3853 = vmatpush.xpose.msk.msra.mxu3 %vm439_vm0, %v3812_v25  ;;  %v3894_v25 = vld [vmem:[%s4499_s26 + $0x460] sm:$0xff]  ;;  %v3891_v43 = vld [vmem:[%s4499_s26 + $0x448] sm:$0xff] }
 0x26c   : > { %v862_v53 = vrot.slane %v859_v46, 7  ;;  %v3906_v46 = vld [vmem:[%s4499_s26 + $0x4c0] sm:$0xff] }
 0x26e   : > { %3830 = vmatpush.xpose.msk.msra.mxu2 %vm439_vm0, %v3795_v35  ;;  %v864_v63 = vsel %vm863_vm3, %v858_v50, %v862_v53  ;;  %v3908_v35 = vld [vmem:[%s4499_s26 + $0x4d0] sm:$0xff]  ;;  %v3889_v50 = vld [vmem:[%s4499_s26 + $0x438] sm:$0xff] }
 0x26f   : > { %3854 = vmatpush.xpose.msk.msra.mxu3 %vm439_vm0, %v3811_v36  ;;  %870 = vst.msk [vmem:[%s5037_s29] sm:$0x3] %vm5028_vm4, %v864_v63  ;;  %v3905_v53 = vld [vmem:[%s4499_s26 + $0x4b8] sm:$0xff]  ;;  %v3904_v63 = vld [vmem:[%s4499_s26 + $0x4b0] sm:$0xff] }
 0x271   : > { %3749 = vmatmul.msk.f32.gmra.mxu2 %vm439_vm0, %v4658_v55 }
 0x272   : > { %3831 = vmatpush.xpose.msk.msra.mxu2 %vm439_vm0, %v3794_v47  ;;  %3773 = vmatmul.msk.f32.gmra.mxu3 %vm439_vm0, %v4658_v55 }
 0x273   : > { %3855 = vmatpush.xpose.msk.msra.mxu3 %vm439_vm0, %v3810_v49 }
 0x276   : > { %3832 = vmatpush.xpose.msk.msra.mxu2 %vm439_vm0, %v3793_v0 }
 0x277   : > { %3856 = vmatpush.xpose.msk.msra.mxu3 %vm439_vm0, %v3809_v1 }
 0x279   : > { %3750 = vmatmul.msk.f32.gmra.mxu2 %vm439_vm0, %v4670_v57 }
 0x27a   : > { %3833 = vmatpush.xpose.msk.msra.mxu2 %vm439_vm0, %v3792_v2  ;;  %3774 = vmatmul.msk.f32.gmra.mxu3 %vm439_vm0, %v4670_v57  ;;  %v3887_v2 = vld [vmem:[%s4499_s26 + $0x428] sm:$0xff] }
 0x27b   : > { %3857 = vmatpush.xpose.msk.msra.mxu3 %vm439_vm0, %v3808_v3  ;;  %v3903_v3 = vld [vmem:[%s4499_s26 + $0x4a8] sm:$0xff] }
 0x27e   : > { %3834 = vmatpush.xpose.msk.msra.mxu2 %vm439_vm0, %v3791_v4  ;;  %v3902_v4 = vld [vmem:[%s4499_s26 + $0x4a0] sm:$0xff] }
 0x27f   : > { %3858 = vmatpush.xpose.msk.msra.mxu3 %vm439_vm0, %v3807_v9 }
 0x281   : > { %3751 = vmatmul.msk.f32.gmra.mxu2 %vm439_vm0, %v4679_v58 }
 0x282   : > { %3835 = vmatpush.xpose.msk.msra.mxu2 %vm439_vm0, %v3790_v10  ;;  %3775 = vmatmul.msk.f32.gmra.mxu3 %vm439_vm0, %v4679_v58 }
 0x283   : > { %3859 = vmatpush.xpose.msk.msra.mxu3 %vm439_vm0, %v3806_v14  ;;  %v3885_v14 = vld [vmem:[%s4499_s26 + $0x418] sm:$0xff] }
 0x286   : > { %3836 = vmatpush.xpose.msk.msra.mxu2 %vm439_vm0, %v3789_v15  ;;  %v3901_v15 = vld [vmem:[%s4499_s26 + $0x498] sm:$0xff] }
 0x287   : > { %3860 = vmatpush.xpose.msk.msra.mxu3 %vm439_vm0, %v3805_v16  ;;  %v3900_v16 = vld [vmem:[%s4499_s26 + $0x490] sm:$0xff] }
 0x289   : > { %3837 = vmatmul.msk.f32.vlgmr.msra.gmra.mxu2 %vm439_vm0, %v4586_v40 }
 0x28a   : > { %3914 = vmatpush.xpose.msk.msrb.mxu2 %vm439_vm0, %v3897_v17  ;;  %3861 = vmatmul.msk.f32.vlgmr.msra.gmra.mxu3 %vm439_vm0, %v4586_v40  ;;  %v3892_v40 = vld [vmem:[%s4499_s26 + $0x450] sm:$0xff] }
 0x28b   : > { %3938 = vmatpush.xpose.msk.msrb.mxu3 %vm439_vm0, %v3913_v19 }
 0x28c   : > { %v5090_v27 = vpop.f32.mrf.mxu2 }
 0x28d   : > { %v5092_v29 = vpop.f32.mrf.mxu3 }
 0x28e   : > { %3915 = vmatpush.xpose.msk.msrb.mxu2 %vm439_vm0, %v3896_v20  ;;  %v3883_v20 = vld [vmem:[%s4499_s26 + $0x408] sm:$0xff] }
 0x28f   : > { %3939 = vmatpush.xpose.msk.msrb.mxu3 %vm439_vm0, %v3912_v21  ;;  %v3899_v21 = vld [vmem:[%s4499_s26 + $0x488] sm:$0xff] }
 0x291   : > { %3838 = vmatmul.msk.f32.gmra.mxu2 %vm439_vm0, %v4595_v41 }
 0x292   : > { %3916 = vmatpush.xpose.msk.msrb.mxu2 %vm439_vm0, %v3895_v22  ;;  %3862 = vmatmul.msk.f32.gmra.mxu3 %vm439_vm0, %v4595_v41  ;;  %v3890_v41 = vld [vmem:[%s4499_s26 + $0x440] sm:$0xff] }
 0x293   : > { %3940 = vmatpush.xpose.msk.msrb.mxu3 %vm439_vm0, %v3911_v24  ;;  %v3898_v22 = vld [vmem:[%s4499_s26 + $0x480] sm:$0xff] }
 0x294   : > { %v5106_v36 = vpop.f32.mrf.mxu2 }
 0x295   : > { %v5108_v42 = vpop.f32.mrf.mxu3 }
 0x296   : > { %3917 = vmatpush.xpose.msk.msrb.mxu2 %vm439_vm0, %v3894_v25 }
 0x297   : > { %3941 = vmatpush.xpose.msk.msrb.mxu3 %vm439_vm0, %v3910_v26 }
 0x299   : > { %3839 = vmatmul.msk.f32.gmra.mxu2 %vm439_vm0, %v4610_v44 }
 0x29a   : > { %3918 = vmatpush.xpose.msk.msrb.mxu2 %vm439_vm0, %v3893_v31  ;;  %3863 = vmatmul.msk.f32.gmra.mxu3 %vm439_vm0, %v4610_v44  ;;  %v3888_v44 = vld [vmem:[%s4499_s26 + $0x430] sm:$0xff] }
 0x29b   : > { %3942 = vmatpush.xpose.msk.msrb.mxu3 %vm439_vm0, %v3909_v32 }
 0x29c   : > { %v5122_v47 = vpop.f32.mrf.mxu2 }
 0x29d   : > { %v5124_v49 = vpop.f32.mrf.mxu3 }
 0x29e   : > { %3919 = vmatpush.xpose.msk.msrb.mxu2 %vm439_vm0, %v3892_v40 }
 0x29f   : > { %3943 = vmatpush.xpose.msk.msrb.mxu3 %vm439_vm0, %v3908_v35 }
 0x2a1   : > { %3840 = vmatmul.msk.f32.gmra.mxu2 %vm439_vm0, %v4628_v48 }
 0x2a2   : > { %3920 = vmatpush.xpose.msk.msrb.mxu2 %vm439_vm0, %v3891_v43  ;;  %3864 = vmatmul.msk.f32.gmra.mxu3 %vm439_vm0, %v4628_v48  ;;  %v3886_v48 = vld [vmem:[%s4499_s26 + $0x420] sm:$0xff] }
 0x2a3   : > { %3944 = vmatpush.xpose.msk.msrb.mxu3 %vm439_vm0, %v3907_v45 }
 0x2a4   : > { %v1026_v0 = vpop.f32.mrf.mxu2 }
 0x2a5   : > { %v1067_v1 = vpop.f32.mrf.mxu3 }
 0x2a6   : > { %3921 = vmatpush.xpose.msk.msrb.mxu2 %vm439_vm0, %v3890_v41 }
 0x2a7   : > { %3945 = vmatpush.xpose.msk.msrb.mxu3 %vm439_vm0, %v3906_v46 }
 0x2a9   : > { %3841 = vmatmul.msk.f32.gmra.mxu2 %vm439_vm0, %v4646_v52 }
 0x2aa   : > { %3922 = vmatpush.xpose.msk.msrb.mxu2 %vm439_vm0, %v3889_v50  ;;  %3865 = vmatmul.msk.f32.gmra.mxu3 %vm439_vm0, %v4646_v52  ;;  %v3884_v52 = vld [vmem:[%s4499_s26 + $0x410] sm:$0xff] }
 0x2ab   : > { %3946 = vmatpush.xpose.msk.msrb.mxu3 %vm439_vm0, %v3905_v53 }
 0x2ac   : > { %v1029_v9 = vpop.f32.mrf.mxu2 }
 0x2ad   : > { %v1070_v10 = vpop.f32.mrf.mxu3  ;;  %v1030_v50 = vadd.f32 %v1029_v9, %v4693_v13  ;;  %v1024_v9 = vadd.f32 %v5122_v47, %v4703_v28  ;;  %v1018_v47 = vadd.f32 %v5090_v27, %v4711_v38 }
 0x2ae   : > { %3923 = vmatpush.xpose.msk.msrb.mxu2 %vm439_vm0, %v3888_v44 }
 0x2af   : > { %3947 = vmatpush.xpose.msk.msrb.mxu3 %vm439_vm0, %v3904_v63  ;;  %v4301_v63 = vld [vmem:[%s6233_s1] sm:$0xff] }
 0x2b1   : > { %3842 = vmatmul.msk.f32.gmra.mxu2 %vm439_vm0, %v4658_v55 }
 0x2b2   : > { %3924 = vmatpush.xpose.msk.msrb.mxu2 %vm439_vm0, %v3887_v2  ;;  %3866 = vmatmul.msk.f32.gmra.mxu3 %vm439_vm0, %v4658_v55  ;;  %v3882_v55 = vld [vmem:[%s4499_s26 + $0x400] sm:$0xff]  ;;  %v1027_v2 = vadd.f32 %v1026_v0, %v4689_v11  ;;  %v1062_v0 = vadd.f32 %v5108_v42, %v4707_v33 }
 0x2b3   : > { %3948 = vmatpush.xpose.msk.msrb.mxu3 %vm439_vm0, %v3903_v3  ;;  %v1068_v3 = vadd.f32 %v1067_v1, %v4689_v11 }
 0x2b4   : > { %v1032_v17 = vpop.f32.mrf.mxu2  ;;  %v1088_v1 = vmax.f32 %v1027_v2, 0.0  ;;  %v1085_v42 = vmax.f32 %v1062_v0, 0.0 }
 0x2b5   : > { %v1073_v19 = vpop.f32.mrf.mxu3  ;;  %v1033_v43 = vadd.f32 %v1032_v17, %v4687_v8  ;;  %v1086_v17 = vmax.f32 %v1024_v9, 0.0 }
 0x2b6   : > { %3925 = vmatpush.xpose.msk.msrb.mxu2 %vm439_vm0, %v3886_v48  ;;  %v1074_v45 = vadd.f32 %v1073_v19, %v4687_v8 }
 0x2b7   : > { %3949 = vmatpush.xpose.msk.msrb.mxu3 %vm439_vm0, %v3902_v4  ;;  %v1092_v48 = vmax.f32 %v1033_v43, 0.0 }
 0x2b8   : > { %v1093_v4 = vmax.f32 %v1074_v45, 0.0 }
 0x2b9   : > { %3843 = vmatmul.msk.f32.gmra.mxu2 %vm439_vm0, %v4670_v57 }
 0x2ba   : > { %3926 = vmatpush.xpose.msk.msrb.mxu2 %vm439_vm0, %v3885_v14  ;;  %3867 = vmatmul.msk.f32.gmra.mxu3 %vm439_vm0, %v4670_v57  ;;  %v1090_v14 = vmax.f32 %v1030_v50, 0.0 }
 0x2bb   : > { %3950 = vmatpush.xpose.msk.msrb.mxu3 %vm439_vm0, %v3901_v15 }
 0x2bc   : > { %v1035_v24 = vpop.f32.mrf.mxu2 }
 0x2bd   : > { %v1076_v25 = vpop.f32.mrf.mxu3  ;;  %v1036_v31 = vadd.f32 %v1035_v24, %v4691_v12 }
 0x2be   : > { %3927 = vmatpush.xpose.msk.msrb.mxu2 %vm439_vm0, %v3884_v52  ;;  %v1077_v32 = vadd.f32 %v1076_v25, %v4691_v12  ;;  %v1021_v52 = vadd.f32 %v5106_v36, %v4707_v33  ;;  %v5210_v36 = vld [vmem:[%s6233_s1 + $0x8] sm:$0xff] }
 0x2bf   : > { %3951 = vmatpush.xpose.msk.msrb.mxu3 %vm439_vm0, %v3900_v16  ;;  %v1094_v53 = vmax.f32 %v1036_v31, 0.0  ;;  %v1089_v16 = vmax.f32 %v1068_v3, 0.0 }
 0x2c0   : > { %v1095_v44 = vmax.f32 %v1077_v32, 0.0  ;;  %v1084_v27 = vmax.f32 %v1021_v52, 0.0 }
 0x2c1   : > { %3844 = vmatmul.msk.f32.gmra.mxu2 %vm439_vm0, %v4679_v58 }
 0x2c2   : > { %3928 = vmatpush.xpose.msk.msrb.mxu2 %vm439_vm0, %v3883_v20  ;;  %3868 = vmatmul.msk.f32.gmra.mxu3 %vm439_vm0, %v4679_v58  ;;  %v1071_v58 = vadd.f32 %v1070_v10, %v4693_v13  ;;  %v1065_v10 = vadd.f32 %v5124_v49, %v4703_v28  ;;  %v1059_v49 = vadd.f32 %v5092_v29, %v4711_v38  ;;  %v1082_v29 = vmax.f32 %v1018_v47, 0.0 }
 0x2c3   : > { %3952 = vmatpush.xpose.msk.msrb.mxu3 %vm439_vm0, %v3899_v21  ;;  %v5223_v21 = vld [vmem:[%s6233_s1 + $0x10] sm:$0xff] }
 0x2c4   : > { %v1038_v26 = vpop.f32.mrf.mxu2  ;;  %v1091_v15 = vmax.f32 %v1071_v58, 0.0  ;;  %v1087_v19 = vmax.f32 %v1065_v10, 0.0  ;;  %v1083_v20 = vmax.f32 %v1059_v49, 0.0 }
 0x2c5   : > { %v1079_v57 = vpop.f32.mrf.mxu3  ;;  %v1039_v40 = vadd.f32 %v1038_v26, %v4685_v7 }
 0x2c6   : > { %3929 = vmatpush.xpose.msk.msrb.mxu2 %vm439_vm0, %v3882_v55  ;;  %v1080_v35 = vadd.f32 %v1079_v57, %v4685_v7  ;;  %v4306_v55 = vld [vmem:[%s6233_s1 + $0x28] sm:$0xff] }
 0x2c7   : > { %3953 = vmatpush.xpose.msk.msrb.mxu3 %vm439_vm0, %v3898_v22  ;;  %v1096_v41 = vmax.f32 %v1039_v40, 0.0 }
 0x2c8   : > { %v1097_v46 = vmax.f32 %v1080_v35, 0.0 }
 0x2c9   : > { %1106 = vmatpush.msrb.mxu0 %v1096_v41  ;;  %3930 = vmatmul.msk.f32.vlgmr.msrb.gmra.mxu2 %vm439_vm0, %v4301_v63 }
 0x2ca   : > { %1135 = vmatpush.msrb.mxu1 %v1097_v46  ;;  %3954 = vmatmul.msk.f32.vlgmr.msrb.gmra.mxu3 %vm439_vm0, %v4301_v63 }
 0x2cb   : > { %1107 = vmatpush.msrb.mxu0 %v1094_v53 }
 0x2cc   : > { %1136 = vmatpush.msrb.mxu1 %v1095_v44  ;;  %v5270_v22 = vpop.f32.mrf.mxu2 }
 0x2cd   : > { %1108 = vmatpush.msrb.mxu0 %v1092_v48  ;;  %v5272_v24 = vpop.f32.mrf.mxu3 }
 0x2ce   : > { %1137 = vmatpush.msrb.mxu1 %v1093_v4 }
 0x2cf   : > { %1109 = vmatpush.msrb.mxu0 %v1090_v14 }
 0x2d0   : > { %1138 = vmatpush.msrb.mxu1 %v1091_v15 }
 0x2d1   : > { %1110 = vmatpush.msrb.mxu0 %v1088_v1  ;;  %3931 = vmatmul.msk.f32.gmra.mxu2 %vm439_vm0, %v5210_v36 }
 0x2d2   : > { %1139 = vmatpush.msrb.mxu1 %v1089_v16  ;;  %3955 = vmatmul.msk.f32.gmra.mxu3 %vm439_vm0, %v5210_v36 }
 0x2d3   : > { %1111 = vmatpush.msrb.mxu0 %v1086_v17 }
 0x2d4   : > { %1140 = vmatpush.msrb.mxu1 %v1087_v19  ;;  %v5274_v25 = vpop.f32.mrf.mxu2 }
 0x2d5   : > { %1112 = vmatpush.msrb.mxu0 %v1084_v27  ;;  %v5276_v26 = vpop.f32.mrf.mxu3 }
 0x2d6   : > { %1141 = vmatpush.msrb.mxu1 %v1085_v42 }
 0x2d7   : > { %1113 = vmatpush.msrb.mxu0 %v1082_v29 }
 0x2d8   : > { %1142 = vmatpush.msrb.mxu1 %v1083_v20  ;;  %3683 = vmatmul.msk.f32.vlgmr.msrb.gmra.mxu0 %vm678_vm1, %v4720_v61 }
 0x2d9   : > { %3687 = vmatmul.msk.f32.vlgmr.msrb.gmra.mxu1 %vm678_vm1, %v4720_v61  ;;  %3932 = vmatmul.msk.f32.gmra.mxu2 %vm439_vm0, %v5223_v21  ;;  %v5236_v61 = vld [vmem:[%s6233_s1 + $0x18] sm:$0xff] }
 0x2da   : > { %3956 = vmatmul.msk.f32.gmra.mxu3 %vm439_vm0, %v5223_v21 }
 0x2dc   : > { %v5278_v57 = vpop.f32.mrf.mxu2 }
 0x2dd   : > { %v5280_v31 = vpop.f32.mrf.mxu3 }
 0x2e0   : > { %3684 = vmatmul.msk.f32.gmra.mxu0 %vm678_vm1, %v4729_v59 }
 0x2e1   : > { %3688 = vmatmul.msk.f32.gmra.mxu1 %vm678_vm1, %v4729_v59  ;;  %3933 = vmatmul.msk.f32.gmra.mxu2 %vm439_vm0, %v5236_v61  ;;  %v4305_v59 = vld [vmem:[%s6233_s1 + $0x20] sm:$0xff] }
 0x2e2   : > { %3957 = vmatmul.msk.f32.gmra.mxu3 %vm439_vm0, %v5236_v61 }
 0x2e4   : > { %v1396_v32 = vpop.f32.mrf.mxu2 }
 0x2e5   : > { %v1437_v40 = vpop.f32.mrf.mxu3 }
 0x2e8   : > { %3685 = vmatmul.msk.f32.gmra.mxu0 %vm678_vm1, %v4738_v60 }
 0x2e9   : > { %3689 = vmatmul.msk.f32.gmra.mxu1 %vm678_vm1, %v4738_v60  ;;  %3934 = vmatmul.msk.f32.gmra.mxu2 %vm439_vm0, %v4305_v59  ;;  %v4307_v60 = vld [vmem:[%s6233_s1 + $0x30] sm:$0xff] }
 0x2ea   : > { %3958 = vmatmul.msk.f32.gmra.mxu3 %vm439_vm0, %v4305_v59 }
 0x2ec   : > { %v1399_v35 = vpop.f32.mrf.mxu2 }
 0x2ed   : > { %v1440_v43 = vpop.f32.mrf.mxu3 }
 0x2f0   : > { %3686 = vmatmul.msk.f32.gmra.mxu0 %vm678_vm1, %v4747_v62 }
 0x2f1   : > { %3690 = vmatmul.msk.f32.gmra.mxu1 %vm678_vm1, %v4747_v62  ;;  %3935 = vmatmul.msk.f32.gmra.mxu2 %vm439_vm0, %v4306_v55  ;;  %v4308_v62 = vld [vmem:[%s6233_s1 + $0x38] sm:$0xff] }
 0x2f2   : > { %3959 = vmatmul.msk.f32.gmra.mxu3 %vm439_vm0, %v4306_v55 }
 0x2f4   : > { %v1402_v46 = vpop.f32.mrf.mxu2 }
 0x2f5   : > { %v1443_v50 = vpop.f32.mrf.mxu3 }
 0x2f9   : > { %3936 = vmatmul.msk.f32.gmra.mxu2 %vm439_vm0, %v4307_v60 }
 0x2fa   : > { %3960 = vmatmul.msk.f32.gmra.mxu3 %vm439_vm0, %v4307_v60 }
 0x2fc   : > { %v1405_v2 = vpop.f32.mrf.mxu2 }
 0x2fd   : > { %v1446_v3 = vpop.f32.mrf.mxu3  ;;  %v1406_v60 = vadd.f32 %v1405_v2, %v4691_v12  ;;  %v1400_v2 = vadd.f32 %v1399_v35, %v4693_v13 }
 0x2ff   : > { %v1460_v35 = vmax.f32 %v1400_v2, 0.0 }
 0x301   : > { %3937 = vmatmul.msk.f32.gmra.mxu2 %vm439_vm0, %v4308_v62 }
 0x302   : > { %3961 = vmatmul.msk.f32.gmra.mxu3 %vm439_vm0, %v4308_v62  ;;  %v1447_v62 = vadd.f32 %v1446_v3, %v4691_v12  ;;  %v1441_v3 = vadd.f32 %v1440_v43, %v4693_v13 }
 0x304   : > { %v1408_v47 = vpop.f32.mrf.mxu2  ;;  %v1461_v43 = vmax.f32 %v1441_v3, 0.0 }
 0x305   : > { %v1449_v49 = vpop.f32.mrf.mxu3  ;;  %v1409_v29 = vadd.f32 %v1408_v47, %v4685_v7 }
 0x306   : > { %v1450_v20 = vadd.f32 %v1449_v49, %v4685_v7 }
 0x355   : > { %v1115_v45 = vpop.f32.mrf.mxu0 }
 0x356   : > { %v1144_v41 = vpop.f32.mrf.mxu1  ;;  %v1116_v17 = vadd.f32 %v1115_v45, %v4765_v23 }
 0x357   : > { %v1145_v19 = vadd.f32 %v1144_v41, %v4765_v23  ;;  %v1403_v41 = vadd.f32 %v1402_v46, %v4687_v8  ;;  %v1397_v46 = vadd.f32 %v1396_v32, %v4689_v11  ;;  %v1432_v32 = vadd.f32 %v5276_v26, %v4707_v33 }
 0x358   : > { %v1429_v26 = vadd.f32 %v5272_v24, %v4711_v38  ;;  %v5337_v24 = vld [vmem:[%s6235_s3 + $0x8] sm:$0xff] }
 0x359   : > { %v1157_v45 = vmax.f32 %v1145_v19, 0.0  ;;  %v5355_v19 = vld [vmem:[%s6235_s3 + $0x18] sm:$0xff] }
 0x35a   : > { %v1453_v49 = vmax.f32 %v1429_v26, 0.0 }
 0x35d   : > { %v1118_v58 = vpop.f32.mrf.mxu0 }
 0x35e   : > { %v1147_v53 = vpop.f32.mrf.mxu1  ;;  %v1119_v52 = vadd.f32 %v1118_v58, %v4761_v18  ;;  %v1156_v58 = vmax.f32 %v1116_v17, 0.0  ;;  %v5346_v17 = vld [vmem:[%s6235_s3 + $0x10] sm:$0xff] }
 0x35f   : > { %v1148_v0 = vadd.f32 %v1147_v53, %v4761_v18  ;;  %v1444_v53 = vadd.f32 %v1443_v50, %v4687_v8  ;;  %v1438_v50 = vadd.f32 %v1437_v40, %v4689_v11  ;;  %v1458_v40 = vmax.f32 %v1397_v46, 0.0 }
 0x360   : > { %v1158_v59 = vmax.f32 %v1119_v52, 0.0 }
 0x361   : > { %v1159_v55 = vmax.f32 %v1148_v0, 0.0  ;;  %v1459_v52 = vmax.f32 %v1438_v50, 0.0 }
 0x365   : > { %v1121_v44 = vpop.f32.mrf.mxu0 }
 0x366   : > { %v1150_v63 = vpop.f32.mrf.mxu1  ;;  %v1122_v9 = vadd.f32 %v1121_v44, %v4755_v6  ;;  %v1466_v44 = vmax.f32 %v1409_v29, 0.0 }
 0x367   : > { %v1151_v10 = vadd.f32 %v1150_v63, %v4755_v6  ;;  %v1467_v63 = vmax.f32 %v1450_v20, 0.0 }
 0x368   : > { %v1160_v27 = vmax.f32 %v1122_v9, 0.0  ;;  %v1462_v9 = vmax.f32 %v1403_v41, 0.0 }
 0x369   : > { %v1161_v42 = vmax.f32 %v1151_v10, 0.0  ;;  %v1463_v10 = vmax.f32 %v1444_v53, 0.0 }
 0x36d   : > { %v1124_v48 = vpop.f32.mrf.mxu0 }
 0x36e   : > { %v1153_v4 = vpop.f32.mrf.mxu1  ;;  %v1125_v14 = vadd.f32 %v1124_v48, %v4753_v5  ;;  %v1464_v48 = vmax.f32 %v1406_v60, 0.0 }
 0x36f   : > { %v1154_v15 = vadd.f32 %v1153_v4, %v4753_v5  ;;  %v1465_v4 = vmax.f32 %v1447_v62, 0.0 }
 0x370   : > { %v1162_v1 = vmax.f32 %v1125_v14, 0.0  ;;  %v1394_v14 = vadd.f32 %v5278_v57, %v4703_v28  ;;  %v5315_v57 = vld [vmem:[%s6237_s5 + $0x8] sm:$0xff] }
 0x371   : > { %v1163_v16 = vmax.f32 %v1154_v15, 0.0  ;;  %v1391_v15 = vadd.f32 %v5274_v25, %v4707_v33  ;;  %v1388_v25 = vadd.f32 %v5270_v22, %v4711_v38  ;;  %v5328_v22 = vld [vmem:[%s6235_s3] sm:$0xff] }
 0x372   : > { %1176 = vmatpush.msra.mxu0 %v1162_v1 }
 0x373   : > { %1199 = vmatpush.msra.mxu1 %v1163_v16  ;;  %v1454_v1 = vmax.f32 %v1391_v15, 0.0  ;;  %v1455_v16 = vmax.f32 %v1432_v32, 0.0  ;;  %v1452_v47 = vmax.f32 %v1388_v25, 0.0 }
 0x374   : > { %1177 = vmatpush.msra.mxu0 %v1160_v27  ;;  %v5361_v27 = vpop.f32.mrf.mxu2 }
 0x375   : > { %1200 = vmatpush.msra.mxu1 %v1161_v42  ;;  %v5363_v42 = vpop.f32.mrf.mxu3 }
 0x376   : > { %1178 = vmatpush.msra.mxu0 %v1158_v59 }
 0x377   : > { %1201 = vmatpush.msra.mxu1 %v1159_v55 }
 0x378   : > { %1179 = vmatpush.msra.mxu0 %v1156_v58 }
 0x379   : > { %1202 = vmatpush.msra.mxu1 %v1157_v45  ;;  %3691 = vmatmul.msk.f32.vlgmr.msra.gmra.mxu0 %vm767_vm2, %v4772_v34 }
 0x37a   : > { %3693 = vmatmul.msk.f32.vlgmr.msra.gmra.mxu1 %vm767_vm2, %v4772_v34  ;;  %1476 = vmatpush.msrb.mxu0 %v1466_v44  ;;  %v1435_v34 = vadd.f32 %v5280_v31, %v4703_v28  ;;  %v1456_v31 = vmax.f32 %v1394_v14, 0.0 }
 0x37b   : > { %1505 = vmatpush.msrb.mxu1 %v1467_v63 }
 0x37c   : > { %1477 = vmatpush.msrb.mxu0 %v1464_v48  ;;  %v1457_v0 = vmax.f32 %v1435_v34, 0.0  ;;  %v5365_v29 = vpop.f32.mrf.mxu2 }
 0x37d   : > { %1506 = vmatpush.msrb.mxu1 %v1465_v4  ;;  %v5367_v20 = vpop.f32.mrf.mxu3 }
 0x37e   : > { %1478 = vmatpush.msrb.mxu0 %v1462_v9 }
 0x37f   : > { %1507 = vmatpush.msrb.mxu1 %v1463_v10 }
 0x380   : > { %1479 = vmatpush.msrb.mxu0 %v1460_v35 }
 0x381   : > { %1508 = vmatpush.msrb.mxu1 %v1461_v43  ;;  %3692 = vmatmul.msk.f32.gmra.mxu0 %vm767_vm2, %v5315_v57 }
 0x382   : > { %3694 = vmatmul.msk.f32.gmra.mxu1 %vm767_vm2, %v5315_v57  ;;  %1480 = vmatpush.msrb.mxu0 %v1458_v40 }
 0x383   : > { %1509 = vmatpush.msrb.mxu1 %v1459_v52 }
 0x384   : > { %1481 = vmatpush.msrb.mxu0 %v1456_v31  ;;  %v5369_v59 = vpop.f32.mrf.mxu2 }
 0x385   : > { %1510 = vmatpush.msrb.mxu1 %v1457_v0  ;;  %v5371_v55 = vpop.f32.mrf.mxu3 }
 0x386   : > { %1482 = vmatpush.msrb.mxu0 %v1454_v1 }
 0x387   : > { %1511 = vmatpush.msrb.mxu1 %v1455_v16 }
 0x388   : > { %1483 = vmatpush.msrb.mxu0 %v1452_v47 }
 0x389   : > { %1512 = vmatpush.msrb.mxu1 %v1453_v49  ;;  %3776 = vmatmul.msk.f32.vlgmr.msrb.gmra.mxu0 %vm678_vm1, %v5328_v22 }
 0x38a   : > { %3780 = vmatmul.msk.f32.vlgmr.msrb.gmra.mxu1 %vm678_vm1, %v5328_v22 }
 0x38c   : > { %v5373_v58 = vpop.f32.mrf.mxu2 }
 0x38d   : > { %v5375_v45 = vpop.f32.mrf.mxu3 }
 0x391   : > { %3777 = vmatmul.msk.f32.gmra.mxu0 %vm678_vm1, %v5337_v24 }
 0x392   : > { %3781 = vmatmul.msk.f32.gmra.mxu1 %vm678_vm1, %v5337_v24 }
 0x394   : > { %v5381_v9 = vpop.f32.mrf.mxu2 }
 0x395   : > { %v5383_v10 = vpop.f32.mrf.mxu3 }
 0x399   : > { %3778 = vmatmul.msk.f32.gmra.mxu0 %vm678_vm1, %v5346_v17 }
 0x39a   : > { %3782 = vmatmul.msk.f32.gmra.mxu1 %vm678_vm1, %v5346_v17 }
 0x39c   : > { %v1772_v47 = vpop.f32.mrf.mxu2 }
 0x39d   : > { %v1813_v49 = vpop.f32.mrf.mxu3 }
 0x3a1   : > { %3779 = vmatmul.msk.f32.gmra.mxu0 %vm678_vm1, %v5355_v19 }
 0x3a2   : > { %3783 = vmatmul.msk.f32.gmra.mxu1 %vm678_vm1, %v5355_v19 }
 0x3f6   : > { %v1181_v60 = vpop.f32.mrf.mxu0 }
 0x3f7   : > { %v1204_v62 = vpop.f32.mrf.mxu1  ;;  %v1182_v41 = vadd.f32 %v1181_v60, %v4961_v30 }
 0x3f8   : > { %v1205_v53 = vadd.f32 %v1204_v62, %v4961_v30 }
 0x3f9   : > { %v1210_v2 = vmax.f32 %v1182_v41, 0.0 }
 0x3fa   : > { %v1211_v3 = vmax.f32 %v1205_v53, 0.0 }
 0x3fb   : > { %v1214_v14 = vmul.f32 %v1210_v2, %v4981_v51 }
 0x3fc   : > { %v1215_v34 = vmul.f32 %v1211_v3, %v4981_v51 }
 0x3fe   : > { %v1184_v44 = vpop.f32.mrf.mxu0 }
 0x3ff   : > { %v1207_v63 = vpop.f32.mrf.mxu1  ;;  %v1185_v48 = vadd.f32 %v1184_v44, %v4973_v37 }
 0x400   : > { %v1208_v4 = vadd.f32 %v1207_v63, %v4973_v37 }
 0x401   : > { %v1212_v46 = vmax.f32 %v1185_v48, 0.0 }
 0x402   : > { %v1213_v50 = vmax.f32 %v1208_v4, 0.0 }
 0x403   : > { %v1216_v35 = vmul.f32 %v1212_v46, %v4983_v56 }
 0x404   : > { %v1217_v43 = vmul.f32 %v1213_v50, %v4983_v56 }
 0x405   : > { %v1218_v15 = vadd.f32 %v1216_v35, %v1214_v14  ;;  %v1775_v35 = vpop.f32.mrf.mxu2 }
 0x406   : > { %v1225_v32 = vadd.f32 %v1217_v43, %v1215_v34  ;;  %v1485_v40 = vpop.f32.mrf.mxu0  ;;  %v1816_v43 = vpop.f32.mrf.mxu3 }
 0x407   : > { %v1514_v52 = vpop.f32.mrf.mxu1  ;;  %v1219_v25 = vrot.slane %v1218_v15, 4 }
 0x408   : > { %v1226_v26 = vrot.slane %v1225_v32, 4 }
 0x409   : > { %v1220_v31 = vadd.f32 %v1219_v25, %v1218_v15 }
 0x40a   : > { %v1227_v0 = vadd.f32 %v1226_v26, %v1225_v32 }
 0x40b   : > { %v1221_v1 = vrot.slane %v1220_v31, 2 }
 0x40c   : > { %v1228_v16 = vrot.slane %v1227_v0, 2 }
 0x40d   : > { %v1222_v60 = vadd.f32 %v1221_v1, %v1220_v31 }
 0x40e   : > { %v1229_v62 = vadd.f32 %v1228_v16, %v1227_v0  ;;  %v1488_v41 = vpop.f32.mrf.mxu0 }
 0x40f   : > { %v1517_v53 = vpop.f32.mrf.mxu1  ;;  %v1223_v44 = vrot.slane %v1222_v60, 1  ;;  %v1489_v1 = vadd.f32 %v1488_v41, %v4761_v18 }
 0x410   : > { %v1230_v63 = vrot.slane %v1229_v62, 1  ;;  %v1518_v16 = vadd.f32 %v1517_v53, %v4761_v18  ;;  %v1776_v53 = vadd.f32 %v1775_v35, %v4691_v12 }
 0x411   : > { %v1224_v2 = vadd.f32 %v1223_v44, %v1222_v60  ;;  %v1778_v44 = vpop.f32.mrf.mxu2 }
 0x412   : > { %v1231_v3 = vadd.f32 %v1230_v63, %v1229_v62  ;;  %v1819_v63 = vpop.f32.mrf.mxu3  ;;  %v1529_v41 = vmax.f32 %v1518_v16, 0.0  ;;  %v1834_v35 = vmax.f32 %v1776_v53, 0.0 }
 0x413   : > { %v1232_v4 = vadd.f32 %v1224_v2, %v5014_v39  ;;  %v1486_v2 = vadd.f32 %v1485_v40, %v4765_v23 }
 0x414   : > { %v1233_v48 = vadd.f32 %v1231_v3, %v5014_v39  ;;  %v1515_v3 = vadd.f32 %v1514_v52, %v4765_v23  ;;  %v1773_v52 = vadd.f32 %v1772_v47, %v4687_v8  ;;  %v1770_v47 = vadd.f32 %v5381_v9, %v4693_v13 }
 0x415   : > { %v1764_v9 = vadd.f32 %v5369_v59, %v4703_v28  ;;  %v1758_v59 = vadd.f32 %v5361_v27, %v4711_v38 }
 0x416   : > { %v1236_v46 = vrot.slane %v1233_v48, 7  ;;  %v1491_v50 = vpop.f32.mrf.mxu0  ;;  %v1527_v40 = vmax.f32 %v1515_v3, 0.0  ;;  %v1832_v16 = vmax.f32 %v1773_v52, 0.0 }
 0x417   : > { %v1520_v14 = vpop.f32.mrf.mxu1  ;;  %v1492_v25 = vadd.f32 %v1491_v50, %v4755_v6  ;;  %v1820_v50 = vadd.f32 %v1819_v63, %v4685_v7 }
 0x418   : > { %v1237_v34 = vsel %vm863_vm3, %v1232_v4, %v1236_v46  ;;  %v1521_v26 = vadd.f32 %v1520_v14, %v4755_v6  ;;  %v1779_v46 = vadd.f32 %v1778_v44, %v4685_v7  ;;  %v1528_v14 = vmax.f32 %v1489_v1, 0.0 }
 0x419   : > { %3695 = vst.msk [vmem:[%s5037_s29 + $0x2] sm:$0x3] %vm5028_vm4, %v1237_v34  ;;  %v1530_v48 = vmax.f32 %v1492_v25, 0.0  ;;  %v1817_v34 = vadd.f32 %v1816_v43, %v4691_v12  ;;  %v1808_v1 = vadd.f32 %v5375_v45, %v4689_v11  ;;  %v1802_v45 = vadd.f32 %v5367_v20, %v4707_v33  ;;  %v5458_v27 = vpop.f32.mrf.mxu2 }
 0x41a   : > { %v1531_v4 = vmax.f32 %v1521_v26, 0.0  ;;  %v1836_v25 = vmax.f32 %v1779_v46, 0.0  ;;  %v1837_v26 = vmax.f32 %v1820_v50, 0.0 }
 0x41b   : > { %v1835_v43 = vmax.f32 %v1817_v34, 0.0 }
 0x41e   : > { %v1494_v15 = vpop.f32.mrf.mxu0 }
 0x41f   : > { %v1523_v32 = vpop.f32.mrf.mxu1  ;;  %v1495_v31 = vadd.f32 %v1494_v15, %v4753_v5  ;;  %v1526_v15 = vmax.f32 %v1486_v2, 0.0  ;;  %v1829_v2 = vmax.f32 %v1808_v1, 0.0 }
 0x420   : > { %v1524_v0 = vadd.f32 %v1523_v32, %v4753_v5  ;;  %v1814_v32 = vadd.f32 %v1813_v49, %v4687_v8  ;;  %v1811_v49 = vadd.f32 %v5383_v10, %v4693_v13  ;;  %v1805_v10 = vadd.f32 %v5371_v55, %v4703_v28 }
 0x421   : > { %v1532_v60 = vmax.f32 %v1495_v31, 0.0  ;;  %v5412_v31 = vld [vmem:[%s6237_s5] sm:$0xff]  ;;  %v1799_v55 = vadd.f32 %v5363_v42, %v4711_v38  ;;  %v5460_v42 = vpop.f32.mrf.mxu3  ;;  %v5462_v50 = vpop.f32.mrf.mxu2 }
 0x422   : > { %v1533_v62 = vmax.f32 %v1524_v0, 0.0  ;;  %v1767_v0 = vadd.f32 %v5373_v58, %v4689_v11  ;;  %v1831_v44 = vmax.f32 %v1811_v49, 0.0  ;;  %v1761_v58 = vadd.f32 %v5365_v29, %v4707_v33 }
 0x423   : > { %1546 = vmatpush.msra.mxu0 %v1532_v60  ;;  %v1833_v60 = vmax.f32 %v1814_v32, 0.0  ;;  %v1826_v29 = vmax.f32 %v1764_v9, 0.0  ;;  %v1827_v3 = vmax.f32 %v1805_v10, 0.0  ;;  %v1823_v46 = vmax.f32 %v1799_v55, 0.0 }
 0x424   : > { %1569 = vmatpush.msra.mxu1 %v1533_v62  ;;  %v1830_v62 = vmax.f32 %v1770_v47, 0.0  ;;  %v1828_v63 = vmax.f32 %v1767_v0, 0.0  ;;  %v1824_v20 = vmax.f32 %v1761_v58, 0.0 }
 0x425   : > { %1547 = vmatpush.msra.mxu0 %v1530_v48  ;;  %v1825_v48 = vmax.f32 %v1802_v45, 0.0 }
 0x426   : > { %1570 = vmatpush.msra.mxu1 %v1531_v4  ;;  %v1822_v4 = vmax.f32 %v1758_v59, 0.0 }
 0x427   : > { %1548 = vmatpush.msra.mxu0 %v1528_v14 }
 0x428   : > { %1571 = vmatpush.msra.mxu1 %v1529_v41 }
 0x429   : > { %1549 = vmatpush.msra.mxu0 %v1526_v15  ;;  %v5464_v14 = vpop.f32.mrf.mxu3  ;;  %v5466_v41 = vpop.f32.mrf.mxu2 }
 0x42a   : > { %1572 = vmatpush.msra.mxu1 %v1527_v40  ;;  %3784 = vmatmul.msk.f32.vlgmr.msra.gmra.mxu0 %vm767_vm2, %v5412_v31 }
 0x42b   : > { %3786 = vmatmul.msk.f32.vlgmr.msra.gmra.mxu1 %vm767_vm2, %v5412_v31  ;;  %1846 = vmatpush.msrb.mxu0 %v1836_v25 }
 0x42c   : > { %1875 = vmatpush.msrb.mxu1 %v1837_v26 }
 0x42d   : > { %1847 = vmatpush.msrb.mxu0 %v1834_v35 }
 0x42e   : > { %1876 = vmatpush.msrb.mxu1 %v1835_v43 }
 0x42f   : > { %1848 = vmatpush.msrb.mxu0 %v1832_v16 }
 0x430   : > { %1877 = vmatpush.msrb.mxu1 %v1833_v60 }
 0x431   : > { %1849 = vmatpush.msrb.mxu0 %v1830_v62  ;;  %v5468_v53 = vpop.f32.mrf.mxu3  ;;  %v5470_v40 = vpop.f32.mrf.mxu2 }
 0x432   : > { %1878 = vmatpush.msrb.mxu1 %v1831_v44  ;;  %3785 = vmatmul.msk.f32.gmra.mxu0 %vm767_vm2, %v5315_v57 }
 0x433   : > { %3787 = vmatmul.msk.f32.gmra.mxu1 %vm767_vm2, %v5315_v57  ;;  %1850 = vmatpush.msrb.mxu0 %v1828_v63 }
 0x434   : > { %1879 = vmatpush.msrb.mxu1 %v1829_v2 }
 0x435   : > { %1851 = vmatpush.msrb.mxu0 %v1826_v29 }
 0x436   : > { %1880 = vmatpush.msrb.mxu1 %v1827_v3 }
 0x437   : > { %1852 = vmatpush.msrb.mxu0 %v1824_v20 }
 0x438   : > { %1881 = vmatpush.msrb.mxu1 %v1825_v48 }
 0x439   : > { %1853 = vmatpush.msrb.mxu0 %v1822_v4  ;;  %v5472_v52 = vpop.f32.mrf.mxu3  ;;  %v5478_v60 = vpop.f32.mrf.mxu2 }
 0x43a   : > { %1882 = vmatpush.msrb.mxu1 %v1823_v46  ;;  %3869 = vmatmul.msk.f32.vlgmr.msrb.gmra.mxu0 %vm678_vm1, %v5328_v22 }
 0x43b   : > { %3873 = vmatmul.msk.f32.vlgmr.msrb.gmra.mxu1 %vm678_vm1, %v5328_v22 }
 0x441   : > { %v5480_v9 = vpop.f32.mrf.mxu3  ;;  %v2142_v46 = vpop.f32.mrf.mxu2 }
 0x442   : > { %3870 = vmatmul.msk.f32.gmra.mxu0 %vm678_vm1, %v5337_v24 }
 0x443   : > { %3874 = vmatmul.msk.f32.gmra.mxu1 %vm678_vm1, %v5337_v24 }
 0x44a   : > { %3871 = vmatmul.msk.f32.gmra.mxu0 %vm678_vm1, %v5346_v17 }
 0x44b   : > { %3875 = vmatmul.msk.f32.gmra.mxu1 %vm678_vm1, %v5346_v17 }
 0x452   : > { %3872 = vmatmul.msk.f32.gmra.mxu0 %vm678_vm1, %v5355_v19 }
 0x453   : > { %3876 = vmatmul.msk.f32.gmra.mxu1 %vm678_vm1, %v5355_v19 }
 0x4a7   : > { %v1551_v34 = vpop.f32.mrf.mxu0 }
 0x4a8   : > { %v1574_v15 = vpop.f32.mrf.mxu1  ;;  %v1552_v32 = vadd.f32 %v1551_v34, %v4961_v30  ;;  %v2183_v34 = vpop.f32.mrf.mxu3 }
 0x4a9   : > { %v1575_v25 = vadd.f32 %v1574_v15, %v4961_v30 }
 0x4aa   : > { %v1580_v49 = vmax.f32 %v1552_v32, 0.0 }
 0x4ab   : > { %v1581_v35 = vmax.f32 %v1575_v25, 0.0 }
 0x4ac   : > { %v1584_v10 = vmul.f32 %v1580_v49, %v4981_v51 }
 0x4ad   : > { %v1585_v62 = vmul.f32 %v1581_v35, %v4981_v51 }
 0x4af   : > { %v1554_v26 = vpop.f32.mrf.mxu0 }
 0x4b0   : > { %v1577_v47 = vpop.f32.mrf.mxu1  ;;  %v1555_v43 = vadd.f32 %v1554_v26, %v4973_v37 }
 0x4b1   : > { %v1578_v0 = vadd.f32 %v1577_v47, %v4973_v37 }
 0x4b2   : > { %v1582_v1 = vmax.f32 %v1555_v43, 0.0 }
 0x4b3   : > { %v1583_v16 = vmax.f32 %v1578_v0, 0.0 }
 0x4b4   : > { %v1586_v44 = vmul.f32 %v1582_v1, %v4983_v56 }
 0x4b5   : > { %v1587_v58 = vmul.f32 %v1583_v16, %v4983_v56 }
 0x4b6   : > { %v1588_v45 = vadd.f32 %v1586_v44, %v1584_v10 }
 0x4b7   : > { %v1595_v63 = vadd.f32 %v1587_v58, %v1585_v62  ;;  %v1855_v2 = vpop.f32.mrf.mxu0  ;;  %v2145_v58 = vpop.f32.mrf.mxu2 }
 0x4b8   : > { %v1884_v59 = vpop.f32.mrf.mxu1  ;;  %v1589_v55 = vrot.slane %v1588_v45, 4 }
 0x4b9   : > { %v1596_v29 = vrot.slane %v1595_v63, 4 }
 0x4ba   : > { %v1590_v3 = vadd.f32 %v1589_v55, %v1588_v45  ;;  %v2186_v45 = vpop.f32.mrf.mxu3 }
 0x4bb   : > { %v1597_v20 = vadd.f32 %v1596_v29, %v1595_v63 }
 0x4bc   : > { %v1591_v48 = vrot.slane %v1590_v3, 2 }
 0x4bd   : > { %v1598_v4 = vrot.slane %v1597_v20, 2 }
 0x4be   : > { %v1592_v15 = vadd.f32 %v1591_v48, %v1590_v3 }
 0x4bf   : > { %v1599_v32 = vadd.f32 %v1598_v4, %v1597_v20  ;;  %v1858_v25 = vpop.f32.mrf.mxu0 }
 0x4c0   : > { %v1887_v26 = vpop.f32.mrf.mxu1  ;;  %v1593_v47 = vrot.slane %v1592_v15, 1  ;;  %v1859_v4 = vadd.f32 %v1858_v25, %v4761_v18 }
 0x4c1   : > { %v1600_v49 = vrot.slane %v1599_v32, 1 }
 0x4c2   : > { %v1594_v35 = vadd.f32 %v1593_v47, %v1592_v15  ;;  %v1888_v15 = vadd.f32 %v1887_v26, %v4761_v18  ;;  %v2146_v26 = vadd.f32 %v2145_v58, %v4691_v12  ;;  %v2140_v58 = vadd.f32 %v5478_v60, %v4693_v13 }
 0x4c3   : > { %v1601_v43 = vadd.f32 %v1600_v49, %v1599_v32  ;;  %v2148_v49 = vpop.f32.mrf.mxu2  ;;  %v2134_v60 = vadd.f32 %v5466_v41, %v4703_v28  ;;  %v2128_v41 = vadd.f32 %v5458_v27, %v4711_v38  ;;  %v3990_v27 = vld [vmem:[%s4499_s26 + $0x578] sm:$0xff] }
 0x4c4   : > { %v1602_v1 = vadd.f32 %v1594_v35, %v5014_v39  ;;  %v2189_v35 = vpop.f32.mrf.mxu3  ;;  %v1899_v25 = vmax.f32 %v1888_v15, 0.0 }
 0x4c5   : > { %v1603_v0 = vadd.f32 %v1601_v43, %v5014_v39  ;;  %v1856_v43 = vadd.f32 %v1855_v2, %v4765_v23 }
 0x4c7   : > { %v1606_v16 = vrot.slane %v1603_v0, 7  ;;  %v1861_v10 = vpop.f32.mrf.mxu0  ;;  %v1885_v0 = vadd.f32 %v1884_v59, %v4765_v23  ;;  %v2143_v59 = vadd.f32 %v2142_v46, %v4687_v8 }
 0x4c8   : > { %v1890_v62 = vpop.f32.mrf.mxu1  ;;  %v1862_v29 = vadd.f32 %v1861_v10, %v4755_v6  ;;  %v2149_v10 = vadd.f32 %v2148_v49, %v4685_v7 }
 0x4c9   : > { %v1607_v44 = vsel %vm863_vm3, %v1602_v1, %v1606_v16  ;;  %v1891_v3 = vadd.f32 %v1890_v62, %v4755_v6  ;;  %v2190_v62 = vadd.f32 %v2189_v35, %v4685_v7  ;;  %v1897_v2 = vmax.f32 %v1885_v0, 0.0 }
 0x4ca   : > { %3788 = vst.msk [vmem:[%s5037_s29 + $0x4] sm:$0x3] %vm5028_vm4, %v1607_v44  ;;  %v1900_v1 = vmax.f32 %v1862_v29, 0.0  ;;  %v1898_v44 = vmax.f32 %v1859_v4, 0.0  ;;  %v2184_v29 = vadd.f32 %v2183_v34, %v4687_v8  ;;  %v2137_v34 = vadd.f32 %v5470_v40, %v4689_v11 }
 0x4cb   : > { %v1901_v16 = vmax.f32 %v1891_v3, 0.0  ;;  %v2206_v3 = vmax.f32 %v2149_v10, 0.0  ;;  %v2178_v4 = vadd.f32 %v5472_v52, %v4689_v11  ;;  %v2202_v15 = vmax.f32 %v2143_v59, 0.0  ;;  %v4006_v10 = vld [vmem:[%s4499_s26 + $0x5f8] sm:$0xff]  ;;  %v3984_v59 = vld [vmem:[%s4499_s26 + $0x548] sm:$0xff] }
 0x4cc   : > { %v2131_v40 = vadd.f32 %v5462_v50, %v4707_v33  ;;  %v2172_v52 = vadd.f32 %v5464_v14, %v4707_v33  ;;  %v2198_v35 = vmax.f32 %v2137_v34, 0.0  ;;  %v2169_v50 = vadd.f32 %v5460_v42, %v4711_v38  ;;  %v3989_v42 = vld [vmem:[%s4499_s26 + $0x570] sm:$0xff]  ;;  %v3979_v34 = vld [vmem:[%s4499_s26 + $0x520] sm:$0xff] }
 0x4ce   : > { %v2194_v0 = vmax.f32 %v2131_v40, 0.0  ;;  %v3975_v40 = vld [vmem:[%s4499_s26 + $0x500] sm:$0xff] }
 0x4cf   : > { %v1864_v63 = vpop.f32.mrf.mxu0 }
 0x4d0   : > { %v1893_v55 = vpop.f32.mrf.mxu1  ;;  %v1865_v20 = vadd.f32 %v1864_v63, %v4753_v5  ;;  %v2187_v63 = vadd.f32 %v2186_v45, %v4691_v12  ;;  %v2181_v45 = vadd.f32 %v5480_v9, %v4693_v13  ;;  %v2175_v9 = vadd.f32 %v5468_v53, %v4703_v28 }
 0x4d1   : > { %v1894_v48 = vadd.f32 %v1893_v55, %v4753_v5  ;;  %v1896_v55 = vmax.f32 %v1856_v43, 0.0  ;;  %v2199_v43 = vmax.f32 %v2178_v4, 0.0  ;;  %v2196_v53 = vmax.f32 %v2134_v60, 0.0  ;;  %v3995_v4 = vld [vmem:[%s4499_s26 + $0x5a0] sm:$0xff]  ;;  %v3977_v60 = vld [vmem:[%s4499_s26 + $0x510] sm:$0xff] }
 0x4d2   : > { %v1902_v32 = vmax.f32 %v1865_v20, 0.0  ;;  %v2207_v20 = vmax.f32 %v2190_v62, 0.0  ;;  %v2205_v46 = vmax.f32 %v2187_v63, 0.0  ;;  %v2201_v49 = vmax.f32 %v2181_v45, 0.0  ;;  %v4005_v62 = vld [vmem:[%s4499_s26 + $0x5f0] sm:$0xff]  ;;  %v3986_v63 = vld [vmem:[%s4499_s26 + $0x558] sm:$0xff] }
 0x4d3   : > { %v1903_v47 = vmax.f32 %v1894_v48, 0.0  ;;  %v2204_v48 = vmax.f32 %v2146_v26, 0.0  ;;  %v2197_v14 = vmax.f32 %v2175_v9, 0.0  ;;  %v4003_v26 = vld [vmem:[%s4499_s26 + $0x5e0] sm:$0xff]  ;;  %v3981_v45 = vld [vmem:[%s4499_s26 + $0x530] sm:$0xff] }
 0x4d4   : > { %1916 = vmatpush.msra.mxu0 %v1902_v32  ;;  %v2203_v32 = vmax.f32 %v2184_v29, 0.0  ;;  %v4000_v29 = vld [vmem:[%s4499_s26 + $0x5c8] sm:$0xff]  ;;  %v3993_v9 = vld [vmem:[%s4499_s26 + $0x590] sm:$0xff] }
 0x4d5   : > { %1939 = vmatpush.msra.mxu1 %v1903_v47  ;;  %v2200_v47 = vmax.f32 %v2140_v58, 0.0  ;;  %v3998_v58 = vld [vmem:[%s4499_s26 + $0x5b8] sm:$0xff] }
 0x4d6   : > { %1917 = vmatpush.msra.mxu0 %v1900_v1  ;;  %v2195_v1 = vmax.f32 %v2172_v52, 0.0  ;;  %v3991_v52 = vld [vmem:[%s4499_s26 + $0x580] sm:$0xff] }
 0x4d7   : > { %1940 = vmatpush.msra.mxu1 %v1901_v16  ;;  %v2192_v16 = vmax.f32 %v2128_v41, 0.0  ;;  %v4082_v41 = vld [vmem:[%s4499_s26 + $0x670] sm:$0xff] }
 0x4d8   : > { %1918 = vmatpush.msra.mxu0 %v1898_v44  ;;  %v3988_v44 = vld [vmem:[%s4499_s26 + $0x568] sm:$0xff] }
 0x4d9   : > { %1941 = vmatpush.msra.mxu1 %v1899_v25  ;;  %v4004_v25 = vld [vmem:[%s4499_s26 + $0x5e8] sm:$0xff] }
 0x4da   : > { %1919 = vmatpush.msra.mxu0 %v1896_v55  ;;  %v4002_v55 = vld [vmem:[%s4499_s26 + $0x5d8] sm:$0xff] }
 0x4db   : > { %1942 = vmatpush.msra.mxu1 %v1897_v2  ;;  %3877 = vmatmul.msk.f32.vlgmr.msra.gmra.mxu0 %vm767_vm2, %v5412_v31  ;;  %v4001_v2 = vld [vmem:[%s4499_s26 + $0x5d0] sm:$0xff] }
 0x4dc   : > { %3879 = vmatmul.msk.f32.vlgmr.msra.gmra.mxu1 %vm767_vm2, %v5412_v31  ;;  %2216 = vmatpush.msrb.mxu0 %v2206_v3  ;;  %v3999_v3 = vld [vmem:[%s4499_s26 + $0x5c0] sm:$0xff] }
 0x4dd   : > { %2245 = vmatpush.msrb.mxu1 %v2207_v20  ;;  %v3982_v20 = vld [vmem:[%s4499_s26 + $0x538] sm:$0xff] }
 0x4de   : > { %2217 = vmatpush.msrb.mxu0 %v2204_v48  ;;  %v3997_v48 = vld [vmem:[%s4499_s26 + $0x5b0] sm:$0xff] }
 0x4df   : > { %2246 = vmatpush.msrb.mxu1 %v2205_v46  ;;  %v3996_v46 = vld [vmem:[%s4499_s26 + $0x5a8] sm:$0xff] }
 0x4e0   : > { %2218 = vmatpush.msrb.mxu0 %v2202_v15  ;;  %v3978_v15 = vld [vmem:[%s4499_s26 + $0x518] sm:$0xff] }
 0x4e1   : > { %2247 = vmatpush.msrb.mxu1 %v2203_v32  ;;  %v3994_v32 = vld [vmem:[%s4499_s26 + $0x598] sm:$0xff] }
 0x4e2   : > { %2219 = vmatpush.msrb.mxu0 %v2200_v47  ;;  %v3976_v47 = vld [vmem:[%s4499_s26 + $0x508] sm:$0xff] }
 0x4e3   : > { %2248 = vmatpush.msrb.mxu1 %v2201_v49  ;;  %3878 = vmatmul.msk.f32.gmra.mxu0 %vm767_vm2, %v5315_v57  ;;  %v3992_v49 = vld [vmem:[%s4499_s26 + $0x588] sm:$0xff] }
 0x4e4   : > { %3880 = vmatmul.msk.f32.gmra.mxu1 %vm767_vm2, %v5315_v57  ;;  %2220 = vmatpush.msrb.mxu0 %v2198_v35  ;;  %v2193_v57 = vmax.f32 %v2169_v50, 0.0  ;;  %v4083_v35 = vld [vmem:[%s4499_s26 + $0x678] sm:$0xff]  ;;  %v4098_v50 = vld [vmem:[%s4499_s26 + $0x6f0] sm:$0xff] }
 0x4e5   : > { %2249 = vmatpush.msrb.mxu1 %v2199_v43  ;;  %v4099_v43 = vld [vmem:[%s4499_s26 + $0x6f8] sm:$0xff] }
 0x4e6   : > { %2221 = vmatpush.msrb.mxu0 %v2196_v53  ;;  %v5623_v53 = vld [vmem:[%s6233_s1] sm:$0xff] }
 0x4e7   : > { %2250 = vmatpush.msrb.mxu1 %v2197_v14  ;;  %v4081_v14 = vld [vmem:[%s4499_s26 + $0x668] sm:$0xff] }
 0x4e8   : > { %2222 = vmatpush.msrb.mxu0 %v2194_v0  ;;  %v4097_v0 = vld [vmem:[%s4499_s26 + $0x6e8] sm:$0xff] }
 0x4e9   : > { %2251 = vmatpush.msrb.mxu1 %v2195_v1  ;;  %v4080_v1 = vld [vmem:[%s4499_s26 + $0x660] sm:$0xff] }
 0x4ea   : > { %2223 = vmatpush.msrb.mxu0 %v2192_v16  ;;  %v4096_v16 = vld [vmem:[%s4499_s26 + $0x6e0] sm:$0xff] }
 0x4eb   : > { %2252 = vmatpush.msrb.mxu1 %v2193_v57  ;;  %3962 = vmatmul.msk.f32.vlgmr.msrb.gmra.mxu0 %vm678_vm1, %v5328_v22  ;;  %v4079_v57 = vld [vmem:[%s4499_s26 + $0x658] sm:$0xff] }
 0x4ec   : > { %4007 = vmatpush.xpose.msk.msra.mxu0 %vm439_vm0, %v3990_v27  ;;  %3966 = vmatmul.msk.f32.vlgmr.msrb.gmra.mxu1 %vm678_vm1, %v5328_v22  ;;  %v3987_v22 = vld [vmem:[%s4499_s26 + $0x560] sm:$0xff]  ;;  %v4095_v27 = vld [vmem:[%s4499_s26 + $0x6d8] sm:$0xff] }
 0x4ed   : > { %4031 = vmatpush.xpose.msk.msra.mxu1 %vm439_vm0, %v4006_v10  ;;  %v4078_v10 = vld [vmem:[%s4499_s26 + $0x650] sm:$0xff] }
 0x4f0   : > { %4008 = vmatpush.xpose.msk.msra.mxu0 %vm439_vm0, %v3989_v42  ;;  %v4094_v42 = vld [vmem:[%s4499_s26 + $0x6d0] sm:$0xff] }
 0x4f1   : > { %4032 = vmatpush.xpose.msk.msra.mxu1 %vm439_vm0, %v4005_v62  ;;  %v4093_v62 = vld [vmem:[%s4499_s26 + $0x6c8] sm:$0xff] }
 0x4f3   : > { %3963 = vmatmul.msk.f32.gmra.mxu0 %vm678_vm1, %v5337_v24 }
 0x4f4   : > { %4009 = vmatpush.xpose.msk.msra.mxu0 %vm439_vm0, %v3988_v44  ;;  %3967 = vmatmul.msk.f32.gmra.mxu1 %vm678_vm1, %v5337_v24  ;;  %v3985_v24 = vld [vmem:[%s4499_s26 + $0x550] sm:$0xff]  ;;  %v4076_v44 = vld [vmem:[%s4499_s26 + $0x640] sm:$0xff] }
 0x4f5   : > { %4033 = vmatpush.xpose.msk.msra.mxu1 %vm439_vm0, %v4004_v25  ;;  %v4092_v25 = vld [vmem:[%s4499_s26 + $0x6c0] sm:$0xff] }
 0x4f8   : > { %4010 = vmatpush.xpose.msk.msra.mxu0 %vm439_vm0, %v3987_v22  ;;  %v4091_v22 = vld [vmem:[%s4499_s26 + $0x6b8] sm:$0xff] }
 0x4f9   : > { %4034 = vmatpush.xpose.msk.msra.mxu1 %vm439_vm0, %v4003_v26  ;;  %v4074_v26 = vld [vmem:[%s4499_s26 + $0x630] sm:$0xff] }
 0x4fb   : > { %3964 = vmatmul.msk.f32.gmra.mxu0 %vm678_vm1, %v5346_v17 }
 0x4fc   : > { %4011 = vmatpush.xpose.msk.msra.mxu0 %vm439_vm0, %v3986_v63  ;;  %3968 = vmatmul.msk.f32.gmra.mxu1 %vm678_vm1, %v5346_v17  ;;  %v3983_v17 = vld [vmem:[%s4499_s26 + $0x540] sm:$0xff]  ;;  %v4090_v63 = vld [vmem:[%s4499_s26 + $0x6b0] sm:$0xff] }
 0x4fd   : > { %4035 = vmatpush.xpose.msk.msra.mxu1 %vm439_vm0, %v4002_v55  ;;  %v5676_v55 = vld [vmem:[%s6233_s1 + $0x20] sm:$0xff] }
 0x500   : > { %4012 = vmatpush.xpose.msk.msra.mxu0 %vm439_vm0, %v3985_v24  ;;  %v4089_v24 = vld [vmem:[%s4499_s26 + $0x6a8] sm:$0xff] }
 0x501   : > { %4036 = vmatpush.xpose.msk.msra.mxu1 %vm439_vm0, %v4001_v2  ;;  %v4072_v2 = vld [vmem:[%s4499_s26 + $0x620] sm:$0xff] }
 0x503   : > { %3965 = vmatmul.msk.f32.gmra.mxu0 %vm678_vm1, %v5355_v19 }
 0x504   : > { %4013 = vmatpush.xpose.msk.msra.mxu0 %vm439_vm0, %v3984_v59  ;;  %3969 = vmatmul.msk.f32.gmra.mxu1 %vm678_vm1, %v5355_v19  ;;  %v3980_v19 = vld [vmem:[%s4499_s26 + $0x528] sm:$0xff]  ;;  %v4088_v59 = vld [vmem:[%s4499_s26 + $0x6a0] sm:$0xff] }
 0x505   : > { %4037 = vmatpush.xpose.msk.msra.mxu1 %vm439_vm0, %v4000_v29  ;;  %v5693_v29 = vld [vmem:[%s6233_s1 + $0x28] sm:$0xff] }
 0x508   : > { %4014 = vmatpush.xpose.msk.msra.mxu0 %vm439_vm0, %v3983_v17  ;;  %v4071_v17 = vld [vmem:[%s4499_s26 + $0x618] sm:$0xff] }
 0x509   : > { %4038 = vmatpush.xpose.msk.msra.mxu1 %vm439_vm0, %v3999_v3  ;;  %v4087_v3 = vld [vmem:[%s4499_s26 + $0x698] sm:$0xff] }
 0x50c   : > { %4015 = vmatpush.xpose.msk.msra.mxu0 %vm439_vm0, %v3982_v20 }
 0x50d   : > { %4039 = vmatpush.xpose.msk.msra.mxu1 %vm439_vm0, %v3998_v58 }
 0x510   : > { %4016 = vmatpush.xpose.msk.msra.mxu0 %vm439_vm0, %v3981_v45  ;;  %v4070_v45 = vld [vmem:[%s4499_s26 + $0x610] sm:$0xff] }
 0x511   : > { %4040 = vmatpush.xpose.msk.msra.mxu1 %vm439_vm0, %v3997_v48  ;;  %v4086_v48 = vld [vmem:[%s4499_s26 + $0x690] sm:$0xff] }
 0x514   : > { %4017 = vmatpush.xpose.msk.msra.mxu0 %vm439_vm0, %v3980_v19  ;;  %v5710_v19 = vld [vmem:[%s6233_s1 + $0x30] sm:$0xff] }
 0x515   : > { %4041 = vmatpush.xpose.msk.msra.mxu1 %vm439_vm0, %v3996_v46 }
 0x518   : > { %4018 = vmatpush.xpose.msk.msra.mxu0 %vm439_vm0, %v3979_v34 }
 0x519   : > { %4042 = vmatpush.xpose.msk.msra.mxu1 %vm439_vm0, %v3995_v4  ;;  %v4069_v4 = vld [vmem:[%s4499_s26 + $0x608] sm:$0xff] }
 0x51c   : > { %4019 = vmatpush.xpose.msk.msra.mxu0 %vm439_vm0, %v3978_v15  ;;  %v4085_v15 = vld [vmem:[%s4499_s26 + $0x688] sm:$0xff] }
 0x51d   : > { %4043 = vmatpush.xpose.msk.msra.mxu1 %vm439_vm0, %v3994_v32 }
 0x520   : > { %4020 = vmatpush.xpose.msk.msra.mxu0 %vm439_vm0, %v3977_v60 }
 0x521   : > { %4044 = vmatpush.xpose.msk.msra.mxu1 %vm439_vm0, %v3993_v9 }
 0x524   : > { %4021 = vmatpush.xpose.msk.msra.mxu0 %vm439_vm0, %v3976_v47 }
 0x525   : > { %4045 = vmatpush.xpose.msk.msra.mxu1 %vm439_vm0, %v3992_v49 }
 0x528   : > { %4022 = vmatpush.xpose.msk.msra.mxu0 %vm439_vm0, %v3975_v40 }
 0x529   : > { %4046 = vmatpush.xpose.msk.msra.mxu1 %vm439_vm0, %v3991_v52  ;;  %v4068_v52 = vld [vmem:[%s4499_s26 + $0x600] sm:$0xff] }
 0x52b   : > { %4023 = vmatmul.msk.f32.vlgmr.msra.gmra.mxu0 %vm439_vm0, %v5623_v53 }
 0x52c   : > { %4100 = vmatpush.xpose.msk.msrb.mxu0 %vm439_vm0, %v4083_v35  ;;  %4047 = vmatmul.msk.f32.vlgmr.msra.gmra.mxu1 %vm439_vm0, %v5623_v53  ;;  %v4084_v35 = vld [vmem:[%s4499_s26 + $0x680] sm:$0xff] }
 0x52d   : > { %4124 = vmatpush.xpose.msk.msrb.mxu1 %vm439_vm0, %v4099_v43  ;;  %v5731_v43 = vld [vmem:[%s6233_s1 + $0x38] sm:$0xff] }
 0x530   : > { %4101 = vmatpush.xpose.msk.msrb.mxu0 %vm439_vm0, %v4082_v41  ;;  %v4176_v41 = vld [vmem:[%s4499_s26 + $0x778] sm:$0xff] }
 0x531   : > { %4125 = vmatpush.xpose.msk.msrb.mxu1 %vm439_vm0, %v4098_v50  ;;  %v4192_v50 = vld [vmem:[%s4499_s26 + $0x7f8] sm:$0xff] }
 0x533   : > { %4024 = vmatmul.msk.f32.gmra.mxu0 %vm439_vm0, %v5210_v36 }
 0x534   : > { %4102 = vmatpush.xpose.msk.msrb.mxu0 %vm439_vm0, %v4081_v14  ;;  %4048 = vmatmul.msk.f32.gmra.mxu1 %vm439_vm0, %v5210_v36  ;;  %v4077_v36 = vld [vmem:[%s4499_s26 + $0x648] sm:$0xff] }
 0x535   : > { %4126 = vmatpush.xpose.msk.msrb.mxu1 %vm439_vm0, %v4097_v0 }
 0x538   : > { %4103 = vmatpush.xpose.msk.msrb.mxu0 %vm439_vm0, %v4080_v1 }
 0x539   : > { %4127 = vmatpush.xpose.msk.msrb.mxu1 %vm439_vm0, %v4096_v16 }
 0x53b   : > { %4025 = vmatmul.msk.f32.gmra.mxu0 %vm439_vm0, %v5223_v21 }
 0x53c   : > { %4104 = vmatpush.xpose.msk.msrb.mxu0 %vm439_vm0, %v4079_v57  ;;  %4049 = vmatmul.msk.f32.gmra.mxu1 %vm439_vm0, %v5223_v21  ;;  %v4075_v21 = vld [vmem:[%s4499_s26 + $0x638] sm:$0xff] }
 0x53d   : > { %4128 = vmatpush.xpose.msk.msrb.mxu1 %vm439_vm0, %v4095_v27 }
 0x540   : > { %4105 = vmatpush.xpose.msk.msrb.mxu0 %vm439_vm0, %v4078_v10  ;;  %v4175_v10 = vld [vmem:[%s4499_s26 + $0x770] sm:$0xff] }
 0x541   : > { %4129 = vmatpush.xpose.msk.msrb.mxu1 %vm439_vm0, %v4094_v42  ;;  %v4191_v42 = vld [vmem:[%s4499_s26 + $0x7f0] sm:$0xff] }
 0x543   : > { %4026 = vmatmul.msk.f32.gmra.mxu0 %vm439_vm0, %v5236_v61 }
 0x544   : > { %4106 = vmatpush.xpose.msk.msrb.mxu0 %vm439_vm0, %v4077_v36  ;;  %4050 = vmatmul.msk.f32.gmra.mxu1 %vm439_vm0, %v5236_v61  ;;  %v4073_v61 = vld [vmem:[%s4499_s26 + $0x628] sm:$0xff] }
 0x545   : > { %4130 = vmatpush.xpose.msk.msrb.mxu1 %vm439_vm0, %v4093_v62 }
 0x548   : > { %4107 = vmatpush.xpose.msk.msrb.mxu0 %vm439_vm0, %v4076_v44 }
 0x549   : > { %4131 = vmatpush.xpose.msk.msrb.mxu1 %vm439_vm0, %v4092_v25 }
 0x54b   : > { %4027 = vmatmul.msk.f32.gmra.mxu0 %vm439_vm0, %v5676_v55 }
 0x54c   : > { %4108 = vmatpush.xpose.msk.msrb.mxu0 %vm439_vm0, %v4075_v21  ;;  %4051 = vmatmul.msk.f32.gmra.mxu1 %vm439_vm0, %v5676_v55 }
 0x54d   : > { %4132 = vmatpush.xpose.msk.msrb.mxu1 %vm439_vm0, %v4091_v22 }
 0x550   : > { %4109 = vmatpush.xpose.msk.msrb.mxu0 %vm439_vm0, %v4074_v26  ;;  %v4174_v26 = vld [vmem:[%s4499_s26 + $0x768] sm:$0xff] }
 0x551   : > { %4133 = vmatpush.xpose.msk.msrb.mxu1 %vm439_vm0, %v4090_v63  ;;  %v4190_v63 = vld [vmem:[%s4499_s26 + $0x7e8] sm:$0xff] }
 0x553   : > { %4028 = vmatmul.msk.f32.gmra.mxu0 %vm439_vm0, %v5693_v29 }
 0x554   : > { %4110 = vmatpush.xpose.msk.msrb.mxu0 %vm439_vm0, %v4073_v61  ;;  %4052 = vmatmul.msk.f32.gmra.mxu1 %vm439_vm0, %v5693_v29 }
 0x555   : > { %4134 = vmatpush.xpose.msk.msrb.mxu1 %vm439_vm0, %v4089_v24 }
 0x558   : > { %4111 = vmatpush.xpose.msk.msrb.mxu0 %vm439_vm0, %v4072_v2  ;;  %v1921_v20 = vpop.f32.mrf.mxu0 }
 0x559   : > { %4135 = vmatpush.xpose.msk.msrb.mxu1 %vm439_vm0, %v4088_v59  ;;  %v1944_v58 = vpop.f32.mrf.mxu1  ;;  %v1922_v46 = vadd.f32 %v1921_v20, %v4961_v30 }
 0x55a   : > { %v1945_v34 = vadd.f32 %v1944_v58, %v4961_v30 }
 0x55b   : > { %4029 = vmatmul.msk.f32.gmra.mxu0 %vm439_vm0, %v5710_v19  ;;  %v1950_v32 = vmax.f32 %v1922_v46, 0.0 }
 0x55c   : > { %4112 = vmatpush.xpose.msk.msrb.mxu0 %vm439_vm0, %v4071_v17  ;;  %4053 = vmatmul.msk.f32.gmra.mxu1 %vm439_vm0, %v5710_v19  ;;  %v1951_v47 = vmax.f32 %v1945_v34, 0.0  ;;  %v4173_v17 = vld [vmem:[%s4499_s26 + $0x760] sm:$0xff] }
 0x55d   : > { %4136 = vmatpush.xpose.msk.msrb.mxu1 %vm439_vm0, %v4087_v3  ;;  %v1954_v1 = vmul.f32 %v1950_v32, %v4981_v51  ;;  %v4189_v3 = vld [vmem:[%s4499_s26 + $0x7e0] sm:$0xff]  ;;  %v4188_v32 = vld [vmem:[%s4499_s26 + $0x7d8] sm:$0xff] }
 0x55e   : > { %v1955_v16 = vmul.f32 %v1951_v47, %v4981_v51 }
 0x560   : > { %4113 = vmatpush.xpose.msk.msrb.mxu0 %vm439_vm0, %v4070_v45  ;;  %v1924_v60 = vpop.f32.mrf.mxu0 }
 0x561   : > { %4137 = vmatpush.xpose.msk.msrb.mxu1 %vm439_vm0, %v4086_v48  ;;  %v1947_v9 = vpop.f32.mrf.mxu1  ;;  %v1925_v49 = vadd.f32 %v1924_v60, %v4973_v37 }
 0x562   : > { %v1948_v40 = vadd.f32 %v1947_v9, %v4973_v37 }
 0x563   : > { %4030 = vmatmul.msk.f32.gmra.mxu0 %vm439_vm0, %v5731_v43  ;;  %v1952_v14 = vmax.f32 %v1925_v49, 0.0  ;;  %v4171_v49 = vld [vmem:[%s4499_s26 + $0x750] sm:$0xff] }
 0x564   : > { %4114 = vmatpush.xpose.msk.msrb.mxu0 %vm439_vm0, %v4069_v4  ;;  %4054 = vmatmul.msk.f32.gmra.mxu1 %vm439_vm0, %v5731_v43  ;;  %v1953_v0 = vmax.f32 %v1948_v40, 0.0  ;;  %v5770_v4 = vld [vmem:[%s6233_s1 + $0x8] sm:$0xff]  ;;  %v4187_v40 = vld [vmem:[%s4499_s26 + $0x7d0] sm:$0xff] }
 0x565   : > { %4138 = vmatpush.xpose.msk.msrb.mxu1 %vm439_vm0, %v4085_v15  ;;  %v1956_v57 = vmul.f32 %v1952_v14, %v4983_v56  ;;  %v4172_v15 = vld [vmem:[%s4499_s26 + $0x758] sm:$0xff] }
 0x566   : > { %v1957_v27 = vmul.f32 %v1953_v0, %v4983_v56  ;;  %v5793_v0 = vld [vmem:[%s6233_s1 + $0x10] sm:$0xff] }
 0x567   : > { %v1958_v36 = vadd.f32 %v1956_v57, %v1954_v1  ;;  %v4170_v1 = vld [vmem:[%s4499_s26 + $0x748] sm:$0xff]  ;;  %v4169_v57 = vld [vmem:[%s4499_s26 + $0x740] sm:$0xff] }
 0x568   : > { %4115 = vmatpush.xpose.msk.msrb.mxu0 %vm439_vm0, %v4068_v52  ;;  %v1965_v62 = vadd.f32 %v1957_v27, %v1955_v16  ;;  %v5749_v21 = vpop.f32.mrf.mxu0  ;;  %v4186_v16 = vld [vmem:[%s4499_s26 + $0x7c8] sm:$0xff]  ;;  %v4185_v27 = vld [vmem:[%s4499_s26 + $0x7c0] sm:$0xff] }
 0x569   : > { %4139 = vmatpush.xpose.msk.msrb.mxu1 %vm439_vm0, %v4084_v35  ;;  %v1959_v44 = vrot.slane %v1958_v36, 4  ;;  %v5751_v22 = vpop.f32.mrf.mxu1 }
 0x56a   : > { %v1966_v25 = vrot.slane %v1965_v62, 4 }
 0x56b   : > { %4116 = vmatmul.msk.f32.vlgmr.msrb.gmra.mxu0 %vm439_vm0, %v5623_v53  ;;  %v1960_v61 = vadd.f32 %v1959_v44, %v1958_v36 }
 0x56c   : > { %4193 = vmatpush.xpose.msk.msra.mxu0 %vm439_vm0, %v4176_v41  ;;  %4140 = vmatmul.msk.f32.vlgmr.msrb.gmra.mxu1 %vm439_vm0, %v5623_v53  ;;  %v1967_v24 = vadd.f32 %v1966_v25, %v1965_v62 }
 0x56d   : > { %4217 = vmatpush.xpose.msk.msra.mxu1 %vm439_vm0, %v4192_v50  ;;  %v1961_v2 = vrot.slane %v1960_v61, 2 }
 0x56e   : > { %v1968_v59 = vrot.slane %v1967_v24, 2 }
 0x56f   : > { %v1962_v20 = vadd.f32 %v1961_v2, %v1960_v61  ;;  %v4184_v61 = vld [vmem:[%s4499_s26 + $0x7b8] sm:$0xff] }
 0x570   : > { %4194 = vmatpush.xpose.msk.msra.mxu0 %vm439_vm0, %v4175_v10  ;;  %v1969_v58 = vadd.f32 %v1968_v59, %v1967_v24  ;;  %v2228_v46 = vpop.f32.mrf.mxu0 }
 0x571   : > { %4218 = vmatpush.xpose.msk.msra.mxu1 %vm439_vm0, %v4191_v42  ;;  %v1963_v45 = vrot.slane %v1962_v20, 1  ;;  %v2257_v34 = vpop.f32.mrf.mxu1  ;;  %v2229_v24 = vadd.f32 %v2228_v46, %v4761_v18  ;;  %v4183_v46 = vld [vmem:[%s4499_s26 + $0x7b0] sm:$0xff] }
 0x572   : > { %v1970_v48 = vrot.slane %v1969_v58, 1  ;;  %v2258_v2 = vadd.f32 %v2257_v34, %v4761_v18 }
 0x573   : > { %4117 = vmatmul.msk.f32.gmra.mxu0 %vm439_vm0, %v5770_v4  ;;  %v1964_v60 = vadd.f32 %v1963_v45, %v1962_v20  ;;  %v2255_v20 = vadd.f32 %v5751_v22, %v4765_v23  ;;  %v2268_v34 = vmax.f32 %v2229_v24, 0.0 }
 0x574   : > { %4195 = vmatpush.xpose.msk.msra.mxu0 %vm439_vm0, %v4174_v26  ;;  %4141 = vmatmul.msk.f32.gmra.mxu1 %vm439_vm0, %v5770_v4  ;;  %v1971_v9 = vadd.f32 %v1970_v48, %v1969_v58  ;;  %v5814_v26 = vld [vmem:[%s6233_s1 + $0x18] sm:$0xff]  ;;  %v4167_v48 = vld [vmem:[%s4499_s26 + $0x730] sm:$0xff] }
 0x575   : > { %4219 = vmatpush.xpose.msk.msra.mxu1 %vm439_vm0, %v4190_v63  ;;  %v1972_v52 = vadd.f32 %v1964_v60, %v5014_v39  ;;  %v4168_v63 = vld [vmem:[%s4499_s26 + $0x738] sm:$0xff]  ;;  %v2267_v22 = vmax.f32 %v2255_v20, 0.0  ;;  %v4182_v60 = vld [vmem:[%s4499_s26 + $0x7a8] sm:$0xff] }
 0x576   : > { %v1973_v47 = vadd.f32 %v1971_v9, %v5014_v39  ;;  %v4165_v9 = vld [vmem:[%s4499_s26 + $0x720] sm:$0xff] }
 0x578   : > { %4196 = vmatpush.xpose.msk.msra.mxu0 %vm439_vm0, %v4173_v17  ;;  %v1976_v35 = vrot.slane %v1973_v47, 7  ;;  %v2231_v50 = vpop.f32.mrf.mxu0  ;;  %v4181_v47 = vld [vmem:[%s4499_s26 + $0x7a0] sm:$0xff] }
 0x579   : > { %4220 = vmatpush.xpose.msk.msra.mxu1 %vm439_vm0, %v4189_v3  ;;  %v2260_v14 = vpop.f32.mrf.mxu1  ;;  %v2232_v10 = vadd.f32 %v2231_v50, %v4755_v6  ;;  %v2226_v3 = vadd.f32 %v5749_v21, %v4765_v23  ;;  %v4178_v50 = vld [vmem:[%s4499_s26 + $0x788] sm:$0xff] }
 0x57a   : > { %v1977_v41 = vsel %vm863_vm3, %v1972_v52, %v1976_v35  ;;  %v2261_v62 = vadd.f32 %v2260_v14, %v4755_v6  ;;  %v4163_v52 = vld [vmem:[%s4499_s26 + $0x710] sm:$0xff]  ;;  %v4161_v14 = vld [vmem:[%s4499_s26 + $0x700] sm:$0xff] }
 0x57b   : > { %3881 = vst.msk [vmem:[%s5037_s29 + $0x6] sm:$0x3] %vm5028_vm4, %v1977_v41  ;;  %4118 = vmatmul.msk.f32.gmra.mxu0 %vm439_vm0, %v5793_v0  ;;  %v2270_v58 = vmax.f32 %v2232_v10, 0.0  ;;  %v2266_v21 = vmax.f32 %v2226_v3, 0.0  ;;  %v4179_v35 = vld [vmem:[%s4499_s26 + $0x790] sm:$0xff]  ;;  %v4162_v41 = vld [vmem:[%s4499_s26 + $0x708] sm:$0xff] }
 0x57c   : > { %4197 = vmatpush.xpose.msk.msra.mxu0 %vm439_vm0, %v4172_v15  ;;  %4142 = vmatmul.msk.f32.gmra.mxu1 %vm439_vm0, %v5793_v0  ;;  %v2271_v45 = vmax.f32 %v2261_v62, 0.0  ;;  %v2269_v15 = vmax.f32 %v2258_v2, 0.0 }
 0x57d   : > { %4221 = vmatpush.xpose.msk.msra.mxu1 %vm439_vm0, %v4188_v32  ;;  %v4166_v32 = vld [vmem:[%s4499_s26 + $0x728] sm:$0xff] }
 0x580   : > { %4198 = vmatpush.xpose.msk.msra.mxu0 %vm439_vm0, %v4171_v49  ;;  %v2234_v42 = vpop.f32.mrf.mxu0  ;;  %v4180_v49 = vld [vmem:[%s4499_s26 + $0x798] sm:$0xff] }
 0x581   : > { %4222 = vmatpush.xpose.msk.msra.mxu1 %vm439_vm0, %v4187_v40  ;;  %v2263_v36 = vpop.f32.mrf.mxu1  ;;  %v2235_v44 = vadd.f32 %v2234_v42, %v4753_v5  ;;  %v5859_v40 = vld [vmem:[%s6237_s5 + $0x8] sm:$0xff] }
 0x582   : > { %v2264_v25 = vadd.f32 %v2263_v36, %v4753_v5 }
 0x583   : > { %4119 = vmatmul.msk.f32.gmra.mxu0 %vm439_vm0, %v5814_v26  ;;  %v2272_v59 = vmax.f32 %v2235_v44, 0.0 }
 0x584   : > { %4199 = vmatpush.xpose.msk.msra.mxu0 %vm439_vm0, %v4170_v1  ;;  %4143 = vmatmul.msk.f32.gmra.mxu1 %vm439_vm0, %v5814_v26  ;;  %v2273_v17 = vmax.f32 %v2264_v25, 0.0  ;;  %v4177_v1 = vld [vmem:[%s4499_s26 + $0x780] sm:$0xff] }
 0x585   : > { %4223 = vmatpush.xpose.msk.msra.mxu1 %vm439_vm0, %v4186_v16  ;;  %2286 = vmatpush.msra.mxu2 %v2272_v59 }
 0x586   : > { %2309 = vmatpush.msra.mxu3 %v2273_v17 }
 0x587   : > { %2287 = vmatpush.msra.mxu2 %v2270_v58 }
 0x588   : > { %4200 = vmatpush.xpose.msk.msra.mxu0 %vm439_vm0, %v4169_v57  ;;  %2310 = vmatpush.msra.mxu3 %v2271_v45 }
 0x589   : > { %4224 = vmatpush.xpose.msk.msra.mxu1 %vm439_vm0, %v4185_v27  ;;  %2288 = vmatpush.msra.mxu2 %v2268_v34 }
 0x58a   : > { %2311 = vmatpush.msra.mxu3 %v2269_v15 }
 0x58b   : > { %4120 = vmatmul.msk.f32.gmra.mxu0 %vm439_vm0, %v5676_v55  ;;  %2289 = vmatpush.msra.mxu2 %v2266_v21 }
 0x58c   : > { %4201 = vmatpush.xpose.msk.msra.mxu0 %vm439_vm0, %v4168_v63  ;;  %4144 = vmatmul.msk.f32.gmra.mxu1 %vm439_vm0, %v5676_v55 }
 0x58d   : > { %4225 = vmatpush.xpose.msk.msra.mxu1 %vm439_vm0, %v4184_v61  ;;  %2312 = vmatpush.msra.mxu3 %v2267_v22 }
 0x58e   : > { %3970 = vmatmul.msk.f32.vlgmr.msra.gmra.mxu2 %vm767_vm2, %v5412_v31  ;;  %3972 = vmatmul.msk.f32.vlgmr.msra.gmra.mxu3 %vm767_vm2, %v5412_v31  ;;  %v4164_v31 = vld [vmem:[%s4499_s26 + $0x718] sm:$0xff] }
 0x590   : > { %4202 = vmatpush.xpose.msk.msra.mxu0 %vm439_vm0, %v4167_v48 }
 0x591   : > { %4226 = vmatpush.xpose.msk.msra.mxu1 %vm439_vm0, %v4183_v46 }
 0x593   : > { %4121 = vmatmul.msk.f32.gmra.mxu0 %vm439_vm0, %v5693_v29 }
 0x594   : > { %4203 = vmatpush.xpose.msk.msra.mxu0 %vm439_vm0, %v4166_v32  ;;  %4145 = vmatmul.msk.f32.gmra.mxu1 %vm439_vm0, %v5693_v29 }
 0x595   : > { %4227 = vmatpush.xpose.msk.msra.mxu1 %vm439_vm0, %v4182_v60 }
 0x596   : > { %3971 = vmatmul.msk.f32.gmra.mxu2 %vm767_vm2, %v5859_v40  ;;  %3973 = vmatmul.msk.f32.gmra.mxu3 %vm767_vm2, %v5859_v40 }
 0x598   : > { %4204 = vmatpush.xpose.msk.msra.mxu0 %vm439_vm0, %v4165_v9 }
 0x599   : > { %4228 = vmatpush.xpose.msk.msra.mxu1 %vm439_vm0, %v4181_v47 }
 0x59b   : > { %4122 = vmatmul.msk.f32.gmra.mxu0 %vm439_vm0, %v5710_v19 }
 0x59c   : > { %4205 = vmatpush.xpose.msk.msra.mxu0 %vm439_vm0, %v4164_v31  ;;  %4146 = vmatmul.msk.f32.gmra.mxu1 %vm439_vm0, %v5710_v19 }
 0x59d   : > { %4229 = vmatpush.xpose.msk.msra.mxu1 %vm439_vm0, %v4180_v49 }
 0x5a0   : > { %4206 = vmatpush.xpose.msk.msra.mxu0 %vm439_vm0, %v4163_v52 }
 0x5a1   : > { %4230 = vmatpush.xpose.msk.msra.mxu1 %vm439_vm0, %v4179_v35 }
 0x5a3   : > { %4123 = vmatmul.msk.f32.gmra.mxu0 %vm439_vm0, %v5731_v43 }
 0x5a4   : > { %4207 = vmatpush.xpose.msk.msra.mxu0 %vm439_vm0, %v4162_v41  ;;  %4147 = vmatmul.msk.f32.gmra.mxu1 %vm439_vm0, %v5731_v43 }
 0x5a5   : > { %4231 = vmatpush.xpose.msk.msra.mxu1 %vm439_vm0, %v4178_v50 }
 0x5a8   : > { %4208 = vmatpush.xpose.msk.msra.mxu0 %vm439_vm0, %v4161_v14  ;;  %v5887_v16 = vpop.f32.mrf.mxu0 }
 0x5a9   : > { %4232 = vmatpush.xpose.msk.msra.mxu1 %vm439_vm0, %v4177_v1  ;;  %v5889_v57 = vpop.f32.mrf.mxu1  ;;  %v2498_v35 = vadd.f32 %v5887_v16, %v4711_v38  ;;  %v5944_v16 = vld [vmem:[%s6235_s3] sm:$0xff] }
 0x5aa   : > { %v2539_v41 = vadd.f32 %v5889_v57, %v4711_v38  ;;  %v5953_v57 = vld [vmem:[%s6235_s3 + $0x8] sm:$0xff] }
 0x5ab   : > { %4209 = vmatmul.msk.f32.vlgmr.msra.gmra.mxu0 %vm439_vm0, %v5623_v53 }
 0x5ac   : > { %4233 = vmatmul.msk.f32.vlgmr.msra.gmra.mxu1 %vm439_vm0, %v5623_v53 }
 0x5b0   : > { %v2500_v27 = vpop.f32.mrf.mxu0 }
 0x5b1   : > { %v2541_v10 = vpop.f32.mrf.mxu1  ;;  %v2501_v47 = vadd.f32 %v2500_v27, %v4707_v33  ;;  %v2562_v27 = vmax.f32 %v2498_v35, 0.0 }
 0x5b2   : > { %v2542_v31 = vadd.f32 %v2541_v10, %v4707_v33  ;;  %v2563_v10 = vmax.f32 %v2539_v41, 0.0 }
 0x5b3   : > { %4210 = vmatmul.msk.f32.gmra.mxu0 %vm439_vm0, %v5770_v4  ;;  %v2564_v1 = vmax.f32 %v2501_v47, 0.0 }
 0x5b4   : > { %4234 = vmatmul.msk.f32.gmra.mxu1 %vm439_vm0, %v5770_v4 }
 0x5b8   : > { %v2503_v42 = vpop.f32.mrf.mxu0 }
 0x5b9   : > { %v2544_v36 = vpop.f32.mrf.mxu1  ;;  %v2504_v32 = vadd.f32 %v2503_v42, %v4703_v28  ;;  %v2565_v42 = vmax.f32 %v2542_v31, 0.0 }
 0x5bb   : > { %4211 = vmatmul.msk.f32.gmra.mxu0 %vm439_vm0, %v5793_v0  ;;  %v2566_v50 = vmax.f32 %v2504_v32, 0.0 }
 0x5bc   : > { %4235 = vmatmul.msk.f32.gmra.mxu1 %vm439_vm0, %v5793_v0 }
 0x5c0   : > { %v2506_v62 = vpop.f32.mrf.mxu0 }
 0x5c1   : > { %v2547_v44 = vpop.f32.mrf.mxu1  ;;  %v2507_v34 = vadd.f32 %v2506_v62, %v4689_v11  ;;  %v5971_v62 = vld [vmem:[%s6235_s3 + $0x18] sm:$0xff] }
 0x5c2   : > { %v2548_v15 = vadd.f32 %v2547_v44, %v4689_v11 }
 0x5c3   : > { %4212 = vmatmul.msk.f32.gmra.mxu0 %vm439_vm0, %v5814_v26  ;;  %v2568_v49 = vmax.f32 %v2507_v34, 0.0 }
 0x5c4   : > { %4236 = vmatmul.msk.f32.gmra.mxu1 %vm439_vm0, %v5814_v26  ;;  %v2569_v52 = vmax.f32 %v2548_v15, 0.0 }
 0x5c8   : > { %v2509_v53 = vpop.f32.mrf.mxu0 }
 0x5c9   : > { %v2550_v25 = vpop.f32.mrf.mxu1 }
 0x5ca   : > { %v2551_v45 = vadd.f32 %v2550_v25, %v4693_v13 }
 0x5cb   : > { %4213 = vmatmul.msk.f32.gmra.mxu0 %vm439_vm0, %v5676_v55 }
 0x5cc   : > { %4237 = vmatmul.msk.f32.gmra.mxu1 %vm439_vm0, %v5676_v55  ;;  %v2571_v9 = vmax.f32 %v2551_v45, 0.0 }
 0x5d0   : > { %v2512_v4 = vpop.f32.mrf.mxu0 }
 0x5d1   : > { %v2553_v63 = vpop.f32.mrf.mxu1 }
 0x5d2   : > { %v2554_v3 = vadd.f32 %v2553_v63, %v4687_v8 }
 0x5d3   : > { %4214 = vmatmul.msk.f32.gmra.mxu0 %vm439_vm0, %v5693_v29 }
 0x5d4   : > { %4238 = vmatmul.msk.f32.gmra.mxu1 %vm439_vm0, %v5693_v29  ;;  %v2513_v29 = vadd.f32 %v2512_v4, %v4687_v8  ;;  %v2573_v22 = vmax.f32 %v2554_v3, 0.0 }
 0x5d6   : > { %v2572_v21 = vmax.f32 %v2513_v29, 0.0 }
 0x5d8   : > { %v2515_v0 = vpop.f32.mrf.mxu0 }
 0x5d9   : > { %v2556_v61 = vpop.f32.mrf.mxu1  ;;  %v2516_v55 = vadd.f32 %v2515_v0, %v4691_v12 }
 0x5da   : > { %v2557_v2 = vadd.f32 %v2556_v61, %v4691_v12 }
 0x5db   : > { %4215 = vmatmul.msk.f32.gmra.mxu0 %vm439_vm0, %v5710_v19  ;;  %v2574_v48 = vmax.f32 %v2516_v55, 0.0 }
 0x5dc   : > { %4239 = vmatmul.msk.f32.gmra.mxu1 %vm439_vm0, %v5710_v19  ;;  %v2510_v19 = vadd.f32 %v2509_v53, %v4693_v13  ;;  %v2575_v46 = vmax.f32 %v2557_v2, 0.0 }
 0x5de   : > { %v2570_v60 = vmax.f32 %v2510_v19, 0.0 }
 0x5e0   : > { %v2518_v26 = vpop.f32.mrf.mxu0 }
 0x5e1   : > { %v2559_v24 = vpop.f32.mrf.mxu1  ;;  %v2519_v59 = vadd.f32 %v2518_v26, %v4685_v7 }
 0x5e2   : > { %v2560_v17 = vadd.f32 %v2559_v24, %v4685_v7 }
 0x5e3   : > { %v2576_v20 = vmax.f32 %v2519_v59, 0.0  ;;  %4216 = vmatmul.msk.f32.gmra.mxu0 %vm439_vm0, %v5731_v43 }
 0x5e4   : > { %v2577_v58 = vmax.f32 %v2560_v17, 0.0  ;;  %4240 = vmatmul.msk.f32.gmra.mxu1 %vm439_vm0, %v5731_v43  ;;  %v2545_v43 = vadd.f32 %v2544_v36, %v4703_v28  ;;  %v5962_v36 = vld [vmem:[%s6235_s3 + $0x10] sm:$0xff] }
 0x5e5   : > { %2586 = vmatpush.msrb.mxu2 %v2576_v20 }
 0x5e6   : > { %2615 = vmatpush.msrb.mxu3 %v2577_v58  ;;  %v2567_v14 = vmax.f32 %v2545_v43, 0.0 }
 0x5e7   : > { %2587 = vmatpush.msrb.mxu2 %v2574_v48 }
 0x5e8   : > { %2616 = vmatpush.msrb.mxu3 %v2575_v46  ;;  %v5991_v41 = vpop.f32.mrf.mxu0 }
 0x5e9   : > { %2588 = vmatpush.msrb.mxu2 %v2572_v21 }
 0x5ea   : > { %2617 = vmatpush.msrb.mxu3 %v2573_v22 }
 0x5eb   : > { %2589 = vmatpush.msrb.mxu2 %v2570_v60 }
 0x5ec   : > { %2618 = vmatpush.msrb.mxu3 %v2571_v9 }
 0x5ed   : > { %2590 = vmatpush.msrb.mxu2 %v2568_v49 }
 0x5ee   : > { %2619 = vmatpush.msrb.mxu3 %v2569_v52 }
 0x5ef   : > { %2591 = vmatpush.msrb.mxu2 %v2566_v50  ;;  %v5993_v50 = vpop.f32.mrf.mxu1 }
 0x5f0   : > { %2620 = vmatpush.msrb.mxu3 %v2567_v14  ;;  %v5995_v14 = vpop.f32.mrf.mxu0 }
 0x5f1   : > { %2592 = vmatpush.msrb.mxu2 %v2564_v1 }
 0x5f2   : > { %2621 = vmatpush.msrb.mxu3 %v2565_v42 }
 0x5f3   : > { %2593 = vmatpush.msrb.mxu2 %v2562_v27 }
 0x5f4   : > { %2622 = vmatpush.msrb.mxu3 %v2563_v10  ;;  %4055 = vmatmul.msk.f32.vlgmr.msrb.gmra.mxu2 %vm678_vm1, %v5944_v16 }
 0x5f5   : > { %4059 = vmatmul.msk.f32.vlgmr.msrb.gmra.mxu3 %vm678_vm1, %v5944_v16 }
 0x5f7   : > { %v5997_v1 = vpop.f32.mrf.mxu1 }
 0x5f8   : > { %v5999_v42 = vpop.f32.mrf.mxu0 }
 0x5fc   : > { %4056 = vmatmul.msk.f32.gmra.mxu2 %vm678_vm1, %v5953_v57 }
 0x5fd   : > { %4060 = vmatmul.msk.f32.gmra.mxu3 %vm678_vm1, %v5953_v57 }
 0x5ff   : > { %v6001_v27 = vpop.f32.mrf.mxu1 }
 0x600   : > { %v2876_v10 = vpop.f32.mrf.mxu0 }
 0x604   : > { %4057 = vmatmul.msk.f32.gmra.mxu2 %vm678_vm1, %v5962_v36 }
 0x605   : > { %4061 = vmatmul.msk.f32.gmra.mxu3 %vm678_vm1, %v5962_v36 }
 0x60c   : > { %4058 = vmatmul.msk.f32.gmra.mxu2 %vm678_vm1, %v5971_v62 }
 0x60d   : > { %4062 = vmatmul.msk.f32.gmra.mxu3 %vm678_vm1, %v5971_v62 }
 0x611   : > { %v2291_v44 = vpop.f32.mrf.mxu2  ;;  %v2314_v53 = vpop.f32.mrf.mxu3 }
 0x612   : > { %v2292_v25 = vadd.f32 %v2291_v44, %v4961_v30  ;;  %v2315_v4 = vadd.f32 %v2314_v53, %v4961_v30  ;;  %v2917_v44 = vpop.f32.mrf.mxu1  ;;  %v2879_v53 = vpop.f32.mrf.mxu0 }
 0x614   : > { %v2320_v61 = vmax.f32 %v2292_v25, 0.0  ;;  %v2321_v26 = vmax.f32 %v2315_v4, 0.0 }
 0x616   : > { %v2324_v17 = vmul.f32 %v2320_v61, %v4981_v51  ;;  %v2325_v29 = vmul.f32 %v2321_v26, %v4981_v51 }
 0x619   : > { %v2294_v63 = vpop.f32.mrf.mxu2  ;;  %v2317_v0 = vpop.f32.mrf.mxu3 }
 0x61a   : > { %v2295_v24 = vadd.f32 %v2294_v63, %v4973_v37  ;;  %v2318_v55 = vadd.f32 %v2317_v0, %v4973_v37  ;;  %v2920_v25 = vpop.f32.mrf.mxu1  ;;  %v2882_v0 = vpop.f32.mrf.mxu0 }
 0x61c   : > { %v2322_v2 = vmax.f32 %v2295_v24, 0.0  ;;  %v2323_v59 = vmax.f32 %v2318_v55, 0.0 }
 0x61e   : > { %v2326_v3 = vmul.f32 %v2322_v2, %v4983_v56  ;;  %v2327_v20 = vmul.f32 %v2323_v59, %v4983_v56 }
 0x620   : > { %v2328_v58 = vadd.f32 %v2326_v3, %v2324_v17  ;;  %v2335_v19 = vadd.f32 %v2327_v20, %v2325_v29 }
 0x622   : > { %v2329_v45 = vrot.slane %v2328_v58, 4  ;;  %v2336_v48 = vrot.slane %v2335_v19, 4  ;;  %v2923_v61 = vpop.f32.mrf.mxu1  ;;  %v2885_v59 = vpop.f32.mrf.mxu0 }
 0x624   : > { %v2330_v46 = vadd.f32 %v2329_v45, %v2328_v58  ;;  %v2337_v34 = vadd.f32 %v2336_v48, %v2335_v19 }
 0x626   : > { %v2331_v15 = vrot.slane %v2330_v46, 2  ;;  %v2338_v21 = vrot.slane %v2337_v34, 2 }
 0x628   : > { %v2332_v22 = vadd.f32 %v2331_v15, %v2330_v46  ;;  %v2339_v32 = vadd.f32 %v2338_v21, %v2337_v34 }
 0x62a   : > { %v2333_v43 = vrot.slane %v2332_v22, 1  ;;  %v2340_v60 = vrot.slane %v2339_v32, 1  ;;  %v2926_v17 = vpop.f32.mrf.mxu1  ;;  %v2888_v21 = vpop.f32.mrf.mxu0 }
 0x62c   : > { %v2334_v9 = vadd.f32 %v2333_v43, %v2332_v22  ;;  %v2341_v47 = vadd.f32 %v2340_v60, %v2339_v32 }
 0x62e   : > { %v2343_v31 = vadd.f32 %v2341_v47, %v5014_v39  ;;  %v2342_v49 = vadd.f32 %v2334_v9, %v5014_v39  ;;  %v2889_v47 = vadd.f32 %v2888_v21, %v4685_v7 }
 0x630   : > { %v2346_v52 = vrot.slane %v2343_v31, 7 }
 0x632   : > { %v2347_v35 = vsel %vm863_vm3, %v2342_v49, %v2346_v52  ;;  %v2929_v22 = vpop.f32.mrf.mxu1 }
 0x633   : > { %3974 = vst.msk [vmem:[%s5037_s29 + $0x8] sm:$0x3] %vm5028_vm4, %v2347_v35  ;;  %v2930_v31 = vadd.f32 %v2929_v22, %v4685_v7  ;;  %v2886_v35 = vadd.f32 %v2885_v59, %v4691_v12  ;;  %v2880_v59 = vadd.f32 %v2879_v53, %v4693_v13  ;;  %v2915_v53 = vadd.f32 %v6001_v27, %v4703_v28 }
 0x634   : > { %v2909_v27 = vadd.f32 %v5993_v50, %v4711_v38 }
 0x635   : > { %v2937_v21 = vmax.f32 %v2915_v53, 0.0 }
 0x63a   : > { %v6064_v50 = vpop.f32.mrf.mxu1 }
 0x677   : > { %v2595_v4 = vpop.f32.mrf.mxu2 }
 0x678   : > { %v2624_v63 = vpop.f32.mrf.mxu3  ;;  %v2596_v32 = vadd.f32 %v2595_v4, %v4765_v23 }
 0x679   : > { %v2625_v43 = vadd.f32 %v2624_v63, %v4765_v23  ;;  %v2883_v63 = vadd.f32 %v2882_v0, %v4687_v8  ;;  %v2921_v0 = vadd.f32 %v2920_v25, %v4693_v13 }
 0x67b   : > { %v2637_v4 = vmax.f32 %v2625_v43, 0.0  ;;  %v2941_v25 = vmax.f32 %v2921_v0, 0.0  ;;  %v2933_v43 = vmax.f32 %v2909_v27, 0.0 }
 0x67f   : > { %v2598_v26 = vpop.f32.mrf.mxu2 }
 0x680   : > { %v2627_v24 = vpop.f32.mrf.mxu3  ;;  %v2599_v48 = vadd.f32 %v2598_v26, %v4761_v18  ;;  %v2927_v26 = vadd.f32 %v2926_v17, %v4691_v12 }
 0x681   : > { %v2628_v46 = vadd.f32 %v2627_v24, %v4761_v18  ;;  %v2636_v24 = vmax.f32 %v2596_v32, 0.0 }
 0x682   : > { %v2638_v49 = vmax.f32 %v2599_v48, 0.0  ;;  %v2945_v17 = vmax.f32 %v2927_v26, 0.0  ;;  %v2874_v48 = vadd.f32 %v5999_v42, %v4703_v28  ;;  %v2868_v42 = vadd.f32 %v5991_v41, %v4711_v38  ;;  %v6062_v41 = vpop.f32.mrf.mxu0 }
 0x683   : > { %v2639_v52 = vmax.f32 %v2628_v46, 0.0  ;;  %v2940_v46 = vmax.f32 %v2880_v59, 0.0 }
 0x684   : > { %v2932_v32 = vmax.f32 %v2868_v42, 0.0 }
 0x687   : > { %v2601_v55 = vpop.f32.mrf.mxu2 }
 0x688   : > { %v2630_v2 = vpop.f32.mrf.mxu3  ;;  %v2602_v20 = vadd.f32 %v2601_v55, %v4755_v6  ;;  %v2924_v55 = vadd.f32 %v2923_v61, %v4687_v8  ;;  %v2944_v61 = vmax.f32 %v2886_v35, 0.0 }
 0x689   : > { %v2631_v58 = vadd.f32 %v2630_v2, %v4755_v6  ;;  %v2946_v2 = vmax.f32 %v2889_v47, 0.0 }
 0x68a   : > { %v2640_v60 = vmax.f32 %v2602_v20, 0.0  ;;  %v2877_v20 = vadd.f32 %v2876_v10, %v4689_v11  ;;  %v2912_v10 = vadd.f32 %v5997_v1, %v4707_v33 }
 0x68b   : > { %v2641_v9 = vmax.f32 %v2631_v58, 0.0  ;;  %v2918_v58 = vadd.f32 %v2917_v44, %v4689_v11 }
 0x68c   : > { %v2938_v44 = vmax.f32 %v2877_v20, 0.0  ;;  %v2935_v22 = vmax.f32 %v2912_v10, 0.0 }
 0x68f   : > { %v2604_v29 = vpop.f32.mrf.mxu2 }
 0x690   : > { %v2633_v3 = vpop.f32.mrf.mxu3  ;;  %v2605_v19 = vadd.f32 %v2604_v29, %v4753_v5  ;;  %v2947_v29 = vmax.f32 %v2930_v31, 0.0 }
 0x691   : > { %v2634_v45 = vadd.f32 %v2633_v3, %v4753_v5  ;;  %v6020_v3 = vld [vmem:[%s6237_s5] sm:$0xff] }
 0x692   : > { %v2642_v34 = vmax.f32 %v2605_v19, 0.0  ;;  %v2942_v19 = vmax.f32 %v2883_v63, 0.0 }
 0x693   : > { %v2643_v15 = vmax.f32 %v2634_v45, 0.0  ;;  %v2943_v45 = vmax.f32 %v2924_v55, 0.0 }
 0x694   : > { %2656 = vmatpush.msra.mxu2 %v2642_v34  ;;  %v2871_v34 = vadd.f32 %v5995_v14, %v4707_v33  ;;  %v2936_v14 = vmax.f32 %v2874_v48, 0.0 }
 0x695   : > { %2679 = vmatpush.msra.mxu3 %v2643_v15  ;;  %v2939_v15 = vmax.f32 %v2918_v58, 0.0 }
 0x696   : > { %2657 = vmatpush.msra.mxu2 %v2640_v60  ;;  %v2934_v1 = vmax.f32 %v2871_v34, 0.0  ;;  %v6066_v60 = vpop.f32.mrf.mxu0 }
 0x697   : > { %2680 = vmatpush.msra.mxu3 %v2641_v9  ;;  %v6068_v9 = vpop.f32.mrf.mxu1 }
 0x698   : > { %2658 = vmatpush.msra.mxu2 %v2638_v49 }
 0x699   : > { %2681 = vmatpush.msra.mxu3 %v2639_v52 }
 0x69a   : > { %2659 = vmatpush.msra.mxu2 %v2636_v24 }
 0x69b   : > { %2682 = vmatpush.msra.mxu3 %v2637_v4  ;;  %4063 = vmatmul.msk.f32.vlgmr.msra.gmra.mxu2 %vm767_vm2, %v6020_v3 }
 0x69c   : > { %4065 = vmatmul.msk.f32.vlgmr.msra.gmra.mxu3 %vm767_vm2, %v6020_v3  ;;  %2956 = vmatpush.msrb.mxu2 %v2946_v2 }
 0x69d   : > { %2985 = vmatpush.msrb.mxu3 %v2947_v29 }
 0x69e   : > { %2957 = vmatpush.msrb.mxu2 %v2944_v61  ;;  %v6070_v47 = vpop.f32.mrf.mxu0 }
 0x69f   : > { %2986 = vmatpush.msrb.mxu3 %v2945_v17  ;;  %v6072_v31 = vpop.f32.mrf.mxu1 }
 0x6a0   : > { %2958 = vmatpush.msrb.mxu2 %v2942_v19 }
 0x6a1   : > { %2987 = vmatpush.msrb.mxu3 %v2943_v45 }
 0x6a2   : > { %2959 = vmatpush.msrb.mxu2 %v2940_v46 }
 0x6a3   : > { %2988 = vmatpush.msrb.mxu3 %v2941_v25  ;;  %4064 = vmatmul.msk.f32.gmra.mxu2 %vm767_vm2, %v5859_v40 }
 0x6a4   : > { %4066 = vmatmul.msk.f32.gmra.mxu3 %vm767_vm2, %v5859_v40  ;;  %2960 = vmatpush.msrb.mxu2 %v2938_v44 }
 0x6a5   : > { %2989 = vmatpush.msrb.mxu3 %v2939_v15 }
 0x6a6   : > { %2961 = vmatpush.msrb.mxu2 %v2936_v14  ;;  %v6074_v35 = vpop.f32.mrf.mxu0 }
 0x6a7   : > { %2990 = vmatpush.msrb.mxu3 %v2937_v21  ;;  %v6076_v26 = vpop.f32.mrf.mxu1 }
 0x6a8   : > { %2962 = vmatpush.msrb.mxu2 %v2934_v1 }
 0x6a9   : > { %2991 = vmatpush.msrb.mxu3 %v2935_v22 }
 0x6aa   : > { %2963 = vmatpush.msrb.mxu2 %v2932_v32 }
 0x6ab   : > { %2992 = vmatpush.msrb.mxu3 %v2933_v43  ;;  %4148 = vmatmul.msk.f32.vlgmr.msrb.gmra.mxu2 %vm678_vm1, %v5944_v16 }
 0x6ac   : > { %4152 = vmatmul.msk.f32.vlgmr.msrb.gmra.mxu3 %vm678_vm1, %v5944_v16 }
 0x6ae   : > { %v6082_v20 = vpop.f32.mrf.mxu0 }
 0x6af   : > { %v6084_v58 = vpop.f32.mrf.mxu1 }
 0x6b3   : > { %4149 = vmatmul.msk.f32.gmra.mxu2 %vm678_vm1, %v5953_v57 }
 0x6b4   : > { %4153 = vmatmul.msk.f32.gmra.mxu3 %vm678_vm1, %v5953_v57 }
 0x6b6   : > { %v3252_v1 = vpop.f32.mrf.mxu0 }
 0x6b7   : > { %v3293_v22 = vpop.f32.mrf.mxu1 }
 0x6bb   : > { %4150 = vmatmul.msk.f32.gmra.mxu2 %vm678_vm1, %v5962_v36 }
 0x6bc   : > { %4154 = vmatmul.msk.f32.gmra.mxu3 %vm678_vm1, %v5962_v36 }
 0x6c3   : > { %4151 = vmatmul.msk.f32.gmra.mxu2 %vm678_vm1, %v5971_v62 }
 0x6c4   : > { %4155 = vmatmul.msk.f32.gmra.mxu3 %vm678_vm1, %v5971_v62 }
 0x71e   : > { %v2661_v49 = vpop.f32.mrf.mxu2 }
 0x71f   : > { %v2684_v52 = vpop.f32.mrf.mxu3  ;;  %v2662_v24 = vadd.f32 %v2661_v49, %v4961_v30 }
 0x720   : > { %v2685_v4 = vadd.f32 %v2684_v52, %v4961_v30 }
 0x721   : > { %v2690_v2 = vmax.f32 %v2662_v24, 0.0 }
 0x722   : > { %v2691_v29 = vmax.f32 %v2685_v4, 0.0 }
 0x723   : > { %v2694_v19 = vmul.f32 %v2690_v2, %v4981_v51 }
 0x724   : > { %v2695_v45 = vmul.f32 %v2691_v29, %v4981_v51 }
 0x726   : > { %v2664_v63 = vpop.f32.mrf.mxu2 }
 0x727   : > { %v2687_v55 = vpop.f32.mrf.mxu3  ;;  %v2665_v59 = vadd.f32 %v2664_v63, %v4973_v37 }
 0x728   : > { %v2688_v0 = vadd.f32 %v2687_v55, %v4973_v37 }
 0x729   : > { %v2692_v61 = vmax.f32 %v2665_v59, 0.0 }
 0x72a   : > { %v2693_v17 = vmax.f32 %v2688_v0, 0.0 }
 0x72b   : > { %v2696_v48 = vmul.f32 %v2692_v61, %v4983_v56 }
 0x72c   : > { %v2697_v53 = vmul.f32 %v2693_v17, %v4983_v56 }
 0x72d   : > { %v2698_v46 = vadd.f32 %v2696_v48, %v2694_v19  ;;  %v3255_v19 = vpop.f32.mrf.mxu0 }
 0x72e   : > { %v2705_v25 = vadd.f32 %v2697_v53, %v2695_v45  ;;  %v2965_v34 = vpop.f32.mrf.mxu2  ;;  %v3296_v45 = vpop.f32.mrf.mxu1 }
 0x72f   : > { %v2994_v10 = vpop.f32.mrf.mxu3  ;;  %v2699_v44 = vrot.slane %v2698_v46, 4 }
 0x730   : > { %v2706_v15 = vrot.slane %v2705_v25, 4 }
 0x731   : > { %v2700_v42 = vadd.f32 %v2699_v44, %v2698_v46 }
 0x732   : > { %v2707_v27 = vadd.f32 %v2706_v15, %v2705_v25 }
 0x733   : > { %v2701_v14 = vrot.slane %v2700_v42, 2 }
 0x734   : > { %v2708_v21 = vrot.slane %v2707_v27, 2 }
 0x735   : > { %v2702_v32 = vadd.f32 %v2701_v14, %v2700_v42 }
 0x736   : > { %v2709_v43 = vadd.f32 %v2708_v21, %v2707_v27  ;;  %v2968_v49 = vpop.f32.mrf.mxu2 }
 0x737   : > { %v2997_v52 = vpop.f32.mrf.mxu3  ;;  %v2703_v24 = vrot.slane %v2702_v32, 1  ;;  %v2969_v42 = vadd.f32 %v2968_v49, %v4761_v18 }
 0x738   : > { %v2710_v4 = vrot.slane %v2709_v43, 1  ;;  %v2998_v27 = vadd.f32 %v2997_v52, %v4761_v18  ;;  %v3256_v52 = vadd.f32 %v3255_v19, %v4691_v12 }
 0x739   : > { %v2704_v63 = vadd.f32 %v2703_v24, %v2702_v32  ;;  %v3258_v32 = vpop.f32.mrf.mxu0  ;;  %v2966_v24 = vadd.f32 %v2965_v34, %v4765_v23 }
 0x73a   : > { %v2711_v55 = vadd.f32 %v2710_v4, %v2709_v43  ;;  %v3299_v43 = vpop.f32.mrf.mxu1  ;;  %v2995_v4 = vadd.f32 %v2994_v10, %v4765_v23  ;;  %v3009_v49 = vmax.f32 %v2998_v27, 0.0  ;;  %v3253_v10 = vadd.f32 %v3252_v1, %v4687_v8 }
 0x73b   : > { %v2712_v29 = vadd.f32 %v2704_v63, %v5014_v39  ;;  %v3314_v19 = vmax.f32 %v3256_v52, 0.0 }
 0x73c   : > { %v2713_v2 = vadd.f32 %v2711_v55, %v5014_v39  ;;  %v3007_v34 = vmax.f32 %v2995_v4, 0.0 }
 0x73e   : > { %v2716_v59 = vrot.slane %v2713_v2, 7  ;;  %v2971_v0 = vpop.f32.mrf.mxu2  ;;  %v3259_v2 = vadd.f32 %v3258_v32, %v4685_v7 }
 0x73f   : > { %v3000_v61 = vpop.f32.mrf.mxu3  ;;  %v2972_v46 = vadd.f32 %v2971_v0, %v4755_v6  ;;  %v3297_v0 = vadd.f32 %v3296_v45, %v4691_v12  ;;  %v3291_v12 = vadd.f32 %v6084_v58, %v4693_v13  ;;  %v3312_v45 = vmax.f32 %v3253_v10, 0.0 }
 0x740   : > { %v2717_v17 = vsel %vm863_vm3, %v2712_v29, %v2716_v59  ;;  %v3001_v25 = vadd.f32 %v3000_v61, %v4755_v6  ;;  %v3300_v29 = vadd.f32 %v3299_v43, %v4685_v7  ;;  %v3008_v59 = vmax.f32 %v2969_v42, 0.0 }
 0x741   : > { %4067 = vst.msk [vmem:[%s5037_s29 + $0xa] sm:$0x3] %vm5028_vm4, %v2717_v17  ;;  %v3010_v63 = vmax.f32 %v2972_v46, 0.0  ;;  %v3006_v61 = vmax.f32 %v2966_v24, 0.0  ;;  %v3294_v17 = vadd.f32 %v3293_v22, %v4687_v8  ;;  %v3250_v7 = vadd.f32 %v6082_v20, %v4693_v13 }
 0x742   : > { %v3011_v55 = vmax.f32 %v3001_v25, 0.0  ;;  %v3315_v1 = vmax.f32 %v3297_v0, 0.0  ;;  %v3247_v8 = vadd.f32 %v6074_v35, %v4689_v11  ;;  %v3288_v22 = vadd.f32 %v6076_v26, %v4689_v11 }
 0x743   : > { %v3313_v46 = vmax.f32 %v3294_v17, 0.0  ;;  %v3244_v20 = vadd.f32 %v6070_v47, %v4703_v28  ;;  %v3285_v13 = vadd.f32 %v6072_v31, %v4703_v28  ;;  %v3310_v58 = vmax.f32 %v3250_v7, 0.0 }
 0x744   : > { %v3311_v25 = vmax.f32 %v3291_v12, 0.0  ;;  %v3241_v35 = vadd.f32 %v6066_v60, %v4707_v33  ;;  %v3282_v11 = vadd.f32 %v6068_v9, %v4707_v33  ;;  %v3308_v26 = vmax.f32 %v3247_v8, 0.0 }
 0x745   : > { %v3238_v28 = vadd.f32 %v6062_v41, %v4711_v38  ;;  %v3279_v47 = vadd.f32 %v6064_v50, %v4711_v38  ;;  %v3306_v60 = vmax.f32 %v3244_v20, 0.0  ;;  %v3307_v31 = vmax.f32 %v3285_v13, 0.0 }
 0x746   : > { %v2974_v48 = vpop.f32.mrf.mxu2  ;;  %v3304_v33 = vmax.f32 %v3241_v35, 0.0  ;;  %v3305_v9 = vmax.f32 %v3282_v11, 0.0 }
 0x747   : > { %v3003_v53 = vpop.f32.mrf.mxu3  ;;  %v2975_v44 = vadd.f32 %v2974_v48, %v4753_v5  ;;  %v3316_v48 = vmax.f32 %v3259_v2, 0.0  ;;  %v3303_v42 = vmax.f32 %v3279_v47, 0.0 }
 0x748   : > { %v3004_v15 = vadd.f32 %v3003_v53, %v4753_v5  ;;  %v3317_v53 = vmax.f32 %v3300_v29, 0.0 }
 0x749   : > { %v3012_v14 = vmax.f32 %v2975_v44, 0.0  ;;  %v3309_v44 = vmax.f32 %v3288_v22, 0.0 }
 0x74a   : > { %v3013_v21 = vmax.f32 %v3004_v15, 0.0  ;;  %v3302_v15 = vmax.f32 %v3238_v28, 0.0 }
 0x74b   : > { %3026 = vmatpush.msra.mxu2 %v3012_v14 }
 0x74c   : > { %3049 = vmatpush.msra.mxu3 %v3013_v21 }
 0x74d   : > { %3027 = vmatpush.msra.mxu2 %v3010_v63 }
 0x74e   : > { %3050 = vmatpush.msra.mxu3 %v3011_v55 }
 0x74f   : > { %3028 = vmatpush.msra.mxu2 %v3008_v59 }
 0x750   : > { %3051 = vmatpush.msra.mxu3 %v3009_v49 }
 0x751   : > { %3029 = vmatpush.msra.mxu2 %v3006_v61 }
 0x752   : > { %3052 = vmatpush.msra.mxu3 %v3007_v34  ;;  %4156 = vmatmul.msk.f32.vlgmr.msra.gmra.mxu2 %vm767_vm2, %v6020_v3 }
 0x753   : > { %4158 = vmatmul.msk.f32.vlgmr.msra.gmra.mxu3 %vm767_vm2, %v6020_v3  ;;  %3326 = vmatpush.msrb.mxu2 %v3316_v48 }
 0x754   : > { %3355 = vmatpush.msrb.mxu3 %v3317_v53 }
 0x755   : > { %3327 = vmatpush.msrb.mxu2 %v3314_v19 }
 0x756   : > { %3356 = vmatpush.msrb.mxu3 %v3315_v1 }
 0x757   : > { %3328 = vmatpush.msrb.mxu2 %v3312_v45 }
 0x758   : > { %3357 = vmatpush.msrb.mxu3 %v3313_v46 }
 0x759   : > { %3329 = vmatpush.msrb.mxu2 %v3310_v58 }
 0x75a   : > { %3358 = vmatpush.msrb.mxu3 %v3311_v25  ;;  %4157 = vmatmul.msk.f32.gmra.mxu2 %vm767_vm2, %v5859_v40 }
 0x75b   : > { %4159 = vmatmul.msk.f32.gmra.mxu3 %vm767_vm2, %v5859_v40  ;;  %3330 = vmatpush.msrb.mxu2 %v3308_v26 }
 0x75c   : > { %3359 = vmatpush.msrb.mxu3 %v3309_v44 }
 0x75d   : > { %3331 = vmatpush.msrb.mxu2 %v3306_v60 }
 0x75e   : > { %3360 = vmatpush.msrb.mxu3 %v3307_v31 }
 0x75f   : > { %3332 = vmatpush.msrb.mxu2 %v3304_v33 }
 0x760   : > { %3361 = vmatpush.msrb.mxu3 %v3305_v9 }
 0x761   : > { %3333 = vmatpush.msrb.mxu2 %v3302_v15 }
 0x762   : > { %3362 = vmatpush.msrb.mxu3 %v3303_v42  ;;  %4241 = vmatmul.msk.f32.vlgmr.msrb.gmra.mxu2 %vm678_vm1, %v5944_v16 }
 0x763   : > { %4245 = vmatmul.msk.f32.vlgmr.msrb.gmra.mxu3 %vm678_vm1, %v5944_v16 }
 0x76a   : > { %4242 = vmatmul.msk.f32.gmra.mxu2 %vm678_vm1, %v5953_v57 }
 0x76b   : > { %4246 = vmatmul.msk.f32.gmra.mxu3 %vm678_vm1, %v5953_v57 }
 0x772   : > { %4243 = vmatmul.msk.f32.gmra.mxu2 %vm678_vm1, %v5962_v36 }
 0x773   : > { %4247 = vmatmul.msk.f32.gmra.mxu3 %vm678_vm1, %v5962_v36 }
 0x77a   : > { %4244 = vmatmul.msk.f32.gmra.mxu2 %vm678_vm1, %v5971_v62 }
 0x77b   : > { %4248 = vmatmul.msk.f32.gmra.mxu3 %vm678_vm1, %v5971_v62 }
 0x7d5   : > { %v3031_v38 = vpop.f32.mrf.mxu2 }
 0x7d6   : > { %v3054_v16 = vpop.f32.mrf.mxu3  ;;  %v3032_v41 = vadd.f32 %v3031_v38, %v4961_v30 }
 0x7d7   : > { %v3055_v50 = vadd.f32 %v3054_v16, %v4961_v30 }
 0x7d8   : > { %v3060_v14 = vmax.f32 %v3032_v41, 0.0 }
 0x7d9   : > { %v3061_v21 = vmax.f32 %v3055_v50, 0.0 }
 0x7da   : > { %v3064_v4 = vmul.f32 %v3060_v14, %v4981_v51 }
 0x7db   : > { %v3065_v62 = vmul.f32 %v3061_v21, %v4981_v51 }
 0x7dd   : > { %v3034_v27 = vpop.f32.mrf.mxu2 }
 0x7de   : > { %v3057_v57 = vpop.f32.mrf.mxu3  ;;  %v3035_v32 = vadd.f32 %v3034_v27, %v4973_v37 }
 0x7df   : > { %v3058_v36 = vadd.f32 %v3057_v57, %v4973_v37 }
 0x7e0   : > { %v3062_v43 = vmax.f32 %v3035_v32, 0.0 }
 0x7e1   : > { %v3063_v24 = vmax.f32 %v3058_v36, 0.0 }
 0x7e2   : > { %v3066_v63 = vmul.f32 %v3062_v43, %v4983_v56 }
 0x7e3   : > { %v3067_v55 = vmul.f32 %v3063_v24, %v4983_v56 }
 0x7e4   : > { %v3068_v2 = vadd.f32 %v3066_v63, %v3064_v4 }
 0x7e5   : > { %v3075_v29 = vadd.f32 %v3067_v55, %v3065_v62  ;;  %v3335_v59 = vpop.f32.mrf.mxu2 }
 0x7e6   : > { %v3364_v49 = vpop.f32.mrf.mxu3  ;;  %v3069_v52 = vrot.slane %v3068_v2, 4  ;;  %v3336_v15 = vadd.f32 %v3335_v59, %v4765_v23 }
 0x7e7   : > { %v3076_v0 = vrot.slane %v3075_v29, 4  ;;  %v3365_v42 = vadd.f32 %v3364_v49, %v4765_v23 }
 0x7e8   : > { %v3070_v61 = vadd.f32 %v3069_v52, %v3068_v2  ;;  %v3376_v50 = vmax.f32 %v3336_v15, 0.0 }
 0x7e9   : > { %v3077_v34 = vadd.f32 %v3076_v0, %v3075_v29 }
 0x7ea   : > { %v3071_v10 = vrot.slane %v3070_v61, 2 }
 0x7eb   : > { %v3078_v17 = vrot.slane %v3077_v34, 2 }
 0x7ec   : > { %v3072_v48 = vadd.f32 %v3071_v10, %v3070_v61 }
 0x7ed   : > { %v3079_v53 = vadd.f32 %v3078_v17, %v3077_v34  ;;  %v3338_v7 = vpop.f32.mrf.mxu2 }
 0x7ee   : > { %v3367_v12 = vpop.f32.mrf.mxu3  ;;  %v3073_v19 = vrot.slane %v3072_v48, 1  ;;  %v3339_v60 = vadd.f32 %v3338_v7, %v4761_v18 }
 0x7ef   : > { %v3080_v1 = vrot.slane %v3079_v53, 1  ;;  %v3368_v31 = vadd.f32 %v3367_v12, %v4761_v18 }
 0x7f0   : > { %v3074_v8 = vadd.f32 %v3073_v19, %v3072_v48  ;;  %v3378_v41 = vmax.f32 %v3339_v60, 0.0 }
 0x7f1   : > { %v3081_v22 = vadd.f32 %v3080_v1, %v3079_v53 }
 0x7f2   : > { %v3082_v46 = vadd.f32 %v3074_v8, %v5014_v39 }
 0x7f3   : > { %v3083_v45 = vadd.f32 %v3081_v22, %v5014_v39 }
 0x7f5   : > { %v3086_v20 = vrot.slane %v3083_v45, 7  ;;  %v3341_v13 = vpop.f32.mrf.mxu2 }
 0x7f6   : > { %v3370_v58 = vpop.f32.mrf.mxu3  ;;  %v3342_v26 = vadd.f32 %v3341_v13, %v4755_v6 }
 0x7f7   : > { %v3087_v25 = vsel %vm863_vm3, %v3082_v46, %v3086_v20  ;;  %v3371_v44 = vadd.f32 %v3370_v58, %v4755_v6  ;;  %v3379_v6 = vmax.f32 %v3368_v31, 0.0 }
 0x7f8   : > { %4160 = vst.msk [vmem:[%s5037_s29 + $0xc] sm:$0x3] %vm5028_vm4, %v3087_v25  ;;  %v3380_v38 = vmax.f32 %v3342_v26, 0.0 }
 0x7f9   : > { %v3381_v16 = vmax.f32 %v3371_v44, 0.0 }
 0x7fd   : > { %v3344_v35 = vpop.f32.mrf.mxu2 }
 0x7fe   : > { %v3373_v11 = vpop.f32.mrf.mxu3  ;;  %v3345_v28 = vadd.f32 %v3344_v35, %v4753_v5 }
 0x7ff   : > { %v3374_v47 = vadd.f32 %v3373_v11, %v4753_v5  ;;  %v3377_v5 = vmax.f32 %v3365_v42, 0.0 }
 0x800   : > { %v3382_v33 = vmax.f32 %v3345_v28, 0.0 }
 0x801   : > { %v3383_v9 = vmax.f32 %v3374_v47, 0.0 }
 0x802   : > { %3396 = vmatpush.msra.mxu2 %v3382_v33 }
 0x803   : > { %3419 = vmatpush.msra.mxu3 %v3383_v9 }
 0x804   : > { %3397 = vmatpush.msra.mxu2 %v3380_v38 }
 0x805   : > { %3420 = vmatpush.msra.mxu3 %v3381_v16 }
 0x806   : > { %3398 = vmatpush.msra.mxu2 %v3378_v41 }
 0x807   : > { %3421 = vmatpush.msra.mxu3 %v3379_v6 }
 0x808   : > { %3399 = vmatpush.msra.mxu2 %v3376_v50 }
 0x809   : > { %3422 = vmatpush.msra.mxu3 %v3377_v5  ;;  %4249 = vmatmul.msk.f32.vlgmr.msra.gmra.mxu2 %vm767_vm2, %v6020_v3 }
 0x80a   : > { %4251 = vmatmul.msk.f32.vlgmr.msra.gmra.mxu3 %vm767_vm2, %v6020_v3 }
 0x811   : > { %4250 = vmatmul.msk.f32.gmra.mxu2 %vm767_vm2, %v5859_v40 }
 0x812   : > { %4252 = vmatmul.msk.f32.gmra.mxu3 %vm767_vm2, %v5859_v40 }
 0x88c   : > { %v3401_v18 = vpop.f32.mrf.mxu2 }
 0x88d   : > { %v3424_v23 = vpop.f32.mrf.mxu3  ;;  %v3402_v27 = vadd.f32 %v3401_v18, %v4961_v30 }
 0x88e   : > { %v3425_v57 = vadd.f32 %v3424_v23, %v4961_v30 }
 0x88f   : > { %v3430_v32 = vmax.f32 %v3402_v27, 0.0 }
 0x890   : > { %v3431_v36 = vmax.f32 %v3425_v57, 0.0 }
 0x891   : > { %v3434_v62 = vmul.f32 %v3430_v32, %v4981_v51 }
 0x892   : > { %v3435_v40 = vmul.f32 %v3431_v36, %v4981_v51 }
 0x894   : > { %v3404_v14 = vpop.f32.mrf.mxu2 }
 0x895   : > { %v3427_v21 = vpop.f32.mrf.mxu3  ;;  %v3405_v43 = vadd.f32 %v3404_v14, %v4973_v37 }
 0x896   : > { %v3428_v3 = vadd.f32 %v3427_v21, %v4973_v37 }
 0x897   : > { %v3432_v24 = vmax.f32 %v3405_v43, 0.0 }
 0x898   : > { %v3433_v4 = vmax.f32 %v3428_v3, 0.0 }
 0x899   : > { %v3436_v63 = vmul.f32 %v3432_v24, %v4983_v56 }
 0x89a   : > { %v3437_v55 = vmul.f32 %v3433_v4, %v4983_v56 }
 0x89b   : > { %v3438_v30 = vadd.f32 %v3436_v63, %v3434_v62 }
 0x89c   : > { %v3445_v2 = vadd.f32 %v3437_v55, %v3435_v40 }
 0x89d   : > { %v3439_v29 = vrot.slane %v3438_v30, 4 }
 0x89e   : > { %v3446_v59 = vrot.slane %v3445_v2, 4 }
 0x89f   : > { %v3440_v49 = vadd.f32 %v3439_v29, %v3438_v30 }
 0x8a0   : > { %v3447_v52 = vadd.f32 %v3446_v59, %v3445_v2 }
 0x8a1   : > { %v3441_v0 = vrot.slane %v3440_v49, 2 }
 0x8a2   : > { %v3448_v37 = vrot.slane %v3447_v52, 2 }
 0x8a3   : > { %v3442_v61 = vadd.f32 %v3441_v0, %v3440_v49 }
 0x8a4   : > { %v3449_v34 = vadd.f32 %v3448_v37, %v3447_v52 }
 0x8a5   : > { %v3443_v10 = vrot.slane %v3442_v61, 1 }
 0x8a6   : > { %v3450_v51 = vrot.slane %v3449_v34, 1 }
 0x8a7   : > { %v3444_v56 = vadd.f32 %v3443_v10, %v3442_v61 }
 0x8a8   : > { %v3451_v17 = vadd.f32 %v3450_v51, %v3449_v34 }
 0x8a9   : > { %v3452_v53 = vadd.f32 %v3444_v56, %v5014_v39 }
 0x8aa   : > { %v3453_v48 = vadd.f32 %v3451_v17, %v5014_v39 }
 0x8ac   : > { %v3456_v7 = vrot.slane %v3453_v48, 7 }
 0x8ae   : > { %v3457_v12 = vsel %vm863_vm3, %v3452_v53, %v3456_v7 }
 0x8af   : > { %4253 = vst.msk [vmem:[%s5037_s29 + $0xe] sm:$0x3] %vm5028_vm4, %v3457_v12 }
 0x8b0   : > { %4356 = shalt.err (!%p4353_p3)
}
 0x8b1   : > { %4258 = dma.vmem_to_hbm [thread:$0]  (%p4485_p5), %s3475_s25, 256, %s3477_s28, %s3462_s8  }
 0x8b2 PF: > { %p4264_p4 = scmp.ge.s32.totalorder %s4391_s14, 2  ;;  %s3488_s27 = sand.u32 1, %s4379_s11  }
 0x8b3   : > { %s3489_s29 = scalar_lea.sflag [#allocation4], %s3488_s27 }
 0x8b4   : > { %p4261_p7 = pnand %p4264_p4, %p4489_p6 }
 0x8b6   : > { %p4262_p8 = pneg %p4261_p7 }
 0x8b8   : > { %4374 = dma.done.wait (%p4262_p8), %s3489_s29, 256  }
 0x8b9   : > { %4376 = vsyncadd (%p4262_p8), %s3489_s29, 4294967040  ;;  %p21_p9 = scmp.ge.s32.totalorder %s4472_s16, 4   ;;  %s6246_s11 = smov %s4383_s12 }
 0x8ba   : > { %s6247_s12 = smov %s4387_s13  ;;  %s6248_s13 = smov %s4483_s19 }
 0x8bb   : > { %s6249_s14 = smov %s4472_s16  ;;  %23 = sbr.rel (!%p21_p9) target bundleno = 6 (0x6), region = 105 }
 0x8c0   :  { %3495 = vsyncpa [#allocation4], 1 }
 0x8c1   :  { %3497 = vsyncpa [#allocation4 + $0x1], 1 }

</bundles_post_ra>
